<compile_context>
chip_gen: v5e
topology: v5e:2x2
jax: 0.10.0
libtpu: 0.0.40
codegen_flags: <defaults>
</compile_context>

<pallas_src>
import jax
import jax.numpy as jnp
from jax import lax
from jax.experimental import pallas as pl
from jax.experimental.pallas import tpu as pltpu

BP = 8      # batch padded to one full sublane group
VP = 128    # vocab padded to one full lane group (lane-dense output store)
AC = 128    # attention-head RHS padded to a full lane group


# ----------------------------------------------------------------------------
# Fused forward kernel
# ----------------------------------------------------------------------------
def _prefetcher_kernel(ids_ref, emb_proj0_ref,
                       w_hh0_ref, b0_ref,
                       w_ih1_ref, w_hh1_ref, b1_ref,
                       attn_mf_ref, attn_mb_ref, attn_b_ref,
                       fc2_w_ref, fc2_b_ref,
                       o_ref, gin_ref, hf_ref, hb_ref):
    lbp = ids_ref.shape[0]                 # L * Bp (time-major flattened rows)
    vocab = emb_proj0_ref.shape[0]
    G8 = emb_proj0_ref.shape[1]            # 8H (fwd gates | bwd gates)
    G = G8 // 2                            # 4H = per-direction gate width (128 here)
    H = w_hh0_ref.shape[0]                 # per-direction hidden size
    Bp = o_ref.shape[0]
    L = lbp // Bp
    B2 = 2 * Bp                            # stacked fwd+bwd batch rows

    # ---- Embedding gather fused with the layer-0 input projection: one MXU
    #      matmul of the one-hot ids against the pre-projected table ----
    ids = ids_ref[...]                                                    # (L*Bp, 1) int32
    onehot = (ids == lax.broadcasted_iota(jnp.int32, (lbp, vocab), 1)).astype(jnp.float32)
    gin_ref[...] = (jnp.dot(onehot, emb_proj0_ref[...],
                            preferred_element_type=jnp.float32)
                    + b0_ref[...])                                         # (L*Bp, 8H)

    # ---- Hoisted constants for the LSTM cell (NOT re-emitted per unrolled step) ----
    lane = lax.broadcasted_iota(jnp.int32, (B2, G), 1)
    is_g = (lane >= 2 * H) & (lane < 3 * H)                                # tanh (g) gate lanes
    g_scale = jnp.where(is_g, 2.0, 1.0).astype(jnp.float32)               # pre/post scale
    g_shift = jnp.where(is_g, -1.0, 0.0).astype(jnp.float32)              # post shift

    def lstm_cell(g_pre, c_prev):
        # g_pre: (2Bp, 4H), PyTorch gate layout [i | f | g | o] per direction.
        # Single EUP pass: tanh(x) = 2*sigmoid(2x) - 1 on the g lanes.
        s = jax.nn.sigmoid(g_pre * g_scale)
        act = s * g_scale + g_shift
        i_g = act[:, 0:H]
        f_g = act[:, H:2 * H]
        g_g = act[:, 2 * H:3 * H]
        o_g = act[:, 3 * H:4 * H]
        c_new = f_g * c_prev + i_g * g_g
        h_new = o_g * jnp.tanh(c_new)
        return h_new, c_new

    def run_bilstm(w_hh_cat):
        # w_hh_cat: (H, 8H) bf16 = [W_hh_fwd | W_hh_bwd] along gate columns.
        # State is sublane-stacked: rows 0..Bp-1 = fwd, rows Bp..2Bp-1 = bwd.
        # fwd handles position s, bwd handles position L-1-s (L static -> full unroll).
        h_st = jnp.zeros((B2, H), jnp.float32)
        c_st = jnp.zeros((B2, H), jnp.float32)
        for s in range(L):
            p_f = s
            p_b = L - 1 - s
            g_all = jnp.dot(h_st.astype(jnp.bfloat16), w_hh_cat,
                            preferred_element_type=jnp.float32)            # (2Bp, 8H)
            # fwd rows take the fwd gate columns, bwd rows the bwd gate columns;
            # all slices are vreg-aligned (Bp=8 sublanes, G=128 lanes).
            g_pre = jnp.concatenate(
                [g_all[0:Bp, 0:G] + gin_ref[p_f * Bp:(p_f + 1) * Bp, 0:G],
                 g_all[Bp:B2, G:G8] + gin_ref[p_b * Bp:(p_b + 1) * Bp, G:G8]],
                axis=0)                                                     # (2Bp, 4H)
            h_st, c_st = lstm_cell(g_pre, c_st)
            hf_ref[p_f * Bp:(p_f + 1) * Bp, :] = h_st[0:Bp, :]
            hb_ref[p_b * Bp:(p_b + 1) * Bp, :] = h_st[Bp:B2, :]

    # ---- BiLSTM layer 0 ----
    run_bilstm(w_hh0_ref[...])

    # TODO(synk): nn.LSTM inter-layer dropout (p=0.1) omitted — eval-mode forward.

    # ---- Layer-1 input projection (hoisted out of the recurrence) ----
    w_ih1 = w_ih1_ref[...]                                                  # (2H, 8H)
    gin_ref[...] = (
        jnp.dot(hf_ref[...], w_ih1[0:H, :], preferred_element_type=jnp.float32)
        + jnp.dot(hb_ref[...], w_ih1[H:2 * H, :], preferred_element_type=jnp.float32)
        + b1_ref[...])

    # ---- BiLSTM layer 1 (overwrites hf_ref/hb_ref with layer-1 outputs) ----
    run_bilstm(w_hh1_ref[...])

    # ---- Head: attention scores & feature sums via two MXU matmuls ----
    # attn_m*: (H, AC) with col 0 = attention weights, col 1 = ones, rest zero.
    sv = (jnp.dot(hf_ref[...], attn_mf_ref[...], preferred_element_type=jnp.float32)
          + jnp.dot(hb_ref[...], attn_mb_ref[...], preferred_element_type=jnp.float32))  # (L*Bp, AC)

    pos = lax.broadcasted_iota(jnp.int32, (Bp, L), 1)
    scores = jnp.zeros((Bp, L), jnp.float32)
    featsum = jnp.zeros((Bp, L), jnp.float32)
    for p in range(L):                          # cheap (Bp,L) reassembly; no reductions
        sel = (pos == p).astype(jnp.float32)
        scores = scores + sv[p * Bp:(p + 1) * Bp, 0:1] * sel
        featsum = featsum + sv[p * Bp:(p + 1) * Bp, 1:2] * sel
    scores = scores + attn_b_ref[0]             # constant shift; kept for fidelity

    # softmax over the sequence axis (PyTorch F.softmax(..., dim=1))
    m = jnp.max(scores, axis=1, keepdims=True)
    e = jnp.exp(scores - m)
    attn = e / jnp.sum(e, axis=1, keepdims=True)                # (Bp, L)
    summed = attn * featsum                                     # sum_d(out * attn) over features

    # fc2 (max_len -> vocab, zero/-inf padded to 128 lanes) + log-softmax over vocab
    logits = (jnp.dot(summed, fc2_w_ref[...], preferred_element_type=jnp.float32)
              + fc2_b_ref[...])                                 # (Bp, VP)
    mx = jnp.max(logits, axis=-1, keepdims=True)
    z = logits - mx
    lse = jnp.log(jnp.sum(jnp.exp(z), axis=-1, keepdims=True))
    o_ref[...] = z - lse                                        # lane-dense store


# ----------------------------------------------------------------------------
# Wrapper: pad batch/vocab, run the single fused kernel, slice padding off
# ----------------------------------------------------------------------------
def prefetcher_forward(fused, ids):
    B, L = ids.shape
    V = fused["emb_proj0"].shape[0]
    H = fused["w_hh0"].shape[0]
    assert B <= BP and V <= VP

    ids_pad = jnp.zeros((BP, L), jnp.int32).at[:B].set(ids.astype(jnp.int32))
    ids_tm = jnp.transpose(ids_pad).reshape(L * BP, 1)          # row index = pos*BP + batch

    vmem = pl.BlockSpec(memory_space=pltpu.MemorySpace.VMEM)
    smem = pl.BlockSpec(memory_space=pltpu.MemorySpace.SMEM)

    out_pad = pl.pallas_call(
        _prefetcher_kernel,
        out_shape=jax.ShapeDtypeStruct((BP, VP), jnp.float32),
        in_specs=[
            vmem,   # ids (L*BP, 1) int32
            vmem,   # emb_proj0 (V, 8H) = emb_tbl @ w_ih0 (gather folded into projection)
            vmem,   # w_hh0 (H, 8H) bf16 = [fwd | bwd]
            vmem,   # b0 (1, 8H)
            vmem,   # w_ih1 (2H, 8H)
            vmem,   # w_hh1 (H, 8H) bf16
            vmem,   # b1 (1, 8H)
            vmem,   # attn_mf (H, AC)
            vmem,   # attn_mb (H, AC)
            smem,   # attn bias (1,)
            vmem,   # fc2 weight (L, VP) padded
            vmem,   # fc2 bias (1, VP) padded
        ],
        out_specs=vmem,
        scratch_shapes=[
            pltpu.VMEM((L * BP, 8 * H), jnp.float32),   # hoisted input projections
            pltpu.VMEM((L * BP, H), jnp.float32),       # per-position fwd hidden
            pltpu.VMEM((L * BP, H), jnp.float32),       # per-position bwd hidden
        ],
    )(ids_tm, fused["emb_proj0"],
      fused["w_hh0"], fused["b0"],
      fused["w_ih1"], fused["w_hh1"], fused["b1"],
      fused["attn_mf"], fused["attn_mb"], fused["attn_b"],
      fused["fc2_w"], fused["fc2_b"])

    return jnp.squeeze(out_pad[:B, :V])   # matches PyTorch x.squeeze()


# ----------------------------------------------------------------------------
# Parameters (deterministic init, PyTorch layout) + kernel-ready fused form
# ----------------------------------------------------------------------------
def make_params(key, vocab_size, emb_size, enc_size, max_len):
    H = enc_size

    def nrm(k, shape, scale=0.1):
        return scale * jax.random.normal(k, shape, dtype=jnp.float32)

    ks = iter(jax.random.split(key, 24))
    params = {"embedding": nrm(next(ks), (vocab_size, emb_size))}

    def lstm_dir_params(in_dim):
        w_ih = nrm(next(ks), (in_dim, 4 * H))     # transposed PyTorch weight_ih (4H, in)
        w_hh = nrm(next(ks), (H, 4 * H))          # transposed PyTorch weight_hh (4H, H)
        b = nrm(next(ks), (1, 4 * H))             # b_ih + b_hh combined
        return (w_ih, w_hh, b)

    params["lstm0"] = {"fwd": lstm_dir_params(emb_size), "bwd": lstm_dir_params(emb_size)}
    params["lstm1"] = {"fwd": lstm_dir_params(2 * H), "bwd": lstm_dir_params(2 * H)}
    params["attn_w"] = nrm(next(ks), (1, 2 * H))               # nn.Linear(2H,1) weight
    params["attn_b"] = nrm(next(ks), (1,))
    params["fc2_w"] = nrm(next(ks), (max_len, vocab_size))     # nn.Linear(max_len,V), transposed
    params["fc2_b"] = nrm(next(ks), (1, vocab_size))
    return params


def fuse_params(params):
    V = params["embedding"].shape[0]
    L = params["fc2_w"].shape[0]
    H = params["lstm0"]["fwd"][1].shape[0]

    def fuse_layer(layer):
        w_ih_f, w_hh_f, b_f = layer["fwd"]
        w_ih_b, w_hh_b, b_b = layer["bwd"]
        w_ih = jnp.concatenate([w_ih_f, w_ih_b], axis=1)       # (I, 8H): fwd|bwd gate cols
        w_hh = jnp.concatenate([w_hh_f, w_hh_b], axis=1)       # (H, 8H): fwd|bwd gate cols
        b = jnp.concatenate([b_f, b_b], axis=1)                # (1, 8H)
        return w_ih, w_hh, b

    w_ih0, w_hh0, b0 = fuse_layer(params["lstm0"])
    w_ih1, w_hh1, b1 = fuse_layer(params["lstm1"])

    # Fold the embedding gather into the layer-0 input projection.
    emb_proj0 = params["embedding"] @ w_ih0                    # (V, 8H)

    # Attention head as matmuls: col 0 = score weights, col 1 = ones (feature sum).
    attn_w = params["attn_w"]
    attn_mf = (jnp.zeros((H, AC), jnp.float32)
               .at[:, 0].set(attn_w[0, 0:H]).at[:, 1].set(1.0))
    attn_mb = (jnp.zeros((H, AC), jnp.float32)
               .at[:, 0].set(attn_w[0, H:2 * H]).at[:, 1].set(1.0))

    fc2_w = jnp.zeros((L, VP), jnp.float32).at[:, :V].set(params["fc2_w"])
    fc2_b = jnp.full((1, VP), -1e30, jnp.float32).at[:, :V].set(params["fc2_b"])

    return dict(emb_proj0=emb_proj0,
                w_hh0=w_hh0.astype(jnp.bfloat16), b0=b0,
                w_ih1=w_ih1, w_hh1=w_hh1.astype(jnp.bfloat16), b1=b1,
                attn_mf=attn_mf, attn_mb=attn_mb, attn_b=params["attn_b"],
                fc2_w=fc2_w, fc2_b=fc2_b)


# ----------------------------------------------------------------------------
# Pure-JAX reference (for a structural sanity check)
# ----------------------------------------------------------------------------
def _ref_lstm_dir(x_tm, w_ih, w_hh, b):
    Hh = w_hh.shape[0]

    def step(carry, x_t):
        h, c = carry
        g = x_t @ w_ih + h @ w_hh + b
        i = jax.nn.sigmoid(g[:, 0:Hh])
        f = jax.nn.sigmoid(g[:, Hh:2 * Hh])
        gg = jnp.tanh(g[:, 2 * Hh:3 * Hh])
        o = jax.nn.sigmoid(g[:, 3 * Hh:4 * Hh])
        c = f * c + i * gg
        h = o * jnp.tanh(c)
        return (h, c), h

    B_ = x_tm.shape[1]
    init = (jnp.zeros((B_, Hh), jnp.float32), jnp.zeros((B_, Hh), jnp.float32))
    _, hs = lax.scan(step, init, x_tm)
    return hs


def reference_forward(params, ids):
    emb = params["embedding"][ids]                             # (B, L, E)
    x = jnp.transpose(emb, (1, 0, 2))                          # (L, B, E)

    def bilayer(x_tm, layer):
        f = _ref_lstm_dir(x_tm, *layer["fwd"])
        b = _ref_lstm_dir(x_tm[::-1], *layer["bwd"])[::-1]
        return jnp.concatenate([f, b], axis=-1)

    h2 = bilayer(bilayer(x, params["lstm0"]), params["lstm1"])  # (L, B, 2H)
    out = jnp.transpose(h2, (1, 0, 2))                          # (B, L, 2H)
    scores = jnp.sum(out * params["attn_w"][0], axis=-1, keepdims=True) + params["attn_b"][0]
    attn = jax.nn.softmax(scores, axis=1)
    summed = jnp.sum(out * attn, axis=-1)                       # (B, L)
    logits = summed @ params["fc2_w"] + params["fc2_b"][0]
    return jnp.squeeze(jax.nn.log_softmax(logits, axis=-1))


if __name__ == "__main__":
    VOCAB = 16       # vocab_size
    EMB = 32         # args.embedding_size
    ENC = 32         # args.encoding_size
    MAX_LEN = 8      # args.max_len (== sequence length L)
    B = 2            # batch

    key = jax.random.PRNGKey(0)
    pkey, dkey = jax.random.split(key)
    params = make_params(pkey, VOCAB, EMB, ENC, MAX_LEN)
    fused = fuse_params(params)
    ids = jax.random.randint(dkey, (B, MAX_LEN), 0, VOCAB, dtype=jnp.int32)

    out = jax.jit(prefetcher_forward)(fused, ids)
    out = jax.block_until_ready(out)
    assert out.shape == (B, VOCAB), out.shape
    assert bool(jnp.all(jnp.isfinite(out)))

    ref = reference_forward(params, ids)
    assert bool(jnp.allclose(out, ref, atol=5e-2, rtol=5e-2)), "mismatch vs pure-JAX reference"
    print("KERNEL_OK")
</pallas_src>

<mosaic_0001>
module attributes {stable_mosaic.version = 11 : i64} {
  func.func @_prefetcher_kernel(%arg0: memref<64x1xi32, #tpu.memory_space<vmem>>, %arg1: memref<16x256xf32, #tpu.memory_space<vmem>>, %arg2: memref<32x256xbf16, #tpu.memory_space<vmem>>, %arg3: memref<1x256xf32, #tpu.memory_space<vmem>>, %arg4: memref<64x256xf32, #tpu.memory_space<vmem>>, %arg5: memref<32x256xbf16, #tpu.memory_space<vmem>>, %arg6: memref<1x256xf32, #tpu.memory_space<vmem>>, %arg7: memref<32x128xf32, #tpu.memory_space<vmem>>, %arg8: memref<32x128xf32, #tpu.memory_space<vmem>>, %arg9: memref<1xf32, #tpu.memory_space<smem>>, %arg10: memref<8x128xf32, #tpu.memory_space<vmem>>, %arg11: memref<1x128xf32, #tpu.memory_space<vmem>>, %arg12: memref<8x128xf32, #tpu.memory_space<vmem>>, %arg13: memref<64x256xf32, #tpu.memory_space<vmem>>, %arg14: memref<64x32xf32, #tpu.memory_space<vmem>>, %arg15: memref<64x32xf32, #tpu.memory_space<vmem>>) attributes {dimension_semantics = [], scalar_prefetch = 0 : i64, scratch_operands = 3 : i64, tpu.core_type = #tpu.core_type<tc>} {
    %c0 = arith.constant 0 : index
    %c0_0 = arith.constant 0 : index
    %0 = vector.load %arg0[%c0, %c0_0] : memref<64x1xi32, #tpu.memory_space<vmem>>, vector<64x1xi32>
    %1 = tpu.iota {dimensions = array<i32: 1>} : vector<64x16xi32>
    %2 = vector.broadcast %0 : vector<64x1xi32> to vector<64x16xi32>
    %3 = arith.cmpi eq, %2, %1 : vector<64x16xi32>
    %4 = arith.extui %3 : vector<64x16xi1> to vector<64x16xi32>
    %5 = arith.sitofp %4 : vector<64x16xi32> to vector<64x16xf32>
    %c0_1 = arith.constant 0 : index
    %c0_2 = arith.constant 0 : index
    %6 = vector.load %arg1[%c0_1, %c0_2] : memref<16x256xf32, #tpu.memory_space<vmem>>, vector<16x256xf32>
    %cst = arith.constant dense<0.000000e+00> : vector<64x256xf32>
    %7 = tpu.matmul %5, %6, %cst {dimension_numbers = #tpu.dot_dimension_numbers<[1], [0], [0], [1], [0, 0, 1, 1], [], []>} : vector<64x16xf32>, vector<16x256xf32>, vector<64x256xf32> -> vector<64x256xf32>
    %c0_3 = arith.constant 0 : index
    %c0_4 = arith.constant 0 : index
    %8 = vector.load %arg3[%c0_3, %c0_4] : memref<1x256xf32, #tpu.memory_space<vmem>>, vector<1x256xf32>
    %9 = vector.broadcast %8 : vector<1x256xf32> to vector<64x256xf32>
    %10 = arith.addf %7, %9 : vector<64x256xf32>
    %c0_5 = arith.constant 0 : index
    %c0_6 = arith.constant 0 : index
    %11 = vector.load %arg13[%c0_5, %c0_6] : memref<64x256xf32, #tpu.memory_space<vmem>>, vector<64x256xf32>
    tpu.vector_store %arg13[%c0_5, %c0_6], %10 {strides = array<i32>} : memref<64x256xf32, #tpu.memory_space<vmem>>, vector<64x256xf32>,
    %12 = tpu.iota {dimensions = array<i32: 1>} : vector<16x128xi32>
    %c64_i32 = arith.constant 64 : i32
    %13 = vector.broadcast %c64_i32 : i32 to vector<16x128xi32>
    %14 = arith.cmpi sge, %12, %13 : vector<16x128xi32>
    %c96_i32 = arith.constant 96 : i32
    %15 = vector.broadcast %c96_i32 : i32 to vector<16x128xi32>
    %16 = arith.cmpi slt, %12, %15 : vector<16x128xi32>
    %17 = arith.andi %14, %16 : vector<16x128xi1>
    %cst_7 = arith.constant 2.000000e+00 : f32
    %cst_8 = arith.constant 1.000000e+00 : f32
    %18 = vector.broadcast %cst_7 : f32 to vector<16x128xf32>
    %19 = vector.broadcast %cst_8 : f32 to vector<16x128xf32>
    %20 = arith.select %17, %18, %19 : vector<16x128xi1>, vector<16x128xf32>
    %cst_9 = arith.constant -1.000000e+00 : f32
    %cst_10 = arith.constant 0.000000e+00 : f32
    %21 = vector.broadcast %cst_9 : f32 to vector<16x128xf32>
    %22 = vector.broadcast %cst_10 : f32 to vector<16x128xf32>
    %23 = arith.select %17, %21, %22 : vector<16x128xi1>, vector<16x128xf32>
    %c0_11 = arith.constant 0 : index
    %c0_12 = arith.constant 0 : index
    %24 = vector.load %arg2[%c0_11, %c0_12] : memref<32x256xbf16, #tpu.memory_space<vmem>>, vector<32x256xbf16>
    %cst_13 = arith.constant 0.000000e+00 : f32
    %25 = vector.broadcast %cst_13 : f32 to vector<16x32xf32>
    %cst_14 = arith.constant 0.000000e+00 : f32
    %26 = vector.broadcast %cst_14 : f32 to vector<16x32xf32>
    %27 = arith.truncf %25 : vector<16x32xf32> to vector<16x32xbf16>
    %cst_15 = arith.constant dense<0.000000e+00> : vector<16x256xf32>
    %28 = tpu.matmul %27, %24, %cst_15 {dimension_numbers = #tpu.dot_dimension_numbers<[1], [0], [0], [1], [0, 0, 1, 1], [], []>} : vector<16x32xbf16>, vector<32x256xbf16>, vector<16x256xf32> -> vector<16x256xf32>
    %29 = vector.extract_strided_slice %28 {offsets = [0, 0], sizes = [8, 128], strides = [1, 1]} : vector<16x256xf32> to vector<8x128xf32>
    %c0_16 = arith.constant 0 : index
    %c0_17 = arith.constant 0 : index
    %30 = vector.load %arg13[%c0_16, %c0_17] : memref<64x256xf32, #tpu.memory_space<vmem>>, vector<8x128xf32>
    %31 = arith.addf %29, %30 : vector<8x128xf32>
    %32 = vector.extract_strided_slice %28 {offsets = [8, 128], sizes = [8, 128], strides = [1, 1]} : vector<16x256xf32> to vector<8x128xf32>
    %c56 = arith.constant 56 : index
    %c128 = arith.constant 128 : index
    %33 = vector.load %arg13[%c56, %c128] : memref<64x256xf32, #tpu.memory_space<vmem>>, vector<8x128xf32>
    %34 = arith.addf %32, %33 : vector<8x128xf32>
    %35 = tpu.concatenate %31, %34 in 0 : vector<8x128xf32>, vector<8x128xf32> -> vector<16x128xf32>
    %36 = arith.mulf %35, %20 : vector<16x128xf32>
    %37 = arith.negf %36 : vector<16x128xf32>
    %38 = math.exp %37 : vector<16x128xf32>
    %cst_18 = arith.constant 1.000000e+00 : f32
    %39 = vector.broadcast %cst_18 : f32 to vector<16x128xf32>
    %40 = arith.addf %39, %38 : vector<16x128xf32>
    %41 = arith.divf %39, %40 : vector<16x128xf32>
    %42 = arith.mulf %41, %20 : vector<16x128xf32>
    %43 = arith.addf %42, %23 : vector<16x128xf32>
    %44 = vector.extract_strided_slice %43 {offsets = [0, 0], sizes = [16, 32], strides = [1, 1]} : vector<16x128xf32> to vector<16x32xf32>
    %45 = vector.extract_strided_slice %43 {offsets = [0, 32], sizes = [16, 32], strides = [1, 1]} : vector<16x128xf32> to vector<16x32xf32>
    %46 = vector.extract_strided_slice %43 {offsets = [0, 64], sizes = [16, 32], strides = [1, 1]} : vector<16x128xf32> to vector<16x32xf32>
    %47 = vector.extract_strided_slice %43 {offsets = [0, 96], sizes = [16, 32], strides = [1, 1]} : vector<16x128xf32> to vector<16x32xf32>
    %48 = arith.mulf %45, %26 : vector<16x32xf32>
    %49 = arith.mulf %44, %46 : vector<16x32xf32>
    %50 = arith.addf %48, %49 : vector<16x32xf32>
    %51 = math.tanh %50 : vector<16x32xf32>
    %52 = arith.mulf %47, %51 : vector<16x32xf32>
    %53 = vector.extract_strided_slice %52 {offsets = [0, 0], sizes = [8, 32], strides = [1, 1]} : vector<16x32xf32> to vector<8x32xf32>
    %c0_19 = arith.constant 0 : index
    %c0_20 = arith.constant 0 : index
    %54 = vector.load %arg14[%c0_19, %c0_20] : memref<64x32xf32, #tpu.memory_space<vmem>>, vector<8x32xf32>
    tpu.vector_store %arg14[%c0_19, %c0_20], %53 {strides = array<i32>} : memref<64x32xf32, #tpu.memory_space<vmem>>, vector<8x32xf32>,
    %55 = vector.extract_strided_slice %52 {offsets = [8, 0], sizes = [8, 32], strides = [1, 1]} : vector<16x32xf32> to vector<8x32xf32>
    %c56_21 = arith.constant 56 : index
    %c0_22 = arith.constant 0 : index
    %56 = vector.load %arg15[%c56_21, %c0_22] : memref<64x32xf32, #tpu.memory_space<vmem>>, vector<8x32xf32>
    tpu.vector_store %arg15[%c56_21, %c0_22], %55 {strides = array<i32>} : memref<64x32xf32, #tpu.memory_space<vmem>>, vector<8x32xf32>,
    %57 = arith.truncf %52 : vector<16x32xf32> to vector<16x32xbf16>
    %cst_23 = arith.constant dense<0.000000e+00> : vector<16x256xf32>
    %58 = tpu.matmul %57, %24, %cst_23 {dimension_numbers = #tpu.dot_dimension_numbers<[1], [0], [0], [1], [0, 0, 1, 1], [], []>} : vector<16x32xbf16>, vector<32x256xbf16>, vector<16x256xf32> -> vector<16x256xf32>
    %59 = vector.extract_strided_slice %58 {offsets = [0, 0], sizes = [8, 128], strides = [1, 1]} : vector<16x256xf32> to vector<8x128xf32>
    %c8 = arith.constant 8 : index
    %c0_24 = arith.constant 0 : index
    %60 = vector.load %arg13[%c8, %c0_24] : memref<64x256xf32, #tpu.memory_space<vmem>>, vector<8x128xf32>
    %61 = arith.addf %59, %60 : vector<8x128xf32>
    %62 = vector.extract_strided_slice %58 {offsets = [8, 128], sizes = [8, 128], strides = [1, 1]} : vector<16x256xf32> to vector<8x128xf32>
    %c48 = arith.constant 48 : index
    %c128_25 = arith.constant 128 : index
    %63 = vector.load %arg13[%c48, %c128_25] : memref<64x256xf32, #tpu.memory_space<vmem>>, vector<8x128xf32>
    %64 = arith.addf %62, %63 : vector<8x128xf32>
    %65 = tpu.concatenate %61, %64 in 0 : vector<8x128xf32>, vector<8x128xf32> -> vector<16x128xf32>
    %66 = arith.mulf %65, %20 : vector<16x128xf32>
    %67 = arith.negf %66 : vector<16x128xf32>
    %68 = math.exp %67 : vector<16x128xf32>
    %cst_26 = arith.constant 1.000000e+00 : f32
    %69 = vector.broadcast %cst_26 : f32 to vector<16x128xf32>
    %70 = arith.addf %69, %68 : vector<16x128xf32>
    %71 = arith.divf %69, %70 : vector<16x128xf32>
    %72 = arith.mulf %71, %20 : vector<16x128xf32>
    %73 = arith.addf %72, %23 : vector<16x128xf32>
    %74 = vector.extract_strided_slice %73 {offsets = [0, 0], sizes = [16, 32], strides = [1, 1]} : vector<16x128xf32> to vector<16x32xf32>
    %75 = vector.extract_strided_slice %73 {offsets = [0, 32], sizes = [16, 32], strides = [1, 1]} : vector<16x128xf32> to vector<16x32xf32>
    %76 = vector.extract_strided_slice %73 {offsets = [0, 64], sizes = [16, 32], strides = [1, 1]} : vector<16x128xf32> to vector<16x32xf32>
    %77 = vector.extract_strided_slice %73 {offsets = [0, 96], sizes = [16, 32], strides = [1, 1]} : vector<16x128xf32> to vector<16x32xf32>
    %78 = arith.mulf %75, %50 : vector<16x32xf32>
    %79 = arith.mulf %74, %76 : vector<16x32xf32>
    %80 = arith.addf %78, %79 : vector<16x32xf32>
    %81 = math.tanh %80 : vector<16x32xf32>
    %82 = arith.mulf %77, %81 : vector<16x32xf32>
    %83 = vector.extract_strided_slice %82 {offsets = [0, 0], sizes = [8, 32], strides = [1, 1]} : vector<16x32xf32> to vector<8x32xf32>
    %c8_27 = arith.constant 8 : index
    %c0_28 = arith.constant 0 : index
    %84 = vector.load %arg14[%c8_27, %c0_28] : memref<64x32xf32, #tpu.memory_space<vmem>>, vector<8x32xf32>
    tpu.vector_store %arg14[%c8_27, %c0_28], %83 {strides = array<i32>} : memref<64x32xf32, #tpu.memory_space<vmem>>, vector<8x32xf32>,
    %85 = vector.extract_strided_slice %82 {offsets = [8, 0], sizes = [8, 32], strides = [1, 1]} : vector<16x32xf32> to vector<8x32xf32>
    %c48_29 = arith.constant 48 : index
    %c0_30 = arith.constant 0 : index
    %86 = vector.load %arg15[%c48_29, %c0_30] : memref<64x32xf32, #tpu.memory_space<vmem>>, vector<8x32xf32>
    tpu.vector_store %arg15[%c48_29, %c0_30], %85 {strides = array<i32>} : memref<64x32xf32, #tpu.memory_space<vmem>>, vector<8x32xf32>,
    %87 = arith.truncf %82 : vector<16x32xf32> to vector<16x32xbf16>
    %cst_31 = arith.constant dense<0.000000e+00> : vector<16x256xf32>
    %88 = tpu.matmul %87, %24, %cst_31 {dimension_numbers = #tpu.dot_dimension_numbers<[1], [0], [0], [1], [0, 0, 1, 1], [], []>} : vector<16x32xbf16>, vector<32x256xbf16>, vector<16x256xf32> -> vector<16x256xf32>
    %89 = vector.extract_strided_slice %88 {offsets = [0, 0], sizes = [8, 128], strides = [1, 1]} : vector<16x256xf32> to vector<8x128xf32>
    %c16 = arith.constant 16 : index
    %c0_32 = arith.constant 0 : index
    %90 = vector.load %arg13[%c16, %c0_32] : memref<64x256xf32, #tpu.memory_space<vmem>>, vector<8x128xf32>
    %91 = arith.addf %89, %90 : vector<8x128xf32>
    %92 = vector.extract_strided_slice %88 {offsets = [8, 128], sizes = [8, 128], strides = [1, 1]} : vector<16x256xf32> to vector<8x128xf32>
    %c40 = arith.constant 40 : index
    %c128_33 = arith.constant 128 : index
    %93 = vector.load %arg13[%c40, %c128_33] : memref<64x256xf32, #tpu.memory_space<vmem>>, vector<8x128xf32>
    %94 = arith.addf %92, %93 : vector<8x128xf32>
    %95 = tpu.concatenate %91, %94 in 0 : vector<8x128xf32>, vector<8x128xf32> -> vector<16x128xf32>
    %96 = arith.mulf %95, %20 : vector<16x128xf32>
    %97 = arith.negf %96 : vector<16x128xf32>
    %98 = math.exp %97 : vector<16x128xf32>
    %cst_34 = arith.constant 1.000000e+00 : f32
    %99 = vector.broadcast %cst_34 : f32 to vector<16x128xf32>
    %100 = arith.addf %99, %98 : vector<16x128xf32>
    %101 = arith.divf %99, %100 : vector<16x128xf32>
    %102 = arith.mulf %101, %20 : vector<16x128xf32>
    %103 = arith.addf %102, %23 : vector<16x128xf32>
    %104 = vector.extract_strided_slice %103 {offsets = [0, 0], sizes = [16, 32], strides = [1, 1]} : vector<16x128xf32> to vector<16x32xf32>
    %105 = vector.extract_strided_slice %103 {offsets = [0, 32], sizes = [16, 32], strides = [1, 1]} : vector<16x128xf32> to vector<16x32xf32>
    %106 = vector.extract_strided_slice %103 {offsets = [0, 64], sizes = [16, 32], strides = [1, 1]} : vector<16x128xf32> to vector<16x32xf32>
    %107 = vector.extract_strided_slice %103 {offsets = [0, 96], sizes = [16, 32], strides = [1, 1]} : vector<16x128xf32> to vector<16x32xf32>
    %108 = arith.mulf %105, %80 : vector<16x32xf32>
    %109 = arith.mulf %104, %106 : vector<16x32xf32>
    %110 = arith.addf %108, %109 : vector<16x32xf32>
    %111 = math.tanh %110 : vector<16x32xf32>
    %112 = arith.mulf %107, %111 : vector<16x32xf32>
    %113 = vector.extract_strided_slice %112 {offsets = [0, 0], sizes = [8, 32], strides = [1, 1]} : vector<16x32xf32> to vector<8x32xf32>
    %c16_35 = arith.constant 16 : index
    %c0_36 = arith.constant 0 : index
    %114 = vector.load %arg14[%c16_35, %c0_36] : memref<64x32xf32, #tpu.memory_space<vmem>>, vector<8x32xf32>
    tpu.vector_store %arg14[%c16_35, %c0_36], %113 {strides = array<i32>} : memref<64x32xf32, #tpu.memory_space<vmem>>, vector<8x32xf32>,
    %115 = vector.extract_strided_slice %112 {offsets = [8, 0], sizes = [8, 32], strides = [1, 1]} : vector<16x32xf32> to vector<8x32xf32>
    %c40_37 = arith.constant 40 : index
    %c0_38 = arith.constant 0 : index
    %116 = vector.load %arg15[%c40_37, %c0_38] : memref<64x32xf32, #tpu.memory_space<vmem>>, vector<8x32xf32>
    tpu.vector_store %arg15[%c40_37, %c0_38], %115 {strides = array<i32>} : memref<64x32xf32, #tpu.memory_space<vmem>>, vector<8x32xf32>,
    %117 = arith.truncf %112 : vector<16x32xf32> to vector<16x32xbf16>
    %cst_39 = arith.constant dense<0.000000e+00> : vector<16x256xf32>
    %118 = tpu.matmul %117, %24, %cst_39 {dimension_numbers = #tpu.dot_dimension_numbers<[1], [0], [0], [1], [0, 0, 1, 1], [], []>} : vector<16x32xbf16>, vector<32x256xbf16>, vector<16x256xf32> -> vector<16x256xf32>
    %119 = vector.extract_strided_slice %118 {offsets = [0, 0], sizes = [8, 128], strides = [1, 1]} : vector<16x256xf32> to vector<8x128xf32>
    %c24 = arith.constant 24 : index
    %c0_40 = arith.constant 0 : index
    %120 = vector.load %arg13[%c24, %c0_40] : memref<64x256xf32, #tpu.memory_space<vmem>>, vector<8x128xf32>
    %121 = arith.addf %119, %120 : vector<8x128xf32>
    %122 = vector.extract_strided_slice %118 {offsets = [8, 128], sizes = [8, 128], strides = [1, 1]} : vector<16x256xf32> to vector<8x128xf32>
    %c32 = arith.constant 32 : index
    %c128_41 = arith.constant 128 : index
    %123 = vector.load %arg13[%c32, %c128_41] : memref<64x256xf32, #tpu.memory_space<vmem>>, vector<8x128xf32>
    %124 = arith.addf %122, %123 : vector<8x128xf32>
    %125 = tpu.concatenate %121, %124 in 0 : vector<8x128xf32>, vector<8x128xf32> -> vector<16x128xf32>
    %126 = arith.mulf %125, %20 : vector<16x128xf32>
    %127 = arith.negf %126 : vector<16x128xf32>
    %128 = math.exp %127 : vector<16x128xf32>
    %cst_42 = arith.constant 1.000000e+00 : f32
    %129 = vector.broadcast %cst_42 : f32 to vector<16x128xf32>
    %130 = arith.addf %129, %128 : vector<16x128xf32>
    %131 = arith.divf %129, %130 : vector<16x128xf32>
    %132 = arith.mulf %131, %20 : vector<16x128xf32>
    %133 = arith.addf %132, %23 : vector<16x128xf32>
    %134 = vector.extract_strided_slice %133 {offsets = [0, 0], sizes = [16, 32], strides = [1, 1]} : vector<16x128xf32> to vector<16x32xf32>
    %135 = vector.extract_strided_slice %133 {offsets = [0, 32], sizes = [16, 32], strides = [1, 1]} : vector<16x128xf32> to vector<16x32xf32>
    %136 = vector.extract_strided_slice %133 {offsets = [0, 64], sizes = [16, 32], strides = [1, 1]} : vector<16x128xf32> to vector<16x32xf32>
    %137 = vector.extract_strided_slice %133 {offsets = [0, 96], sizes = [16, 32], strides = [1, 1]} : vector<16x128xf32> to vector<16x32xf32>
    %138 = arith.mulf %135, %110 : vector<16x32xf32>
    %139 = arith.mulf %134, %136 : vector<16x32xf32>
    %140 = arith.addf %138, %139 : vector<16x32xf32>
    %141 = math.tanh %140 : vector<16x32xf32>
    %142 = arith.mulf %137, %141 : vector<16x32xf32>
    %143 = vector.extract_strided_slice %142 {offsets = [0, 0], sizes = [8, 32], strides = [1, 1]} : vector<16x32xf32> to vector<8x32xf32>
    %c24_43 = arith.constant 24 : index
    %c0_44 = arith.constant 0 : index
    %144 = vector.load %arg14[%c24_43, %c0_44] : memref<64x32xf32, #tpu.memory_space<vmem>>, vector<8x32xf32>
    tpu.vector_store %arg14[%c24_43, %c0_44], %143 {strides = array<i32>} : memref<64x32xf32, #tpu.memory_space<vmem>>, vector<8x32xf32>,
    %145 = vector.extract_strided_slice %142 {offsets = [8, 0], sizes = [8, 32], strides = [1, 1]} : vector<16x32xf32> to vector<8x32xf32>
    %c32_45 = arith.constant 32 : index
    %c0_46 = arith.constant 0 : index
    %146 = vector.load %arg15[%c32_45, %c0_46] : memref<64x32xf32, #tpu.memory_space<vmem>>, vector<8x32xf32>
    tpu.vector_store %arg15[%c32_45, %c0_46], %145 {strides = array<i32>} : memref<64x32xf32, #tpu.memory_space<vmem>>, vector<8x32xf32>,
    %147 = arith.truncf %142 : vector<16x32xf32> to vector<16x32xbf16>
    %cst_47 = arith.constant dense<0.000000e+00> : vector<16x256xf32>
    %148 = tpu.matmul %147, %24, %cst_47 {dimension_numbers = #tpu.dot_dimension_numbers<[1], [0], [0], [1], [0, 0, 1, 1], [], []>} : vector<16x32xbf16>, vector<32x256xbf16>, vector<16x256xf32> -> vector<16x256xf32>
    %149 = vector.extract_strided_slice %148 {offsets = [0, 0], sizes = [8, 128], strides = [1, 1]} : vector<16x256xf32> to vector<8x128xf32>
    %c32_48 = arith.constant 32 : index
    %c0_49 = arith.constant 0 : index
    %150 = vector.load %arg13[%c32_48, %c0_49] : memref<64x256xf32, #tpu.memory_space<vmem>>, vector<8x128xf32>
    %151 = arith.addf %149, %150 : vector<8x128xf32>
    %152 = vector.extract_strided_slice %148 {offsets = [8, 128], sizes = [8, 128], strides = [1, 1]} : vector<16x256xf32> to vector<8x128xf32>
    %c24_50 = arith.constant 24 : index
    %c128_51 = arith.constant 128 : index
    %153 = vector.load %arg13[%c24_50, %c128_51] : memref<64x256xf32, #tpu.memory_space<vmem>>, vector<8x128xf32>
    %154 = arith.addf %152, %153 : vector<8x128xf32>
    %155 = tpu.concatenate %151, %154 in 0 : vector<8x128xf32>, vector<8x128xf32> -> vector<16x128xf32>
    %156 = arith.mulf %155, %20 : vector<16x128xf32>
    %157 = arith.negf %156 : vector<16x128xf32>
    %158 = math.exp %157 : vector<16x128xf32>
    %cst_52 = arith.constant 1.000000e+00 : f32
    %159 = vector.broadcast %cst_52 : f32 to vector<16x128xf32>
    %160 = arith.addf %159, %158 : vector<16x128xf32>
    %161 = arith.divf %159, %160 : vector<16x128xf32>
    %162 = arith.mulf %161, %20 : vector<16x128xf32>
    %163 = arith.addf %162, %23 : vector<16x128xf32>
    %164 = vector.extract_strided_slice %163 {offsets = [0, 0], sizes = [16, 32], strides = [1, 1]} : vector<16x128xf32> to vector<16x32xf32>
    %165 = vector.extract_strided_slice %163 {offsets = [0, 32], sizes = [16, 32], strides = [1, 1]} : vector<16x128xf32> to vector<16x32xf32>
    %166 = vector.extract_strided_slice %163 {offsets = [0, 64], sizes = [16, 32], strides = [1, 1]} : vector<16x128xf32> to vector<16x32xf32>
    %167 = vector.extract_strided_slice %163 {offsets = [0, 96], sizes = [16, 32], strides = [1, 1]} : vector<16x128xf32> to vector<16x32xf32>
    %168 = arith.mulf %165, %140 : vector<16x32xf32>
    %169 = arith.mulf %164, %166 : vector<16x32xf32>
    %170 = arith.addf %168, %169 : vector<16x32xf32>
    %171 = math.tanh %170 : vector<16x32xf32>
    %172 = arith.mulf %167, %171 : vector<16x32xf32>
    %173 = vector.extract_strided_slice %172 {offsets = [0, 0], sizes = [8, 32], strides = [1, 1]} : vector<16x32xf32> to vector<8x32xf32>
    %c32_53 = arith.constant 32 : index
    %c0_54 = arith.constant 0 : index
    %174 = vector.load %arg14[%c32_53, %c0_54] : memref<64x32xf32, #tpu.memory_space<vmem>>, vector<8x32xf32>
    tpu.vector_store %arg14[%c32_53, %c0_54], %173 {strides = array<i32>} : memref<64x32xf32, #tpu.memory_space<vmem>>, vector<8x32xf32>,
    %175 = vector.extract_strided_slice %172 {offsets = [8, 0], sizes = [8, 32], strides = [1, 1]} : vector<16x32xf32> to vector<8x32xf32>
    %c24_55 = arith.constant 24 : index
    %c0_56 = arith.constant 0 : index
    %176 = vector.load %arg15[%c24_55, %c0_56] : memref<64x32xf32, #tpu.memory_space<vmem>>, vector<8x32xf32>
    tpu.vector_store %arg15[%c24_55, %c0_56], %175 {strides = array<i32>} : memref<64x32xf32, #tpu.memory_space<vmem>>, vector<8x32xf32>,
    %177 = arith.truncf %172 : vector<16x32xf32> to vector<16x32xbf16>
    %cst_57 = arith.constant dense<0.000000e+00> : vector<16x256xf32>
    %178 = tpu.matmul %177, %24, %cst_57 {dimension_numbers = #tpu.dot_dimension_numbers<[1], [0], [0], [1], [0, 0, 1, 1], [], []>} : vector<16x32xbf16>, vector<32x256xbf16>, vector<16x256xf32> -> vector<16x256xf32>
    %179 = vector.extract_strided_slice %178 {offsets = [0, 0], sizes = [8, 128], strides = [1, 1]} : vector<16x256xf32> to vector<8x128xf32>
    %c40_58 = arith.constant 40 : index
    %c0_59 = arith.constant 0 : index
    %180 = vector.load %arg13[%c40_58, %c0_59] : memref<64x256xf32, #tpu.memory_space<vmem>>, vector<8x128xf32>
    %181 = arith.addf %179, %180 : vector<8x128xf32>
    %182 = vector.extract_strided_slice %178 {offsets = [8, 128], sizes = [8, 128], strides = [1, 1]} : vector<16x256xf32> to vector<8x128xf32>
    %c16_60 = arith.constant 16 : index
    %c128_61 = arith.constant 128 : index
    %183 = vector.load %arg13[%c16_60, %c128_61] : memref<64x256xf32, #tpu.memory_space<vmem>>, vector<8x128xf32>
    %184 = arith.addf %182, %183 : vector<8x128xf32>
    %185 = tpu.concatenate %181, %184 in 0 : vector<8x128xf32>, vector<8x128xf32> -> vector<16x128xf32>
    %186 = arith.mulf %185, %20 : vector<16x128xf32>
    %187 = arith.negf %186 : vector<16x128xf32>
    %188 = math.exp %187 : vector<16x128xf32>
    %cst_62 = arith.constant 1.000000e+00 : f32
    %189 = vector.broadcast %cst_62 : f32 to vector<16x128xf32>
    %190 = arith.addf %189, %188 : vector<16x128xf32>
    %191 = arith.divf %189, %190 : vector<16x128xf32>
    %192 = arith.mulf %191, %20 : vector<16x128xf32>
    %193 = arith.addf %192, %23 : vector<16x128xf32>
    %194 = vector.extract_strided_slice %193 {offsets = [0, 0], sizes = [16, 32], strides = [1, 1]} : vector<16x128xf32> to vector<16x32xf32>
    %195 = vector.extract_strided_slice %193 {offsets = [0, 32], sizes = [16, 32], strides = [1, 1]} : vector<16x128xf32> to vector<16x32xf32>
    %196 = vector.extract_strided_slice %193 {offsets = [0, 64], sizes = [16, 32], strides = [1, 1]} : vector<16x128xf32> to vector<16x32xf32>
    %197 = vector.extract_strided_slice %193 {offsets = [0, 96], sizes = [16, 32], strides = [1, 1]} : vector<16x128xf32> to vector<16x32xf32>
    %198 = arith.mulf %195, %170 : vector<16x32xf32>
    %199 = arith.mulf %194, %196 : vector<16x32xf32>
    %200 = arith.addf %198, %199 : vector<16x32xf32>
    %201 = math.tanh %200 : vector<16x32xf32>
    %202 = arith.mulf %197, %201 : vector<16x32xf32>
    %203 = vector.extract_strided_slice %202 {offsets = [0, 0], sizes = [8, 32], strides = [1, 1]} : vector<16x32xf32> to vector<8x32xf32>
    %c40_63 = arith.constant 40 : index
    %c0_64 = arith.constant 0 : index
    %204 = vector.load %arg14[%c40_63, %c0_64] : memref<64x32xf32, #tpu.memory_space<vmem>>, vector<8x32xf32>
    tpu.vector_store %arg14[%c40_63, %c0_64], %203 {strides = array<i32>} : memref<64x32xf32, #tpu.memory_space<vmem>>, vector<8x32xf32>,
    %205 = vector.extract_strided_slice %202 {offsets = [8, 0], sizes = [8, 32], strides = [1, 1]} : vector<16x32xf32> to vector<8x32xf32>
    %c16_65 = arith.constant 16 : index
    %c0_66 = arith.constant 0 : index
    %206 = vector.load %arg15[%c16_65, %c0_66] : memref<64x32xf32, #tpu.memory_space<vmem>>, vector<8x32xf32>
    tpu.vector_store %arg15[%c16_65, %c0_66], %205 {strides = array<i32>} : memref<64x32xf32, #tpu.memory_space<vmem>>, vector<8x32xf32>,
    %207 = arith.truncf %202 : vector<16x32xf32> to vector<16x32xbf16>
    %cst_67 = arith.constant dense<0.000000e+00> : vector<16x256xf32>
    %208 = tpu.matmul %207, %24, %cst_67 {dimension_numbers = #tpu.dot_dimension_numbers<[1], [0], [0], [1], [0, 0, 1, 1], [], []>} : vector<16x32xbf16>, vector<32x256xbf16>, vector<16x256xf32> -> vector<16x256xf32>
    %209 = vector.extract_strided_slice %208 {offsets = [0, 0], sizes = [8, 128], strides = [1, 1]} : vector<16x256xf32> to vector<8x128xf32>
    %c48_68 = arith.constant 48 : index
    %c0_69 = arith.constant 0 : index
    %210 = vector.load %arg13[%c48_68, %c0_69] : memref<64x256xf32, #tpu.memory_space<vmem>>, vector<8x128xf32>
    %211 = arith.addf %209, %210 : vector<8x128xf32>
    %212 = vector.extract_strided_slice %208 {offsets = [8, 128], sizes = [8, 128], strides = [1, 1]} : vector<16x256xf32> to vector<8x128xf32>
    %c8_70 = arith.constant 8 : index
    %c128_71 = arith.constant 128 : index
    %213 = vector.load %arg13[%c8_70, %c128_71] : memref<64x256xf32, #tpu.memory_space<vmem>>, vector<8x128xf32>
    %214 = arith.addf %212, %213 : vector<8x128xf32>
    %215 = tpu.concatenate %211, %214 in 0 : vector<8x128xf32>, vector<8x128xf32> -> vector<16x128xf32>
    %216 = arith.mulf %215, %20 : vector<16x128xf32>
    %217 = arith.negf %216 : vector<16x128xf32>
    %218 = math.exp %217 : vector<16x128xf32>
    %cst_72 = arith.constant 1.000000e+00 : f32
    %219 = vector.broadcast %cst_72 : f32 to vector<16x128xf32>
    %220 = arith.addf %219, %218 : vector<16x128xf32>
    %221 = arith.divf %219, %220 : vector<16x128xf32>
    %222 = arith.mulf %221, %20 : vector<16x128xf32>
    %223 = arith.addf %222, %23 : vector<16x128xf32>
    %224 = vector.extract_strided_slice %223 {offsets = [0, 0], sizes = [16, 32], strides = [1, 1]} : vector<16x128xf32> to vector<16x32xf32>
    %225 = vector.extract_strided_slice %223 {offsets = [0, 32], sizes = [16, 32], strides = [1, 1]} : vector<16x128xf32> to vector<16x32xf32>
    %226 = vector.extract_strided_slice %223 {offsets = [0, 64], sizes = [16, 32], strides = [1, 1]} : vector<16x128xf32> to vector<16x32xf32>
    %227 = vector.extract_strided_slice %223 {offsets = [0, 96], sizes = [16, 32], strides = [1, 1]} : vector<16x128xf32> to vector<16x32xf32>
    %228 = arith.mulf %225, %200 : vector<16x32xf32>
    %229 = arith.mulf %224, %226 : vector<16x32xf32>
    %230 = arith.addf %228, %229 : vector<16x32xf32>
    %231 = math.tanh %230 : vector<16x32xf32>
    %232 = arith.mulf %227, %231 : vector<16x32xf32>
    %233 = vector.extract_strided_slice %232 {offsets = [0, 0], sizes = [8, 32], strides = [1, 1]} : vector<16x32xf32> to vector<8x32xf32>
    %c48_73 = arith.constant 48 : index
    %c0_74 = arith.constant 0 : index
    %234 = vector.load %arg14[%c48_73, %c0_74] : memref<64x32xf32, #tpu.memory_space<vmem>>, vector<8x32xf32>
    tpu.vector_store %arg14[%c48_73, %c0_74], %233 {strides = array<i32>} : memref<64x32xf32, #tpu.memory_space<vmem>>, vector<8x32xf32>,
    %235 = vector.extract_strided_slice %232 {offsets = [8, 0], sizes = [8, 32], strides = [1, 1]} : vector<16x32xf32> to vector<8x32xf32>
    %c8_75 = arith.constant 8 : index
    %c0_76 = arith.constant 0 : index
    %236 = vector.load %arg15[%c8_75, %c0_76] : memref<64x32xf32, #tpu.memory_space<vmem>>, vector<8x32xf32>
    tpu.vector_store %arg15[%c8_75, %c0_76], %235 {strides = array<i32>} : memref<64x32xf32, #tpu.memory_space<vmem>>, vector<8x32xf32>,
    %237 = arith.truncf %232 : vector<16x32xf32> to vector<16x32xbf16>
    %cst_77 = arith.constant dense<0.000000e+00> : vector<16x256xf32>
    %238 = tpu.matmul %237, %24, %cst_77 {dimension_numbers = #tpu.dot_dimension_numbers<[1], [0], [0], [1], [0, 0, 1, 1], [], []>} : vector<16x32xbf16>, vector<32x256xbf16>, vector<16x256xf32> -> vector<16x256xf32>
    %239 = vector.extract_strided_slice %238 {offsets = [0, 0], sizes = [8, 128], strides = [1, 1]} : vector<16x256xf32> to vector<8x128xf32>
    %c56_78 = arith.constant 56 : index
    %c0_79 = arith.constant 0 : index
    %240 = vector.load %arg13[%c56_78, %c0_79] : memref<64x256xf32, #tpu.memory_space<vmem>>, vector<8x128xf32>
    %241 = arith.addf %239, %240 : vector<8x128xf32>
    %242 = vector.extract_strided_slice %238 {offsets = [8, 128], sizes = [8, 128], strides = [1, 1]} : vector<16x256xf32> to vector<8x128xf32>
    %c0_80 = arith.constant 0 : index
    %c128_81 = arith.constant 128 : index
    %243 = vector.load %arg13[%c0_80, %c128_81] : memref<64x256xf32, #tpu.memory_space<vmem>>, vector<8x128xf32>
    %244 = arith.addf %242, %243 : vector<8x128xf32>
    %245 = tpu.concatenate %241, %244 in 0 : vector<8x128xf32>, vector<8x128xf32> -> vector<16x128xf32>
    %246 = arith.mulf %245, %20 : vector<16x128xf32>
    %247 = arith.negf %246 : vector<16x128xf32>
    %248 = math.exp %247 : vector<16x128xf32>
    %cst_82 = arith.constant 1.000000e+00 : f32
    %249 = vector.broadcast %cst_82 : f32 to vector<16x128xf32>
    %250 = arith.addf %249, %248 : vector<16x128xf32>
    %251 = arith.divf %249, %250 : vector<16x128xf32>
    %252 = arith.mulf %251, %20 : vector<16x128xf32>
    %253 = arith.addf %252, %23 : vector<16x128xf32>
    %254 = vector.extract_strided_slice %253 {offsets = [0, 0], sizes = [16, 32], strides = [1, 1]} : vector<16x128xf32> to vector<16x32xf32>
    %255 = vector.extract_strided_slice %253 {offsets = [0, 32], sizes = [16, 32], strides = [1, 1]} : vector<16x128xf32> to vector<16x32xf32>
    %256 = vector.extract_strided_slice %253 {offsets = [0, 64], sizes = [16, 32], strides = [1, 1]} : vector<16x128xf32> to vector<16x32xf32>
    %257 = vector.extract_strided_slice %253 {offsets = [0, 96], sizes = [16, 32], strides = [1, 1]} : vector<16x128xf32> to vector<16x32xf32>
    %258 = arith.mulf %255, %230 : vector<16x32xf32>
    %259 = arith.mulf %254, %256 : vector<16x32xf32>
    %260 = arith.addf %258, %259 : vector<16x32xf32>
    %261 = math.tanh %260 : vector<16x32xf32>
    %262 = arith.mulf %257, %261 : vector<16x32xf32>
    %263 = vector.extract_strided_slice %262 {offsets = [0, 0], sizes = [8, 32], strides = [1, 1]} : vector<16x32xf32> to vector<8x32xf32>
    %c56_83 = arith.constant 56 : index
    %c0_84 = arith.constant 0 : index
    %264 = vector.load %arg14[%c56_83, %c0_84] : memref<64x32xf32, #tpu.memory_space<vmem>>, vector<8x32xf32>
    tpu.vector_store %arg14[%c56_83, %c0_84], %263 {strides = array<i32>} : memref<64x32xf32, #tpu.memory_space<vmem>>, vector<8x32xf32>,
    %265 = vector.extract_strided_slice %262 {offsets = [8, 0], sizes = [8, 32], strides = [1, 1]} : vector<16x32xf32> to vector<8x32xf32>
    %c0_85 = arith.constant 0 : index
    %c0_86 = arith.constant 0 : index
    %266 = vector.load %arg15[%c0_85, %c0_86] : memref<64x32xf32, #tpu.memory_space<vmem>>, vector<8x32xf32>
    tpu.vector_store %arg15[%c0_85, %c0_86], %265 {strides = array<i32>} : memref<64x32xf32, #tpu.memory_space<vmem>>, vector<8x32xf32>,
    %c0_87 = arith.constant 0 : index
    %c0_88 = arith.constant 0 : index
    %267 = vector.load %arg4[%c0_87, %c0_88] : memref<64x256xf32, #tpu.memory_space<vmem>>, vector<64x256xf32>
    %c0_89 = arith.constant 0 : index
    %c0_90 = arith.constant 0 : index
    %268 = vector.load %arg14[%c0_89, %c0_90] : memref<64x32xf32, #tpu.memory_space<vmem>>, vector<64x32xf32>
    %269 = vector.extract_strided_slice %267 {offsets = [0, 0], sizes = [32, 256], strides = [1, 1]} : vector<64x256xf32> to vector<32x256xf32>
    %cst_91 = arith.constant dense<0.000000e+00> : vector<64x256xf32>
    %270 = tpu.matmul %268, %269, %cst_91 {dimension_numbers = #tpu.dot_dimension_numbers<[1], [0], [0], [1], [0, 0, 1, 1], [], []>} : vector<64x32xf32>, vector<32x256xf32>, vector<64x256xf32> -> vector<64x256xf32>
    %c0_92 = arith.constant 0 : index
    %c0_93 = arith.constant 0 : index
    %271 = vector.load %arg15[%c0_92, %c0_93] : memref<64x32xf32, #tpu.memory_space<vmem>>, vector<64x32xf32>
    %272 = vector.extract_strided_slice %267 {offsets = [32, 0], sizes = [32, 256], strides = [1, 1]} : vector<64x256xf32> to vector<32x256xf32>
    %cst_94 = arith.constant dense<0.000000e+00> : vector<64x256xf32>
    %273 = tpu.matmul %271, %272, %cst_94 {dimension_numbers = #tpu.dot_dimension_numbers<[1], [0], [0], [1], [0, 0, 1, 1], [], []>} : vector<64x32xf32>, vector<32x256xf32>, vector<64x256xf32> -> vector<64x256xf32>
    %274 = arith.addf %270, %273 : vector<64x256xf32>
    %c0_95 = arith.constant 0 : index
    %c0_96 = arith.constant 0 : index
    %275 = vector.load %arg6[%c0_95, %c0_96] : memref<1x256xf32, #tpu.memory_space<vmem>>, vector<1x256xf32>
    %276 = vector.broadcast %275 : vector<1x256xf32> to vector<64x256xf32>
    %277 = arith.addf %274, %276 : vector<64x256xf32>
    %c0_97 = arith.constant 0 : index
    %c0_98 = arith.constant 0 : index
    %278 = vector.load %arg13[%c0_97, %c0_98] : memref<64x256xf32, #tpu.memory_space<vmem>>, vector<64x256xf32>
    tpu.vector_store %arg13[%c0_97, %c0_98], %277 {strides = array<i32>} : memref<64x256xf32, #tpu.memory_space<vmem>>, vector<64x256xf32>,
    %c0_99 = arith.constant 0 : index
    %c0_100 = arith.constant 0 : index
    %279 = vector.load %arg5[%c0_99, %c0_100] : memref<32x256xbf16, #tpu.memory_space<vmem>>, vector<32x256xbf16>
    %cst_101 = arith.constant 0.000000e+00 : f32
    %280 = vector.broadcast %cst_101 : f32 to vector<16x32xf32>
    %cst_102 = arith.constant 0.000000e+00 : f32
    %281 = vector.broadcast %cst_102 : f32 to vector<16x32xf32>
    %282 = arith.truncf %280 : vector<16x32xf32> to vector<16x32xbf16>
    %cst_103 = arith.constant dense<0.000000e+00> : vector<16x256xf32>
    %283 = tpu.matmul %282, %279, %cst_103 {dimension_numbers = #tpu.dot_dimension_numbers<[1], [0], [0], [1], [0, 0, 1, 1], [], []>} : vector<16x32xbf16>, vector<32x256xbf16>, vector<16x256xf32> -> vector<16x256xf32>
    %284 = vector.extract_strided_slice %283 {offsets = [0, 0], sizes = [8, 128], strides = [1, 1]} : vector<16x256xf32> to vector<8x128xf32>
    %c0_104 = arith.constant 0 : index
    %c0_105 = arith.constant 0 : index
    %285 = vector.load %arg13[%c0_104, %c0_105] : memref<64x256xf32, #tpu.memory_space<vmem>>, vector<8x128xf32>
    %286 = arith.addf %284, %285 : vector<8x128xf32>
    %287 = vector.extract_strided_slice %283 {offsets = [8, 128], sizes = [8, 128], strides = [1, 1]} : vector<16x256xf32> to vector<8x128xf32>
    %c56_106 = arith.constant 56 : index
    %c128_107 = arith.constant 128 : index
    %288 = vector.load %arg13[%c56_106, %c128_107] : memref<64x256xf32, #tpu.memory_space<vmem>>, vector<8x128xf32>
    %289 = arith.addf %287, %288 : vector<8x128xf32>
    %290 = tpu.concatenate %286, %289 in 0 : vector<8x128xf32>, vector<8x128xf32> -> vector<16x128xf32>
    %291 = arith.mulf %290, %20 : vector<16x128xf32>
    %292 = arith.negf %291 : vector<16x128xf32>
    %293 = math.exp %292 : vector<16x128xf32>
    %cst_108 = arith.constant 1.000000e+00 : f32
    %294 = vector.broadcast %cst_108 : f32 to vector<16x128xf32>
    %295 = arith.addf %294, %293 : vector<16x128xf32>
    %296 = arith.divf %294, %295 : vector<16x128xf32>
    %297 = arith.mulf %296, %20 : vector<16x128xf32>
    %298 = arith.addf %297, %23 : vector<16x128xf32>
    %299 = vector.extract_strided_slice %298 {offsets = [0, 0], sizes = [16, 32], strides = [1, 1]} : vector<16x128xf32> to vector<16x32xf32>
    %300 = vector.extract_strided_slice %298 {offsets = [0, 32], sizes = [16, 32], strides = [1, 1]} : vector<16x128xf32> to vector<16x32xf32>
    %301 = vector.extract_strided_slice %298 {offsets = [0, 64], sizes = [16, 32], strides = [1, 1]} : vector<16x128xf32> to vector<16x32xf32>
    %302 = vector.extract_strided_slice %298 {offsets = [0, 96], sizes = [16, 32], strides = [1, 1]} : vector<16x128xf32> to vector<16x32xf32>
    %303 = arith.mulf %300, %281 : vector<16x32xf32>
    %304 = arith.mulf %299, %301 : vector<16x32xf32>
    %305 = arith.addf %303, %304 : vector<16x32xf32>
    %306 = math.tanh %305 : vector<16x32xf32>
    %307 = arith.mulf %302, %306 : vector<16x32xf32>
    %308 = vector.extract_strided_slice %307 {offsets = [0, 0], sizes = [8, 32], strides = [1, 1]} : vector<16x32xf32> to vector<8x32xf32>
    %c0_109 = arith.constant 0 : index
    %c0_110 = arith.constant 0 : index
    %309 = vector.load %arg14[%c0_109, %c0_110] : memref<64x32xf32, #tpu.memory_space<vmem>>, vector<8x32xf32>
    tpu.vector_store %arg14[%c0_109, %c0_110], %308 {strides = array<i32>} : memref<64x32xf32, #tpu.memory_space<vmem>>, vector<8x32xf32>,
    %310 = vector.extract_strided_slice %307 {offsets = [8, 0], sizes = [8, 32], strides = [1, 1]} : vector<16x32xf32> to vector<8x32xf32>
    %c56_111 = arith.constant 56 : index
    %c0_112 = arith.constant 0 : index
    %311 = vector.load %arg15[%c56_111, %c0_112] : memref<64x32xf32, #tpu.memory_space<vmem>>, vector<8x32xf32>
    tpu.vector_store %arg15[%c56_111, %c0_112], %310 {strides = array<i32>} : memref<64x32xf32, #tpu.memory_space<vmem>>, vector<8x32xf32>,
    %312 = arith.truncf %307 : vector<16x32xf32> to vector<16x32xbf16>
    %cst_113 = arith.constant dense<0.000000e+00> : vector<16x256xf32>
    %313 = tpu.matmul %312, %279, %cst_113 {dimension_numbers = #tpu.dot_dimension_numbers<[1], [0], [0], [1], [0, 0, 1, 1], [], []>} : vector<16x32xbf16>, vector<32x256xbf16>, vector<16x256xf32> -> vector<16x256xf32>
    %314 = vector.extract_strided_slice %313 {offsets = [0, 0], sizes = [8, 128], strides = [1, 1]} : vector<16x256xf32> to vector<8x128xf32>
    %c8_114 = arith.constant 8 : index
    %c0_115 = arith.constant 0 : index
    %315 = vector.load %arg13[%c8_114, %c0_115] : memref<64x256xf32, #tpu.memory_space<vmem>>, vector<8x128xf32>
    %316 = arith.addf %314, %315 : vector<8x128xf32>
    %317 = vector.extract_strided_slice %313 {offsets = [8, 128], sizes = [8, 128], strides = [1, 1]} : vector<16x256xf32> to vector<8x128xf32>
    %c48_116 = arith.constant 48 : index
    %c128_117 = arith.constant 128 : index
    %318 = vector.load %arg13[%c48_116, %c128_117] : memref<64x256xf32, #tpu.memory_space<vmem>>, vector<8x128xf32>
    %319 = arith.addf %317, %318 : vector<8x128xf32>
    %320 = tpu.concatenate %316, %319 in 0 : vector<8x128xf32>, vector<8x128xf32> -> vector<16x128xf32>
    %321 = arith.mulf %320, %20 : vector<16x128xf32>
    %322 = arith.negf %321 : vector<16x128xf32>
    %323 = math.exp %322 : vector<16x128xf32>
    %cst_118 = arith.constant 1.000000e+00 : f32
    %324 = vector.broadcast %cst_118 : f32 to vector<16x128xf32>
    %325 = arith.addf %324, %323 : vector<16x128xf32>
    %326 = arith.divf %324, %325 : vector<16x128xf32>
    %327 = arith.mulf %326, %20 : vector<16x128xf32>
    %328 = arith.addf %327, %23 : vector<16x128xf32>
    %329 = vector.extract_strided_slice %328 {offsets = [0, 0], sizes = [16, 32], strides = [1, 1]} : vector<16x128xf32> to vector<16x32xf32>
    %330 = vector.extract_strided_slice %328 {offsets = [0, 32], sizes = [16, 32], strides = [1, 1]} : vector<16x128xf32> to vector<16x32xf32>
    %331 = vector.extract_strided_slice %328 {offsets = [0, 64], sizes = [16, 32], strides = [1, 1]} : vector<16x128xf32> to vector<16x32xf32>
    %332 = vector.extract_strided_slice %328 {offsets = [0, 96], sizes = [16, 32], strides = [1, 1]} : vector<16x128xf32> to vector<16x32xf32>
    %333 = arith.mulf %330, %305 : vector<16x32xf32>
    %334 = arith.mulf %329, %331 : vector<16x32xf32>
    %335 = arith.addf %333, %334 : vector<16x32xf32>
    %336 = math.tanh %335 : vector<16x32xf32>
    %337 = arith.mulf %332, %336 : vector<16x32xf32>
    %338 = vector.extract_strided_slice %337 {offsets = [0, 0], sizes = [8, 32], strides = [1, 1]} : vector<16x32xf32> to vector<8x32xf32>
    %c8_119 = arith.constant 8 : index
    %c0_120 = arith.constant 0 : index
    %339 = vector.load %arg14[%c8_119, %c0_120] : memref<64x32xf32, #tpu.memory_space<vmem>>, vector<8x32xf32>
    tpu.vector_store %arg14[%c8_119, %c0_120], %338 {strides = array<i32>} : memref<64x32xf32, #tpu.memory_space<vmem>>, vector<8x32xf32>,
    %340 = vector.extract_strided_slice %337 {offsets = [8, 0], sizes = [8, 32], strides = [1, 1]} : vector<16x32xf32> to vector<8x32xf32>
    %c48_121 = arith.constant 48 : index
    %c0_122 = arith.constant 0 : index
    %341 = vector.load %arg15[%c48_121, %c0_122] : memref<64x32xf32, #tpu.memory_space<vmem>>, vector<8x32xf32>
    tpu.vector_store %arg15[%c48_121, %c0_122], %340 {strides = array<i32>} : memref<64x32xf32, #tpu.memory_space<vmem>>, vector<8x32xf32>,
    %342 = arith.truncf %337 : vector<16x32xf32> to vector<16x32xbf16>
    %cst_123 = arith.constant dense<0.000000e+00> : vector<16x256xf32>
    %343 = tpu.matmul %342, %279, %cst_123 {dimension_numbers = #tpu.dot_dimension_numbers<[1], [0], [0], [1], [0, 0, 1, 1], [], []>} : vector<16x32xbf16>, vector<32x256xbf16>, vector<16x256xf32> -> vector<16x256xf32>
    %344 = vector.extract_strided_slice %343 {offsets = [0, 0], sizes = [8, 128], strides = [1, 1]} : vector<16x256xf32> to vector<8x128xf32>
    %c16_124 = arith.constant 16 : index
    %c0_125 = arith.constant 0 : index
    %345 = vector.load %arg13[%c16_124, %c0_125] : memref<64x256xf32, #tpu.memory_space<vmem>>, vector<8x128xf32>
    %346 = arith.addf %344, %345 : vector<8x128xf32>
    %347 = vector.extract_strided_slice %343 {offsets = [8, 128], sizes = [8, 128], strides = [1, 1]} : vector<16x256xf32> to vector<8x128xf32>
    %c40_126 = arith.constant 40 : index
    %c128_127 = arith.constant 128 : index
    %348 = vector.load %arg13[%c40_126, %c128_127] : memref<64x256xf32, #tpu.memory_space<vmem>>, vector<8x128xf32>
    %349 = arith.addf %347, %348 : vector<8x128xf32>
    %350 = tpu.concatenate %346, %349 in 0 : vector<8x128xf32>, vector<8x128xf32> -> vector<16x128xf32>
    %351 = arith.mulf %350, %20 : vector<16x128xf32>
    %352 = arith.negf %351 : vector<16x128xf32>
    %353 = math.exp %352 : vector<16x128xf32>
    %cst_128 = arith.constant 1.000000e+00 : f32
    %354 = vector.broadcast %cst_128 : f32 to vector<16x128xf32>
    %355 = arith.addf %354, %353 : vector<16x128xf32>
    %356 = arith.divf %354, %355 : vector<16x128xf32>
    %357 = arith.mulf %356, %20 : vector<16x128xf32>
    %358 = arith.addf %357, %23 : vector<16x128xf32>
    %359 = vector.extract_strided_slice %358 {offsets = [0, 0], sizes = [16, 32], strides = [1, 1]} : vector<16x128xf32> to vector<16x32xf32>
    %360 = vector.extract_strided_slice %358 {offsets = [0, 32], sizes = [16, 32], strides = [1, 1]} : vector<16x128xf32> to vector<16x32xf32>
    %361 = vector.extract_strided_slice %358 {offsets = [0, 64], sizes = [16, 32], strides = [1, 1]} : vector<16x128xf32> to vector<16x32xf32>
    %362 = vector.extract_strided_slice %358 {offsets = [0, 96], sizes = [16, 32], strides = [1, 1]} : vector<16x128xf32> to vector<16x32xf32>
    %363 = arith.mulf %360, %335 : vector<16x32xf32>
    %364 = arith.mulf %359, %361 : vector<16x32xf32>
    %365 = arith.addf %363, %364 : vector<16x32xf32>
    %366 = math.tanh %365 : vector<16x32xf32>
    %367 = arith.mulf %362, %366 : vector<16x32xf32>
    %368 = vector.extract_strided_slice %367 {offsets = [0, 0], sizes = [8, 32], strides = [1, 1]} : vector<16x32xf32> to vector<8x32xf32>
    %c16_129 = arith.constant 16 : index
    %c0_130 = arith.constant 0 : index
    %369 = vector.load %arg14[%c16_129, %c0_130] : memref<64x32xf32, #tpu.memory_space<vmem>>, vector<8x32xf32>
    tpu.vector_store %arg14[%c16_129, %c0_130], %368 {strides = array<i32>} : memref<64x32xf32, #tpu.memory_space<vmem>>, vector<8x32xf32>,
    %370 = vector.extract_strided_slice %367 {offsets = [8, 0], sizes = [8, 32], strides = [1, 1]} : vector<16x32xf32> to vector<8x32xf32>
    %c40_131 = arith.constant 40 : index
    %c0_132 = arith.constant 0 : index
    %371 = vector.load %arg15[%c40_131, %c0_132] : memref<64x32xf32, #tpu.memory_space<vmem>>, vector<8x32xf32>
    tpu.vector_store %arg15[%c40_131, %c0_132], %370 {strides = array<i32>} : memref<64x32xf32, #tpu.memory_space<vmem>>, vector<8x32xf32>,
    %372 = arith.truncf %367 : vector<16x32xf32> to vector<16x32xbf16>
    %cst_133 = arith.constant dense<0.000000e+00> : vector<16x256xf32>
    %373 = tpu.matmul %372, %279, %cst_133 {dimension_numbers = #tpu.dot_dimension_numbers<[1], [0], [0], [1], [0, 0, 1, 1], [], []>} : vector<16x32xbf16>, vector<32x256xbf16>, vector<16x256xf32> -> vector<16x256xf32>
    %374 = vector.extract_strided_slice %373 {offsets = [0, 0], sizes = [8, 128], strides = [1, 1]} : vector<16x256xf32> to vector<8x128xf32>
    %c24_134 = arith.constant 24 : index
    %c0_135 = arith.constant 0 : index
    %375 = vector.load %arg13[%c24_134, %c0_135] : memref<64x256xf32, #tpu.memory_space<vmem>>, vector<8x128xf32>
    %376 = arith.addf %374, %375 : vector<8x128xf32>
    %377 = vector.extract_strided_slice %373 {offsets = [8, 128], sizes = [8, 128], strides = [1, 1]} : vector<16x256xf32> to vector<8x128xf32>
    %c32_136 = arith.constant 32 : index
    %c128_137 = arith.constant 128 : index
    %378 = vector.load %arg13[%c32_136, %c128_137] : memref<64x256xf32, #tpu.memory_space<vmem>>, vector<8x128xf32>
    %379 = arith.addf %377, %378 : vector<8x128xf32>
    %380 = tpu.concatenate %376, %379 in 0 : vector<8x128xf32>, vector<8x128xf32> -> vector<16x128xf32>
    %381 = arith.mulf %380, %20 : vector<16x128xf32>
    %382 = arith.negf %381 : vector<16x128xf32>
    %383 = math.exp %382 : vector<16x128xf32>
    %cst_138 = arith.constant 1.000000e+00 : f32
    %384 = vector.broadcast %cst_138 : f32 to vector<16x128xf32>
    %385 = arith.addf %384, %383 : vector<16x128xf32>
    %386 = arith.divf %384, %385 : vector<16x128xf32>
    %387 = arith.mulf %386, %20 : vector<16x128xf32>
    %388 = arith.addf %387, %23 : vector<16x128xf32>
    %389 = vector.extract_strided_slice %388 {offsets = [0, 0], sizes = [16, 32], strides = [1, 1]} : vector<16x128xf32> to vector<16x32xf32>
    %390 = vector.extract_strided_slice %388 {offsets = [0, 32], sizes = [16, 32], strides = [1, 1]} : vector<16x128xf32> to vector<16x32xf32>
    %391 = vector.extract_strided_slice %388 {offsets = [0, 64], sizes = [16, 32], strides = [1, 1]} : vector<16x128xf32> to vector<16x32xf32>
    %392 = vector.extract_strided_slice %388 {offsets = [0, 96], sizes = [16, 32], strides = [1, 1]} : vector<16x128xf32> to vector<16x32xf32>
    %393 = arith.mulf %390, %365 : vector<16x32xf32>
    %394 = arith.mulf %389, %391 : vector<16x32xf32>
    %395 = arith.addf %393, %394 : vector<16x32xf32>
    %396 = math.tanh %395 : vector<16x32xf32>
    %397 = arith.mulf %392, %396 : vector<16x32xf32>
    %398 = vector.extract_strided_slice %397 {offsets = [0, 0], sizes = [8, 32], strides = [1, 1]} : vector<16x32xf32> to vector<8x32xf32>
    %c24_139 = arith.constant 24 : index
    %c0_140 = arith.constant 0 : index
    %399 = vector.load %arg14[%c24_139, %c0_140] : memref<64x32xf32, #tpu.memory_space<vmem>>, vector<8x32xf32>
    tpu.vector_store %arg14[%c24_139, %c0_140], %398 {strides = array<i32>} : memref<64x32xf32, #tpu.memory_space<vmem>>, vector<8x32xf32>,
    %400 = vector.extract_strided_slice %397 {offsets = [8, 0], sizes = [8, 32], strides = [1, 1]} : vector<16x32xf32> to vector<8x32xf32>
    %c32_141 = arith.constant 32 : index
    %c0_142 = arith.constant 0 : index
    %401 = vector.load %arg15[%c32_141, %c0_142] : memref<64x32xf32, #tpu.memory_space<vmem>>, vector<8x32xf32>
    tpu.vector_store %arg15[%c32_141, %c0_142], %400 {strides = array<i32>} : memref<64x32xf32, #tpu.memory_space<vmem>>, vector<8x32xf32>,
    %402 = arith.truncf %397 : vector<16x32xf32> to vector<16x32xbf16>
    %cst_143 = arith.constant dense<0.000000e+00> : vector<16x256xf32>
    %403 = tpu.matmul %402, %279, %cst_143 {dimension_numbers = #tpu.dot_dimension_numbers<[1], [0], [0], [1], [0, 0, 1, 1], [], []>} : vector<16x32xbf16>, vector<32x256xbf16>, vector<16x256xf32> -> vector<16x256xf32>
    %404 = vector.extract_strided_slice %403 {offsets = [0, 0], sizes = [8, 128], strides = [1, 1]} : vector<16x256xf32> to vector<8x128xf32>
    %c32_144 = arith.constant 32 : index
    %c0_145 = arith.constant 0 : index
    %405 = vector.load %arg13[%c32_144, %c0_145] : memref<64x256xf32, #tpu.memory_space<vmem>>, vector<8x128xf32>
    %406 = arith.addf %404, %405 : vector<8x128xf32>
    %407 = vector.extract_strided_slice %403 {offsets = [8, 128], sizes = [8, 128], strides = [1, 1]} : vector<16x256xf32> to vector<8x128xf32>
    %c24_146 = arith.constant 24 : index
    %c128_147 = arith.constant 128 : index
    %408 = vector.load %arg13[%c24_146, %c128_147] : memref<64x256xf32, #tpu.memory_space<vmem>>, vector<8x128xf32>
    %409 = arith.addf %407, %408 : vector<8x128xf32>
    %410 = tpu.concatenate %406, %409 in 0 : vector<8x128xf32>, vector<8x128xf32> -> vector<16x128xf32>
    %411 = arith.mulf %410, %20 : vector<16x128xf32>
    %412 = arith.negf %411 : vector<16x128xf32>
    %413 = math.exp %412 : vector<16x128xf32>
    %cst_148 = arith.constant 1.000000e+00 : f32
    %414 = vector.broadcast %cst_148 : f32 to vector<16x128xf32>
    %415 = arith.addf %414, %413 : vector<16x128xf32>
    %416 = arith.divf %414, %415 : vector<16x128xf32>
    %417 = arith.mulf %416, %20 : vector<16x128xf32>
    %418 = arith.addf %417, %23 : vector<16x128xf32>
    %419 = vector.extract_strided_slice %418 {offsets = [0, 0], sizes = [16, 32], strides = [1, 1]} : vector<16x128xf32> to vector<16x32xf32>
    %420 = vector.extract_strided_slice %418 {offsets = [0, 32], sizes = [16, 32], strides = [1, 1]} : vector<16x128xf32> to vector<16x32xf32>
    %421 = vector.extract_strided_slice %418 {offsets = [0, 64], sizes = [16, 32], strides = [1, 1]} : vector<16x128xf32> to vector<16x32xf32>
    %422 = vector.extract_strided_slice %418 {offsets = [0, 96], sizes = [16, 32], strides = [1, 1]} : vector<16x128xf32> to vector<16x32xf32>
    %423 = arith.mulf %420, %395 : vector<16x32xf32>
    %424 = arith.mulf %419, %421 : vector<16x32xf32>
    %425 = arith.addf %423, %424 : vector<16x32xf32>
    %426 = math.tanh %425 : vector<16x32xf32>
    %427 = arith.mulf %422, %426 : vector<16x32xf32>
    %428 = vector.extract_strided_slice %427 {offsets = [0, 0], sizes = [8, 32], strides = [1, 1]} : vector<16x32xf32> to vector<8x32xf32>
    %c32_149 = arith.constant 32 : index
    %c0_150 = arith.constant 0 : index
    %429 = vector.load %arg14[%c32_149, %c0_150] : memref<64x32xf32, #tpu.memory_space<vmem>>, vector<8x32xf32>
    tpu.vector_store %arg14[%c32_149, %c0_150], %428 {strides = array<i32>} : memref<64x32xf32, #tpu.memory_space<vmem>>, vector<8x32xf32>,
    %430 = vector.extract_strided_slice %427 {offsets = [8, 0], sizes = [8, 32], strides = [1, 1]} : vector<16x32xf32> to vector<8x32xf32>
    %c24_151 = arith.constant 24 : index
    %c0_152 = arith.constant 0 : index
    %431 = vector.load %arg15[%c24_151, %c0_152] : memref<64x32xf32, #tpu.memory_space<vmem>>, vector<8x32xf32>
    tpu.vector_store %arg15[%c24_151, %c0_152], %430 {strides = array<i32>} : memref<64x32xf32, #tpu.memory_space<vmem>>, vector<8x32xf32>,
    %432 = arith.truncf %427 : vector<16x32xf32> to vector<16x32xbf16>
    %cst_153 = arith.constant dense<0.000000e+00> : vector<16x256xf32>
    %433 = tpu.matmul %432, %279, %cst_153 {dimension_numbers = #tpu.dot_dimension_numbers<[1], [0], [0], [1], [0, 0, 1, 1], [], []>} : vector<16x32xbf16>, vector<32x256xbf16>, vector<16x256xf32> -> vector<16x256xf32>
    %434 = vector.extract_strided_slice %433 {offsets = [0, 0], sizes = [8, 128], strides = [1, 1]} : vector<16x256xf32> to vector<8x128xf32>
    %c40_154 = arith.constant 40 : index
    %c0_155 = arith.constant 0 : index
    %435 = vector.load %arg13[%c40_154, %c0_155] : memref<64x256xf32, #tpu.memory_space<vmem>>, vector<8x128xf32>
    %436 = arith.addf %434, %435 : vector<8x128xf32>
    %437 = vector.extract_strided_slice %433 {offsets = [8, 128], sizes = [8, 128], strides = [1, 1]} : vector<16x256xf32> to vector<8x128xf32>
    %c16_156 = arith.constant 16 : index
    %c128_157 = arith.constant 128 : index
    %438 = vector.load %arg13[%c16_156, %c128_157] : memref<64x256xf32, #tpu.memory_space<vmem>>, vector<8x128xf32>
    %439 = arith.addf %437, %438 : vector<8x128xf32>
    %440 = tpu.concatenate %436, %439 in 0 : vector<8x128xf32>, vector<8x128xf32> -> vector<16x128xf32>
    %441 = arith.mulf %440, %20 : vector<16x128xf32>
    %442 = arith.negf %441 : vector<16x128xf32>
    %443 = math.exp %442 : vector<16x128xf32>
    %cst_158 = arith.constant 1.000000e+00 : f32
    %444 = vector.broadcast %cst_158 : f32 to vector<16x128xf32>
    %445 = arith.addf %444, %443 : vector<16x128xf32>
    %446 = arith.divf %444, %445 : vector<16x128xf32>
    %447 = arith.mulf %446, %20 : vector<16x128xf32>
    %448 = arith.addf %447, %23 : vector<16x128xf32>
    %449 = vector.extract_strided_slice %448 {offsets = [0, 0], sizes = [16, 32], strides = [1, 1]} : vector<16x128xf32> to vector<16x32xf32>
    %450 = vector.extract_strided_slice %448 {offsets = [0, 32], sizes = [16, 32], strides = [1, 1]} : vector<16x128xf32> to vector<16x32xf32>
    %451 = vector.extract_strided_slice %448 {offsets = [0, 64], sizes = [16, 32], strides = [1, 1]} : vector<16x128xf32> to vector<16x32xf32>
    %452 = vector.extract_strided_slice %448 {offsets = [0, 96], sizes = [16, 32], strides = [1, 1]} : vector<16x128xf32> to vector<16x32xf32>
    %453 = arith.mulf %450, %425 : vector<16x32xf32>
    %454 = arith.mulf %449, %451 : vector<16x32xf32>
    %455 = arith.addf %453, %454 : vector<16x32xf32>
    %456 = math.tanh %455 : vector<16x32xf32>
    %457 = arith.mulf %452, %456 : vector<16x32xf32>
    %458 = vector.extract_strided_slice %457 {offsets = [0, 0], sizes = [8, 32], strides = [1, 1]} : vector<16x32xf32> to vector<8x32xf32>
    %c40_159 = arith.constant 40 : index
    %c0_160 = arith.constant 0 : index
    %459 = vector.load %arg14[%c40_159, %c0_160] : memref<64x32xf32, #tpu.memory_space<vmem>>, vector<8x32xf32>
    tpu.vector_store %arg14[%c40_159, %c0_160], %458 {strides = array<i32>} : memref<64x32xf32, #tpu.memory_space<vmem>>, vector<8x32xf32>,
    %460 = vector.extract_strided_slice %457 {offsets = [8, 0], sizes = [8, 32], strides = [1, 1]} : vector<16x32xf32> to vector<8x32xf32>
    %c16_161 = arith.constant 16 : index
    %c0_162 = arith.constant 0 : index
    %461 = vector.load %arg15[%c16_161, %c0_162] : memref<64x32xf32, #tpu.memory_space<vmem>>, vector<8x32xf32>
    tpu.vector_store %arg15[%c16_161, %c0_162], %460 {strides = array<i32>} : memref<64x32xf32, #tpu.memory_space<vmem>>, vector<8x32xf32>,
    %462 = arith.truncf %457 : vector<16x32xf32> to vector<16x32xbf16>
    %cst_163 = arith.constant dense<0.000000e+00> : vector<16x256xf32>
    %463 = tpu.matmul %462, %279, %cst_163 {dimension_numbers = #tpu.dot_dimension_numbers<[1], [0], [0], [1], [0, 0, 1, 1], [], []>} : vector<16x32xbf16>, vector<32x256xbf16>, vector<16x256xf32> -> vector<16x256xf32>
    %464 = vector.extract_strided_slice %463 {offsets = [0, 0], sizes = [8, 128], strides = [1, 1]} : vector<16x256xf32> to vector<8x128xf32>
    %c48_164 = arith.constant 48 : index
    %c0_165 = arith.constant 0 : index
    %465 = vector.load %arg13[%c48_164, %c0_165] : memref<64x256xf32, #tpu.memory_space<vmem>>, vector<8x128xf32>
    %466 = arith.addf %464, %465 : vector<8x128xf32>
    %467 = vector.extract_strided_slice %463 {offsets = [8, 128], sizes = [8, 128], strides = [1, 1]} : vector<16x256xf32> to vector<8x128xf32>
    %c8_166 = arith.constant 8 : index
    %c128_167 = arith.constant 128 : index
    %468 = vector.load %arg13[%c8_166, %c128_167] : memref<64x256xf32, #tpu.memory_space<vmem>>, vector<8x128xf32>
    %469 = arith.addf %467, %468 : vector<8x128xf32>
    %470 = tpu.concatenate %466, %469 in 0 : vector<8x128xf32>, vector<8x128xf32> -> vector<16x128xf32>
    %471 = arith.mulf %470, %20 : vector<16x128xf32>
    %472 = arith.negf %471 : vector<16x128xf32>
    %473 = math.exp %472 : vector<16x128xf32>
    %cst_168 = arith.constant 1.000000e+00 : f32
    %474 = vector.broadcast %cst_168 : f32 to vector<16x128xf32>
    %475 = arith.addf %474, %473 : vector<16x128xf32>
    %476 = arith.divf %474, %475 : vector<16x128xf32>
    %477 = arith.mulf %476, %20 : vector<16x128xf32>
    %478 = arith.addf %477, %23 : vector<16x128xf32>
    %479 = vector.extract_strided_slice %478 {offsets = [0, 0], sizes = [16, 32], strides = [1, 1]} : vector<16x128xf32> to vector<16x32xf32>
    %480 = vector.extract_strided_slice %478 {offsets = [0, 32], sizes = [16, 32], strides = [1, 1]} : vector<16x128xf32> to vector<16x32xf32>
    %481 = vector.extract_strided_slice %478 {offsets = [0, 64], sizes = [16, 32], strides = [1, 1]} : vector<16x128xf32> to vector<16x32xf32>
    %482 = vector.extract_strided_slice %478 {offsets = [0, 96], sizes = [16, 32], strides = [1, 1]} : vector<16x128xf32> to vector<16x32xf32>
    %483 = arith.mulf %480, %455 : vector<16x32xf32>
    %484 = arith.mulf %479, %481 : vector<16x32xf32>
    %485 = arith.addf %483, %484 : vector<16x32xf32>
    %486 = math.tanh %485 : vector<16x32xf32>
    %487 = arith.mulf %482, %486 : vector<16x32xf32>
    %488 = vector.extract_strided_slice %487 {offsets = [0, 0], sizes = [8, 32], strides = [1, 1]} : vector<16x32xf32> to vector<8x32xf32>
    %c48_169 = arith.constant 48 : index
    %c0_170 = arith.constant 0 : index
    %489 = vector.load %arg14[%c48_169, %c0_170] : memref<64x32xf32, #tpu.memory_space<vmem>>, vector<8x32xf32>
    tpu.vector_store %arg14[%c48_169, %c0_170], %488 {strides = array<i32>} : memref<64x32xf32, #tpu.memory_space<vmem>>, vector<8x32xf32>,
    %490 = vector.extract_strided_slice %487 {offsets = [8, 0], sizes = [8, 32], strides = [1, 1]} : vector<16x32xf32> to vector<8x32xf32>
    %c8_171 = arith.constant 8 : index
    %c0_172 = arith.constant 0 : index
    %491 = vector.load %arg15[%c8_171, %c0_172] : memref<64x32xf32, #tpu.memory_space<vmem>>, vector<8x32xf32>
    tpu.vector_store %arg15[%c8_171, %c0_172], %490 {strides = array<i32>} : memref<64x32xf32, #tpu.memory_space<vmem>>, vector<8x32xf32>,
    %492 = arith.truncf %487 : vector<16x32xf32> to vector<16x32xbf16>
    %cst_173 = arith.constant dense<0.000000e+00> : vector<16x256xf32>
    %493 = tpu.matmul %492, %279, %cst_173 {dimension_numbers = #tpu.dot_dimension_numbers<[1], [0], [0], [1], [0, 0, 1, 1], [], []>} : vector<16x32xbf16>, vector<32x256xbf16>, vector<16x256xf32> -> vector<16x256xf32>
    %494 = vector.extract_strided_slice %493 {offsets = [0, 0], sizes = [8, 128], strides = [1, 1]} : vector<16x256xf32> to vector<8x128xf32>
    %c56_174 = arith.constant 56 : index
    %c0_175 = arith.constant 0 : index
    %495 = vector.load %arg13[%c56_174, %c0_175] : memref<64x256xf32, #tpu.memory_space<vmem>>, vector<8x128xf32>
    %496 = arith.addf %494, %495 : vector<8x128xf32>
    %497 = vector.extract_strided_slice %493 {offsets = [8, 128], sizes = [8, 128], strides = [1, 1]} : vector<16x256xf32> to vector<8x128xf32>
    %c0_176 = arith.constant 0 : index
    %c128_177 = arith.constant 128 : index
    %498 = vector.load %arg13[%c0_176, %c128_177] : memref<64x256xf32, #tpu.memory_space<vmem>>, vector<8x128xf32>
    %499 = arith.addf %497, %498 : vector<8x128xf32>
    %500 = tpu.concatenate %496, %499 in 0 : vector<8x128xf32>, vector<8x128xf32> -> vector<16x128xf32>
    %501 = arith.mulf %500, %20 : vector<16x128xf32>
    %502 = arith.negf %501 : vector<16x128xf32>
    %503 = math.exp %502 : vector<16x128xf32>
    %cst_178 = arith.constant 1.000000e+00 : f32
    %504 = vector.broadcast %cst_178 : f32 to vector<16x128xf32>
    %505 = arith.addf %504, %503 : vector<16x128xf32>
    %506 = arith.divf %504, %505 : vector<16x128xf32>
    %507 = arith.mulf %506, %20 : vector<16x128xf32>
    %508 = arith.addf %507, %23 : vector<16x128xf32>
    %509 = vector.extract_strided_slice %508 {offsets = [0, 0], sizes = [16, 32], strides = [1, 1]} : vector<16x128xf32> to vector<16x32xf32>
    %510 = vector.extract_strided_slice %508 {offsets = [0, 32], sizes = [16, 32], strides = [1, 1]} : vector<16x128xf32> to vector<16x32xf32>
    %511 = vector.extract_strided_slice %508 {offsets = [0, 64], sizes = [16, 32], strides = [1, 1]} : vector<16x128xf32> to vector<16x32xf32>
    %512 = vector.extract_strided_slice %508 {offsets = [0, 96], sizes = [16, 32], strides = [1, 1]} : vector<16x128xf32> to vector<16x32xf32>
    %513 = arith.mulf %510, %485 : vector<16x32xf32>
    %514 = arith.mulf %509, %511 : vector<16x32xf32>
    %515 = arith.addf %513, %514 : vector<16x32xf32>
    %516 = math.tanh %515 : vector<16x32xf32>
    %517 = arith.mulf %512, %516 : vector<16x32xf32>
    %518 = vector.extract_strided_slice %517 {offsets = [0, 0], sizes = [8, 32], strides = [1, 1]} : vector<16x32xf32> to vector<8x32xf32>
    %c56_179 = arith.constant 56 : index
    %c0_180 = arith.constant 0 : index
    %519 = vector.load %arg14[%c56_179, %c0_180] : memref<64x32xf32, #tpu.memory_space<vmem>>, vector<8x32xf32>
    tpu.vector_store %arg14[%c56_179, %c0_180], %518 {strides = array<i32>} : memref<64x32xf32, #tpu.memory_space<vmem>>, vector<8x32xf32>,
    %520 = vector.extract_strided_slice %517 {offsets = [8, 0], sizes = [8, 32], strides = [1, 1]} : vector<16x32xf32> to vector<8x32xf32>
    %c0_181 = arith.constant 0 : index
    %c0_182 = arith.constant 0 : index
    %521 = vector.load %arg15[%c0_181, %c0_182] : memref<64x32xf32, #tpu.memory_space<vmem>>, vector<8x32xf32>
    tpu.vector_store %arg15[%c0_181, %c0_182], %520 {strides = array<i32>} : memref<64x32xf32, #tpu.memory_space<vmem>>, vector<8x32xf32>,
    %c0_183 = arith.constant 0 : index
    %c0_184 = arith.constant 0 : index
    %522 = vector.load %arg14[%c0_183, %c0_184] : memref<64x32xf32, #tpu.memory_space<vmem>>, vector<64x32xf32>
    %c0_185 = arith.constant 0 : index
    %c0_186 = arith.constant 0 : index
    %523 = vector.load %arg7[%c0_185, %c0_186] : memref<32x128xf32, #tpu.memory_space<vmem>>, vector<32x128xf32>
    %cst_187 = arith.constant dense<0.000000e+00> : vector<64x128xf32>
    %524 = tpu.matmul %522, %523, %cst_187 {dimension_numbers = #tpu.dot_dimension_numbers<[1], [0], [0], [1], [0, 0, 1, 1], [], []>} : vector<64x32xf32>, vector<32x128xf32>, vector<64x128xf32> -> vector<64x128xf32>
    %c0_188 = arith.constant 0 : index
    %c0_189 = arith.constant 0 : index
    %525 = vector.load %arg15[%c0_188, %c0_189] : memref<64x32xf32, #tpu.memory_space<vmem>>, vector<64x32xf32>
    %c0_190 = arith.constant 0 : index
    %c0_191 = arith.constant 0 : index
    %526 = vector.load %arg8[%c0_190, %c0_191] : memref<32x128xf32, #tpu.memory_space<vmem>>, vector<32x128xf32>
    %cst_192 = arith.constant dense<0.000000e+00> : vector<64x128xf32>
    %527 = tpu.matmul %525, %526, %cst_192 {dimension_numbers = #tpu.dot_dimension_numbers<[1], [0], [0], [1], [0, 0, 1, 1], [], []>} : vector<64x32xf32>, vector<32x128xf32>, vector<64x128xf32> -> vector<64x128xf32>
    %528 = arith.addf %524, %527 : vector<64x128xf32>
    %529 = tpu.iota {dimensions = array<i32: 1>} : vector<8x8xi32>
    %cst_193 = arith.constant 0.000000e+00 : f32
    %530 = vector.broadcast %cst_193 : f32 to vector<8x8xf32>
    %cst_194 = arith.constant 0.000000e+00 : f32
    %531 = vector.broadcast %cst_194 : f32 to vector<8x8xf32>
    %c0_i32 = arith.constant 0 : i32
    %532 = vector.broadcast %c0_i32 : i32 to vector<8x8xi32>
    %533 = arith.cmpi eq, %529, %532 : vector<8x8xi32>
    %534 = arith.extui %533 : vector<8x8xi1> to vector<8x8xi32>
    %535 = arith.sitofp %534 : vector<8x8xi32> to vector<8x8xf32>
    %536 = vector.extract_strided_slice %528 {offsets = [0, 0], sizes = [8, 1], strides = [1, 1]} : vector<64x128xf32> to vector<8x1xf32>
    %537 = vector.broadcast %536 : vector<8x1xf32> to vector<8x8xf32>
    %538 = arith.mulf %537, %535 : vector<8x8xf32>
    %539 = arith.addf %530, %538 : vector<8x8xf32>
    %540 = vector.extract_strided_slice %528 {offsets = [0, 1], sizes = [8, 1], strides = [1, 1]} : vector<64x128xf32> to vector<8x1xf32>
    %541 = vector.broadcast %540 : vector<8x1xf32> to vector<8x8xf32>
    %542 = arith.mulf %541, %535 : vector<8x8xf32>
    %543 = arith.addf %531, %542 : vector<8x8xf32>
    %c1_i32 = arith.constant 1 : i32
    %544 = vector.broadcast %c1_i32 : i32 to vector<8x8xi32>
    %545 = arith.cmpi eq, %529, %544 : vector<8x8xi32>
    %546 = arith.extui %545 : vector<8x8xi1> to vector<8x8xi32>
    %547 = arith.sitofp %546 : vector<8x8xi32> to vector<8x8xf32>
    %548 = vector.extract_strided_slice %528 {offsets = [8, 0], sizes = [8, 1], strides = [1, 1]} : vector<64x128xf32> to vector<8x1xf32>
    %549 = vector.broadcast %548 : vector<8x1xf32> to vector<8x8xf32>
    %550 = arith.mulf %549, %547 : vector<8x8xf32>
    %551 = arith.addf %539, %550 : vector<8x8xf32>
    %552 = vector.extract_strided_slice %528 {offsets = [8, 1], sizes = [8, 1], strides = [1, 1]} : vector<64x128xf32> to vector<8x1xf32>
    %553 = vector.broadcast %552 : vector<8x1xf32> to vector<8x8xf32>
    %554 = arith.mulf %553, %547 : vector<8x8xf32>
    %555 = arith.addf %543, %554 : vector<8x8xf32>
    %c2_i32 = arith.constant 2 : i32
    %556 = vector.broadcast %c2_i32 : i32 to vector<8x8xi32>
    %557 = arith.cmpi eq, %529, %556 : vector<8x8xi32>
    %558 = arith.extui %557 : vector<8x8xi1> to vector<8x8xi32>
    %559 = arith.sitofp %558 : vector<8x8xi32> to vector<8x8xf32>
    %560 = vector.extract_strided_slice %528 {offsets = [16, 0], sizes = [8, 1], strides = [1, 1]} : vector<64x128xf32> to vector<8x1xf32>
    %561 = vector.broadcast %560 : vector<8x1xf32> to vector<8x8xf32>
    %562 = arith.mulf %561, %559 : vector<8x8xf32>
    %563 = arith.addf %551, %562 : vector<8x8xf32>
    %564 = vector.extract_strided_slice %528 {offsets = [16, 1], sizes = [8, 1], strides = [1, 1]} : vector<64x128xf32> to vector<8x1xf32>
    %565 = vector.broadcast %564 : vector<8x1xf32> to vector<8x8xf32>
    %566 = arith.mulf %565, %559 : vector<8x8xf32>
    %567 = arith.addf %555, %566 : vector<8x8xf32>
    %c3_i32 = arith.constant 3 : i32
    %568 = vector.broadcast %c3_i32 : i32 to vector<8x8xi32>
    %569 = arith.cmpi eq, %529, %568 : vector<8x8xi32>
    %570 = arith.extui %569 : vector<8x8xi1> to vector<8x8xi32>
    %571 = arith.sitofp %570 : vector<8x8xi32> to vector<8x8xf32>
    %572 = vector.extract_strided_slice %528 {offsets = [24, 0], sizes = [8, 1], strides = [1, 1]} : vector<64x128xf32> to vector<8x1xf32>
    %573 = vector.broadcast %572 : vector<8x1xf32> to vector<8x8xf32>
    %574 = arith.mulf %573, %571 : vector<8x8xf32>
    %575 = arith.addf %563, %574 : vector<8x8xf32>
    %576 = vector.extract_strided_slice %528 {offsets = [24, 1], sizes = [8, 1], strides = [1, 1]} : vector<64x128xf32> to vector<8x1xf32>
    %577 = vector.broadcast %576 : vector<8x1xf32> to vector<8x8xf32>
    %578 = arith.mulf %577, %571 : vector<8x8xf32>
    %579 = arith.addf %567, %578 : vector<8x8xf32>
    %c4_i32 = arith.constant 4 : i32
    %580 = vector.broadcast %c4_i32 : i32 to vector<8x8xi32>
    %581 = arith.cmpi eq, %529, %580 : vector<8x8xi32>
    %582 = arith.extui %581 : vector<8x8xi1> to vector<8x8xi32>
    %583 = arith.sitofp %582 : vector<8x8xi32> to vector<8x8xf32>
    %584 = vector.extract_strided_slice %528 {offsets = [32, 0], sizes = [8, 1], strides = [1, 1]} : vector<64x128xf32> to vector<8x1xf32>
    %585 = vector.broadcast %584 : vector<8x1xf32> to vector<8x8xf32>
    %586 = arith.mulf %585, %583 : vector<8x8xf32>
    %587 = arith.addf %575, %586 : vector<8x8xf32>
    %588 = vector.extract_strided_slice %528 {offsets = [32, 1], sizes = [8, 1], strides = [1, 1]} : vector<64x128xf32> to vector<8x1xf32>
    %589 = vector.broadcast %588 : vector<8x1xf32> to vector<8x8xf32>
    %590 = arith.mulf %589, %583 : vector<8x8xf32>
    %591 = arith.addf %579, %590 : vector<8x8xf32>
    %c5_i32 = arith.constant 5 : i32
    %592 = vector.broadcast %c5_i32 : i32 to vector<8x8xi32>
    %593 = arith.cmpi eq, %529, %592 : vector<8x8xi32>
    %594 = arith.extui %593 : vector<8x8xi1> to vector<8x8xi32>
    %595 = arith.sitofp %594 : vector<8x8xi32> to vector<8x8xf32>
    %596 = vector.extract_strided_slice %528 {offsets = [40, 0], sizes = [8, 1], strides = [1, 1]} : vector<64x128xf32> to vector<8x1xf32>
    %597 = vector.broadcast %596 : vector<8x1xf32> to vector<8x8xf32>
    %598 = arith.mulf %597, %595 : vector<8x8xf32>
    %599 = arith.addf %587, %598 : vector<8x8xf32>
    %600 = vector.extract_strided_slice %528 {offsets = [40, 1], sizes = [8, 1], strides = [1, 1]} : vector<64x128xf32> to vector<8x1xf32>
    %601 = vector.broadcast %600 : vector<8x1xf32> to vector<8x8xf32>
    %602 = arith.mulf %601, %595 : vector<8x8xf32>
    %603 = arith.addf %591, %602 : vector<8x8xf32>
    %c6_i32 = arith.constant 6 : i32
    %604 = vector.broadcast %c6_i32 : i32 to vector<8x8xi32>
    %605 = arith.cmpi eq, %529, %604 : vector<8x8xi32>
    %606 = arith.extui %605 : vector<8x8xi1> to vector<8x8xi32>
    %607 = arith.sitofp %606 : vector<8x8xi32> to vector<8x8xf32>
    %608 = vector.extract_strided_slice %528 {offsets = [48, 0], sizes = [8, 1], strides = [1, 1]} : vector<64x128xf32> to vector<8x1xf32>
    %609 = vector.broadcast %608 : vector<8x1xf32> to vector<8x8xf32>
    %610 = arith.mulf %609, %607 : vector<8x8xf32>
    %611 = arith.addf %599, %610 : vector<8x8xf32>
    %612 = vector.extract_strided_slice %528 {offsets = [48, 1], sizes = [8, 1], strides = [1, 1]} : vector<64x128xf32> to vector<8x1xf32>
    %613 = vector.broadcast %612 : vector<8x1xf32> to vector<8x8xf32>
    %614 = arith.mulf %613, %607 : vector<8x8xf32>
    %615 = arith.addf %603, %614 : vector<8x8xf32>
    %c7_i32 = arith.constant 7 : i32
    %616 = vector.broadcast %c7_i32 : i32 to vector<8x8xi32>
    %617 = arith.cmpi eq, %529, %616 : vector<8x8xi32>
    %618 = arith.extui %617 : vector<8x8xi1> to vector<8x8xi32>
    %619 = arith.sitofp %618 : vector<8x8xi32> to vector<8x8xf32>
    %620 = vector.extract_strided_slice %528 {offsets = [56, 0], sizes = [8, 1], strides = [1, 1]} : vector<64x128xf32> to vector<8x1xf32>
    %621 = vector.broadcast %620 : vector<8x1xf32> to vector<8x8xf32>
    %622 = arith.mulf %621, %619 : vector<8x8xf32>
    %623 = arith.addf %611, %622 : vector<8x8xf32>
    %624 = vector.extract_strided_slice %528 {offsets = [56, 1], sizes = [8, 1], strides = [1, 1]} : vector<64x128xf32> to vector<8x1xf32>
    %625 = vector.broadcast %624 : vector<8x1xf32> to vector<8x8xf32>
    %626 = arith.mulf %625, %619 : vector<8x8xf32>
    %627 = arith.addf %615, %626 : vector<8x8xf32>
    %c0_195 = arith.constant 0 : index
    %628 = memref.load %arg9[%c0_195] : memref<1xf32, #tpu.memory_space<smem>>
    %629 = vector.broadcast %628 : f32 to vector<8x8xf32>
    %630 = arith.addf %623, %629 : vector<8x8xf32>
    %cst_196 = arith.constant dense<0xFF800000> : vector<8xf32>
    %631 = vector.multi_reduction <maximumf>, %630, %cst_196 [1] : vector<8x8xf32> to vector<8xf32>
    %632 = vector.shape_cast %631 : vector<8xf32> to vector<8x1xf32>
    %633 = vector.broadcast %632 : vector<8x1xf32> to vector<8x8xf32>
    %634 = arith.subf %630, %633 : vector<8x8xf32>
    %635 = math.exp %634 : vector<8x8xf32>
    %cst_197 = arith.constant dense<0.000000e+00> : vector<8xf32>
    %636 = vector.multi_reduction <add>, %635, %cst_197 [1] : vector<8x8xf32> to vector<8xf32>
    %637 = vector.shape_cast %636 : vector<8xf32> to vector<8x1xf32>
    %638 = vector.broadcast %637 : vector<8x1xf32> to vector<8x8xf32>
    %639 = arith.divf %635, %638 : vector<8x8xf32>
    %640 = arith.mulf %639, %627 : vector<8x8xf32>
    %c0_198 = arith.constant 0 : index
    %c0_199 = arith.constant 0 : index
    %641 = vector.load %arg10[%c0_198, %c0_199] : memref<8x128xf32, #tpu.memory_space<vmem>>, vector<8x128xf32>
    %cst_200 = arith.constant dense<0.000000e+00> : vector<8x128xf32>
    %642 = tpu.matmul %640, %641, %cst_200 {dimension_numbers = #tpu.dot_dimension_numbers<[1], [0], [0], [1], [0, 0, 1, 1], [], []>} : vector<8x8xf32>, vector<8x128xf32>, vector<8x128xf32> -> vector<8x128xf32>
    %c0_201 = arith.constant 0 : index
    %c0_202 = arith.constant 0 : index
    %643 = vector.load %arg11[%c0_201, %c0_202] : memref<1x128xf32, #tpu.memory_space<vmem>>, vector<1x128xf32>
    %644 = vector.broadcast %643 : vector<1x128xf32> to vector<8x128xf32>
    %645 = arith.addf %642, %644 : vector<8x128xf32>
    %cst_203 = arith.constant dense<0xFF800000> : vector<8xf32>
    %646 = vector.multi_reduction <maximumf>, %645, %cst_203 [1] : vector<8x128xf32> to vector<8xf32>
    %647 = vector.shape_cast %646 : vector<8xf32> to vector<8x1xf32>
    %648 = vector.broadcast %647 : vector<8x1xf32> to vector<8x128xf32>
    %649 = arith.subf %645, %648 : vector<8x128xf32>
    %650 = math.exp %649 : vector<8x128xf32>
    %cst_204 = arith.constant dense<0.000000e+00> : vector<8xf32>
    %651 = vector.multi_reduction <add>, %650, %cst_204 [1] : vector<8x128xf32> to vector<8xf32>
    %652 = vector.shape_cast %651 : vector<8xf32> to vector<8x1xf32>
    %653 = math.log %652 : vector<8x1xf32>
    %654 = vector.broadcast %653 : vector<8x1xf32> to vector<8x128xf32>
    %655 = arith.subf %649, %654 : vector<8x128xf32>
    %c0_205 = arith.constant 0 : index
    %c0_206 = arith.constant 0 : index
    %656 = vector.load %arg12[%c0_205, %c0_206] : memref<8x128xf32, #tpu.memory_space<vmem>>, vector<8x128xf32>
    tpu.vector_store %arg12[%c0_205, %c0_206], %655 {strides = array<i32>} : memref<8x128xf32, #tpu.memory_space<vmem>>, vector<8x128xf32>,
    return
  }
}

</mosaic_0001>

<bundles_post_ra>
// kernel: prefetcher_forward.1
= control target key start
LH: loop header
LB: loop body
LE: loop exit
PB: predicated region body
PF: predicated region fallthrough
CT: control target
= control target key end

     0   :  { %18 = vsyncpa [#allocation7], 0  ;;  %s4556_s0 = inlined_call_operand.vmem [shape: s32[64,1], index: 0, kind: input, shape index: {}]   ;;  %s4557_s1 = inlined_call_operand.vmem [shape: f32[16,256], index: 1, kind: input, shape index: {}]   ;;  %s4558_s2 = inlined_call_operand.vmem [shape: bf16[32,256], index: 2, kind: input, shape index: {}]   ;;  %s4559_s3 = inlined_call_operand.vmem [shape: f32[1,256], index: 3, kind: input, shape index: {}]   ;;  %s4560_s4 = inlined_call_operand.hbm [shape: f32[64,256], index: 4, kind: input, shape index: {}]   ;;  %s4561_s5 = inlined_call_operand.vmem [shape: bf16[32,256], index: 5, kind: input, shape index: {}]   ;;  %s4562_s6 = inlined_call_operand.hbm [shape: f32[1,256], index: 6, kind: input, shape index: {}]   ;;  %s4563_s7 = inlined_call_operand.hbm [shape: f32[32,128], index: 7, kind: input, shape index: {}]   ;;  %s4564_s8 = inlined_call_operand.hbm [shape: f32[32,128], index: 8, kind: input, shape index: {}]   ;;  %s4565_s9 = inlined_call_operand.<no memory space> [shape: f32[1], index: 9, kind: input, shape index: {}]   ;;  %s4566_s10 = inlined_call_operand.hbm [shape: f32[8,128], index: 10, kind: input, shape index: {}]   ;;  %s4567_s11 = inlined_call_operand.vmem [shape: f32[1,128], index: 11, kind: input, shape index: {}]   ;;  %s4568_s12 = inlined_call_operand.vmem [shape: f32[8,128], index: 12, kind: output, shape index: {}]  }
   0x1   :  { %19 = vsyncpa [#allocation9], 0  ;;  %s49_s23 = sshll.u32 %s4562_s6, 4  ;;  %s50_s23 = int_to_ptr.hbm [resolvable:$true] %s49_s23 }
   0x2   :  { %20 = vsyncpa [#allocation12], 0  ;;  %s3523_s24 = smov [#allocation8]   ;;  %s72_s28 = sshll.u32 %s4564_s8, 4  ;;  %s73_s28 = int_to_ptr.hbm [resolvable:$true] %s72_s28 }
   0x3   :  { %s51_s25 = sshll.u32 %s3523_s24, 4  ;;  %s3524_s29 = smov [#allocation11]   ;;  %s52_s25 = int_to_ptr.vmem [resolvable:$true] %s51_s25 }
   0x4   :  { %54 = dma.hbm_to_vmem [thread:$0]  %s50_s23, 32, %s52_s25, [#allocation9]  }
   0x5   :  { %s74_s30 = sshll.u32 %s3524_s29, 4  ;;  %s33_s15 = sshll.u32 %s4560_s4, 4  ;;  %s75_s30 = int_to_ptr.vmem [resolvable:$true] %s74_s30  ;;  %s34_s15 = int_to_ptr.hbm [resolvable:$true] %s33_s15 }
   0x6   :  { %s3525_s6 = smov 128   ;;  %s3526_s16 = smov 8  }
   0x7   :  { %80 = dma.hbm_to_vmem [thread:$0]  %s73_s28, 512, %s75_s30, [#allocation12], %s3525_s6, %s3525_s6, %s3526_s16  }
   0x8   :  { %s3527_s17 = smov [#allocation6]   ;;  %s59_s21 = sshll.u32 %s4563_s7, 4  ;;  %s60_s21 = int_to_ptr.hbm [resolvable:$true] %s59_s21 }
   0x9   :  { %s35_s18 = sshll.u32 %s3527_s17, 4  ;;  %s3528_s8 = smov 256   ;;  %s36_s18 = int_to_ptr.vmem [resolvable:$true] %s35_s18 }
   0xa   :  { %s3529_s22 = smov 16   ;;  %s3530_s23 = smov [#allocation10]  }
   0xb   :  { %41 = dma.hbm_to_vmem [thread:$0]  %s34_s15, 2048, %s36_s18, [#allocation7], %s3528_s8, %s3528_s8, %s3529_s22  }
   0xc   :  { %s61_s24 = sshll.u32 %s3530_s23, 4  ;;  %s88_s26 = sshll.u32 %s4566_s10, 4  ;;  %s62_s24 = int_to_ptr.vmem [resolvable:$true] %s61_s24  ;;  %s89_s26 = int_to_ptr.hbm [resolvable:$true] %s88_s26 }
   0xd   :  { %67 = dma.hbm_to_vmem [thread:$0]  %s60_s21, 512, %s62_s24, [#allocation9], %s3525_s6, %s3525_s6, %s3526_s16  }
   0xe   :  { %s3531_s27 = smov [#allocation13]  }
   0xf   :  { %s90_s28 = sshll.u32 %s3531_s27, 4  ;;  %s91_s28 = int_to_ptr.vmem [resolvable:$true] %s90_s28 }
  0x10   :  { %93 = dma.hbm_to_vmem [thread:$0]  %s89_s26, 128, %s91_s28, [#allocation12]  }
  0x11   :  { %3517 = dma.done.wait [#allocation7], 2048  }
  0x12   :  { %3518 = vsyncadd [#allocation7], 4294965248 }
  0x13   :  { %3519 = dma.done.wait [#allocation9], 544  }
  0x14   :  { %3520 = vsyncadd [#allocation9], 4294966752 }
  0x15   :  { %3521 = dma.done.wait [#allocation12], 640  }
  0x16   :  { %3522 = vsyncadd [#allocation12], 4294966656  ;;  %v3532_v0 = vmov 0   ;;  %v122_v1 = vld [vmem:[%s4556_s0 + $0x28] sm:$0xff]  ;;  %v124_v2 = vld [vmem:[%s4556_s0 + $0x38] sm:$0xff]  ;;  %v125_v21 = vlaneseq  ;;  %vm185_vm0 = vcmask 130048  }
  0x17   :  { %3190 = vset.pattern.permute.xlu0 %v3532_v0  ;;  %3191 = vset.pattern.permute.xlu1 %v3532_v0  ;;  %v177_v3 = vld [vmem:[%s4557_s1 + $0x10] sm:$0xff]  ;;  %v178_v4 = vld [vmem:[%s4557_s1 + $0x18] sm:$0xff]  ;;  %v117_v6 = vld [vmem:[%s4556_s0] sm:$0xff]  ;;  %v3533_v25 = vmov 0.0   ;;  %v3534_v43 = vmov 1.0   ;;  %s3536_s17 = smov 32  }
  0x18   :  { %3192 = vset.pattern.permute.xlu2 %v3532_v0  ;;  %143 = vperm.xlu0 %3190, %v122_v1   ;;  %v123_v5 = vld [vmem:[%s4556_s0 + $0x30] sm:$0xff]  ;;  %v175_v7 = vld [vmem:[%s4557_s1] sm:$0xff]  ;;  %v176_v8 = vld [vmem:[%s4557_s1 + $0x8] sm:$0xff]  ;;  %v3685_v22 = vand.u32 127, %v125_v21 }
  0x19   :  { %149 = vperm.xlu1 %3191, %v124_v2   ;;  %3171 = vmatpush.msra.mxu3 %v177_v3  ;;  %v3024_v9 = vld [vmem:[%s4558_s2 + $0x10] sm:$0xf]  ;;  %v3166_v10 = vld [vmem:[%s4558_s2 + $0x14] sm:$0xf0]  ;;  %v3165_v12 = vld [vmem:[%s4558_s2 + $0x14] sm:$0xf] }
  0x1a   :  { %3173 = vmatpush.msra.mxu2 %v178_v4  ;;  %224 = vmatpush.msra.mxu0 %v177_v3  ;;  %v3651_v11 = vor.u32 %v3166_v10, %v3024_v9  ;;  %v3026_v13 = vld [vmem:[%s4558_s2 + $0x18] sm:$0xf0]  ;;  %v3016_v15 = vld [vmem:[%s4558_s2] sm:$0xf]  ;;  %v3164_v16 = vld [vmem:[%s4558_s2 + $0x4] sm:$0xf0] }
  0x1b   :  { %265 = vmatpush.msra.mxu1 %v178_v4  ;;  %3172 = vmatpush.msra.mxu3 %v175_v7  ;;  %v3659_v14 = vor.u32 %v3165_v12, %v3026_v13  ;;  %v3163_v17 = vld [vmem:[%s4558_s2 + $0x4] sm:$0xf]  ;;  %v3674_v18 = vor.u32 %v3164_v16, %v3016_v15  ;;  %v3018_v19 = vld [vmem:[%s4558_s2 + $0x8] sm:$0xf0]  ;;  %vm308_vm5 = vcmp.ge.s32.totalorder %v3685_v22, 64  ;;  %vm309_vm6 = vcmp.lt.s32.totalorder %v3685_v22, 96 }
  0x1c   :  { %3174 = vmatpush.msra.mxu2 %v176_v8  ;;  %225 = vmatpush.msra.mxu0 %v175_v7  ;;  %v3679_v20 = vor.u32 %v3163_v17, %v3018_v19  ;;  %v179_v38 = vld [vmem:[%s4559_s3] sm:$0x3]  ;;  %vm3732_vm7 = vmand %vm308_vm5, %vm309_vm6  ;;  %s3535_s3 = smov 64  }
  0x1d   :  { %266 = vmatpush.msra.mxu1 %v176_v8  ;;  %360 = vmatpush.bf16.msrb.mxu3 %v3659_v14  ;;  %v3736_v41 = vperm.slane %v179_v38, 0  ;;  %v3741_v44 = vsel %vm3732_vm7, 2.0, %v3534_v43  ;;  %v3744_v49 = vperm.slane %v179_v38, 1  ;;  %v3751_v9 = vsel %vm3732_vm7, -1.0, %v3533_v25 }
  0x1e   :  { %347 = vmatpush.bf16.msrb.mxu2 %v3651_v11  ;;  %847 = vmatpush.bf16.msrb.mxu0 %v3651_v11 }
  0x1f   :  { %860 = vmatpush.bf16.msrb.mxu1 %v3659_v14 }
  0x20   :  { %146 = vperm.xlu0 %3190, %v123_v5  }
  0x21   :  { %128 = vperm.xlu1 %3191, %v117_v6   ;;  %361 = vmatpush.bf16.msrb.mxu3 %v3679_v20 }
  0x22   :  { %348 = vmatpush.bf16.msrb.mxu2 %v3674_v18  ;;  %848 = vmatpush.bf16.msrb.mxu0 %v3674_v18 }
  0x23   :  { %861 = vmatpush.bf16.msrb.mxu1 %v3679_v20 }
  0x8a   :  { %v144_v23 = vpop.permute.xlu0 %143 }
  0x8b   :  { %v150_v24 = vpop.permute.xlu1 %149  ;;  %vm156_vm1 = vcmp.eq.s32.totalorder %v144_v23, %v3685_v22 }
  0x8c   :  { %v2995_v26 = vsel %vm156_vm1, 1.0, %v3533_v25  ;;  %vm158_vm4 = vcmp.eq.s32.totalorder %v150_v24, %v3685_v22 }
  0x8d   :  { %3003 = vmatmul.msk.f32.vlgmr.msra.gmra.mxu3 %vm185_vm0, %v2995_v26  ;;  %3011 = vmatmul.msk.f32.vlgmr.msra.gmra.mxu2 %vm185_vm0, %v2995_v26  ;;  %v2997_v31 = vsel %vm158_vm4, 1.0, %v3533_v25 }
  0x8e   :  { %485 = vmatpush.bf16.msra.mxu3 %v3659_v14  ;;  %472 = vmatpush.bf16.msra.mxu2 %v3651_v11 }
  0x92   :  { %v147_v27 = vpop.permute.xlu0 %146  ;;  %486 = vmatpush.bf16.msra.mxu3 %v3679_v20  ;;  %473 = vmatpush.bf16.msra.mxu2 %v3674_v18 }
  0x93   :  { %v129_v28 = vpop.permute.xlu1 %128  ;;  %vm157_vm2 = vcmp.eq.s32.totalorder %v147_v27, %v3685_v22 }
  0x94   :  { %vm151_vm3 = vcmp.eq.s32.totalorder %v129_v28, %v3685_v22  ;;  %v2996_v29 = vsel %vm157_vm2, 1.0, %v3533_v25  ;;  %vm337_vm2 = vcmask 261120  }
  0x95   :  { %v2990_v30 = vsel %vm151_vm3, 1.0, %v3533_v25  ;;  %3004 = vmatmul.msk.f32.gmra.mxu3 %vm185_vm0, %v2996_v29  ;;  %3012 = vmatmul.msk.f32.gmra.mxu2 %vm185_vm0, %v2996_v29 }
  0x96   :  { %2998 = vmatmul.msk.f32.vlgmr.msra.gmra.mxu0 %vm185_vm0, %v2990_v30  ;;  %3006 = vmatmul.msk.f32.vlgmr.msra.gmra.mxu1 %vm185_vm0, %v2990_v30 }
  0x97   :  { %1110 = vmatpush.bf16.msra.mxu1 %v3659_v14  ;;  %1097 = vmatpush.bf16.msra.mxu0 %v3651_v11 }
  0x9b   :  { %1111 = vmatpush.bf16.msra.mxu1 %v3679_v20  ;;  %1098 = vmatpush.bf16.msra.mxu0 %v3674_v18 }
  0x9d   :  { %3005 = vmatmul.msk.f32.gmra.mxu3 %vm185_vm0, %v2997_v31  ;;  %3013 = vmatmul.msk.f32.gmra.mxu2 %vm185_vm0, %v2997_v31 }
  0xa5   :  { %349 = vmatmul.bf16.vlgmr.msrb.gmra.mxu2 %v3532_v0  ;;  %362 = vmatmul.bf16.vlgmr.msrb.gmra.mxu3 %v3532_v0 }
  0xa6   :  { %610 = vmatpush.bf16.msrb.mxu3 %v3659_v14  ;;  %597 = vmatpush.bf16.msrb.mxu2 %v3651_v11 }
  0xaa   :  { %611 = vmatpush.bf16.msrb.mxu3 %v3679_v20  ;;  %598 = vmatpush.bf16.msrb.mxu2 %v3674_v18 }
 0x110   :  { %v3717_v32 = vpop.f32.mrf.mxu3  ;;  %v3719_v33 = vpop.f32.mrf.mxu2 }
 0x113   :  { %v227_v39 = vpop.f32.mrf.mxu0 }
 0x114   :  { %v228_v42 = vadd.f32 %v227_v39, %v3736_v41 }
 0x118   :  { %v3721_v34 = vpop.f32.mrf.mxu3  ;;  %v3723_v35 = vpop.f32.mrf.mxu2 }
 0x120   :  { %v3725_v36 = vpop.f32.mrf.mxu3  ;;  %v289_v37 = vpop.f32.mrf.mxu2 }
 0x121   :  { %v290_v51 = vadd.f32 %v289_v37, %v3744_v49 }
 0x128   :  { %v350_v45 = vpop.f32.mrf.mxu2  ;;  %v363_v46 = vpop.f32.mrf.mxu3 }
 0x129   :  { %v368_v47 = vadd.f32 %v350_v45, %v228_v42 }
 0x12b   :  { %v371_v48 = vmul.f32 %v368_v47, %v3741_v44 }
 0x12d   :  { %v3030_v50 = vmul.f32 -1.442695, %v371_v48  ;;  %v118_v48 = vld [vmem:[%s4556_s0 + $0x8] sm:$0xff] }
 0x12f   :  { %3197 = vpow2.f32 %v3030_v50 }
 0x130   :  { %v352_v52 = vpop.f32.mrf.mxu2  ;;  %v364_v53 = vpop.f32.mrf.mxu3 }
 0x131   :  { %v370_v54 = vadd.f32 %v364_v53, %v290_v51 }
 0x133   :  { %v372_v55 = vmul.f32 %v370_v54, %v3741_v44 }
 0x135   :  { %v3198_v56 = vpop.eup %3197  ;;  %v3031_v57 = vmul.f32 -1.442695, %v372_v55 }
 0x136   :  { %v379_v58 = vadd.f32 1.0, %v3198_v56 }
 0x137   :  { %3199 = vpow2.f32 %v3031_v57 }
 0x138   :  { %3201 = vrcp.f32 %v379_v58  ;;  %v392_v1 = vand.u32 2147483648, %v379_v58  ;;  %v390_v3 = vand.u32 2147483647, %v379_v58  ;;  %vm386_vm9 = vweird.f32 %v379_v58 }
 0x13a   :  { %v393_v6 = vor.u32 1.1754944e-38, %v392_v1  ;;  %vm391_vm11 = vcmp.eq.f32.partialorder %v390_v3, 8.507059e+37 }
 0x13d   :  { %v3200_v59 = vpop.eup %3199 }
 0x13e   :  { %v3202_v60 = vpop.eup %3201  ;;  %v380_v61 = vadd.f32 1.0, %v3200_v59 }
 0x13f   :  { %v382_v62 = vmul.f32 %v3202_v60, %v379_v58  ;;  %vm387_vm8 = vweird.f32 %v3202_v60 }
 0x140   :  { %3203 = vrcp.f32 %v380_v61  ;;  %vm388_vm10 = vmor %vm386_vm9, %vm387_vm8  ;;  %v407_v15 = vand.u32 2147483648, %v380_v61  ;;  %v405_v19 = vand.u32 2147483647, %v380_v61  ;;  %vm401_vm13 = vweird.f32 %v380_v61 }
 0x141   :  { %v383_v63 = vsub.f32 1.0, %v382_v62 }
 0x142   :  { %v408_v23 = vor.u32 1.1754944e-38, %v407_v15  ;;  %vm406_vm15 = vcmp.eq.f32.partialorder %v405_v19, 8.507059e+37 }
 0x143   :  { %v384_v2 = vmul.f32 %v3202_v60, %v383_v63 }
 0x145   :  { %v385_v4 = vadd.f32 %v3202_v60, %v384_v2  ;;  %v287_v2 = vadd.f32 %v3723_v35, %v3744_v49 }
 0x146   :  { %v3204_v5 = vpop.eup %3203 }
 0x147   :  { %v397_v7 = vmul.f32 %v3204_v5, %v380_v61  ;;  %v389_v8 = vsel %vm388_vm10, %v3202_v60, %v385_v4  ;;  %vm402_vm12 = vweird.f32 %v3204_v5 }
 0x148   :  { %v394_v10 = vsel %vm391_vm11, %v393_v6, %v389_v8  ;;  %vm403_vm14 = vmor %vm401_vm13, %vm402_vm12 }
 0x149   :  { %v398_v12 = vsub.f32 1.0, %v397_v7  ;;  %v411_v13 = vmul.f32 %v394_v10, %v3741_v44 }
 0x14b   :  { %v413_v16 = vadd.f32 %v411_v13, %v3751_v9  ;;  %v399_v17 = vmul.f32 %v3204_v5, %v398_v12 }
 0x14d   :  { %419 = vrot.lane.b32.xlu2 %v413_v16, %s3535_s3  ;;  %v400_v21 = vadd.f32 %v3204_v5, %v399_v17  ;;  %v415_v38 = vmul.f32 0.0, %v413_v16 }
 0x14f   :  { %v404_v24 = vsel %vm403_vm14, %v3204_v5, %v400_v21 }
 0x150   :  { %v409_v26 = vsel %vm406_vm15, %v408_v23, %v404_v24 }
 0x151   :  { %v412_v27 = vmul.f32 %v409_v26, %v3741_v44 }
 0x153   :  { %v414_v28 = vadd.f32 %v412_v27, %v3751_v9 }
 0x155   :  { %421 = vrot.lane.b32.xlu2 %v414_v28, %s3535_s3  ;;  %v416_v42 = vmul.f32 0.0, %v414_v28 }
 0x1a7   :  { %v420_v29 = vpop.permute.xlu2 %419 }
 0x1a8   :  { %v425_v30 = vmul.f32 %v420_v29, %v413_v16 }
 0x1aa   :  { %429 = vrot.lane.b32.xlu0 %v425_v30, %s3536_s17 }
 0x1af   :  { %v422_v31 = vpop.permute.xlu2 %421 }
 0x1b0   :  { %v426_v37 = vmul.f32 %v422_v31, %v414_v28 }
 0x1b2   :  { %431 = vrot.lane.b32.xlu1 %v426_v37, %s3536_s17 }
 0x21c   :  { %v430_v39 = vpop.permute.xlu0 %429 }
 0x21d   :  { %v3761_v40 = vadd.f32 %v430_v39, %v415_v38 }
 0x21f   :  { %3205 = vtanh.f32 %v3761_v40 }
 0x224   :  { %v432_v43 = vpop.permute.xlu1 %431 }
 0x225   :  { %v3206_v45 = vpop.eup %3205  ;;  %v3764_v46 = vadd.f32 %v432_v43, %v416_v42 }
 0x226   :  { %441 = vrot.lane.b32.xlu2 %v3206_v45, %s3535_s3 }
 0x227   :  { %3207 = vtanh.f32 %v3764_v46 }
 0x22d   :  { %v3208_v47 = vpop.eup %3207 }
 0x22e   :  { %443 = vrot.lane.b32.xlu0 %v3208_v47, %s3535_s3  ;;  %131 = vperm.xlu2 %3192, %v118_v48  }
 0x280   :  { %v442_v50 = vpop.permute.xlu2 %441 }
 0x281   :  { %v3772_v52 = vmul.f32 %v442_v50, %v413_v16 }
 0x288   :  { %v132_v55 = vpop.permute.xlu2 %131 }
 0x289   :  { %vm152_vm1 = vcmp.eq.s32.totalorder %v132_v55, %v3685_v22 }
 0x28a   :  { %v2991_v56 = vsel %vm152_vm1, 1.0, %v3533_v25 }
 0x28b   :  { %2999 = vmatmul.msk.f32.gmra.mxu0 %vm185_vm0, %v2991_v56  ;;  %3007 = vmatmul.msk.f32.gmra.mxu1 %vm185_vm0, %v2991_v56 }
 0x2a0   :  { %v444_v51 = vpop.permute.xlu0 %443 }
 0x2a1   :  { %v3774_v53 = vmul.f32 %v444_v51, %v414_v28 }
 0x2a3   :  { %v459_v54 = vpack.c.bf16 %v3774_v53, %v3772_v52 }
 0x2a5   :  { %461 = vrot.lane.b32.xlu1 %v459_v54, %s3536_s17 }
 0x308   :  { %v230_v58 = vpop.f32.mrf.mxu0 }
 0x309   :  { %v231_v59 = vadd.f32 %v230_v58, %v3736_v41 }
 0x317   :  { %v462_v57 = vpop.permute.xlu1 %461 }
 0x318   :  { %3032 = vmatmul.msk.bf16.vlgmr.msra.gmra.mxu2 %vm337_vm2, %v462_v57  ;;  %3033 = vmatmul.msk.bf16.vlgmr.msra.gmra.mxu3 %vm337_vm2, %v462_v57 }
 0x319   :  { %735 = vmatpush.bf16.msra.mxu3 %v3659_v14  ;;  %722 = vmatpush.bf16.msra.mxu2 %v3651_v11 }
 0x31d   :  { %736 = vmatpush.bf16.msra.mxu3 %v3679_v20  ;;  %723 = vmatpush.bf16.msra.mxu2 %v3674_v18 }
 0x39b   :  { %v475_v60 = vpop.f32.mrf.mxu2  ;;  %v488_v61 = vpop.f32.mrf.mxu3 }
 0x39c   :  { %v493_v62 = vadd.f32 %v475_v60, %v231_v59 }
 0x39e   :  { %v496_v63 = vmul.f32 %v493_v62, %v3741_v44  ;;  %v119_v62 = vld [vmem:[%s4556_s0 + $0x10] sm:$0xff] }
 0x3a0   :  { %v3034_v1 = vmul.f32 -1.442695, %v496_v63 }
 0x3a2   :  { %3209 = vpow2.f32 %v3034_v1 }
 0x3a3   :  { %v477_v3 = vpop.f32.mrf.mxu2  ;;  %v489_v4 = vpop.f32.mrf.mxu3 }
 0x3a4   :  { %v495_v5 = vadd.f32 %v489_v4, %v287_v2 }
 0x3a6   :  { %v497_v6 = vmul.f32 %v495_v5, %v3741_v44 }
 0x3a8   :  { %v3210_v7 = vpop.eup %3209  ;;  %v3035_v8 = vmul.f32 -1.442695, %v497_v6 }
 0x3a9   :  { %v504_v10 = vadd.f32 1.0, %v3210_v7 }
 0x3aa   :  { %3211 = vpow2.f32 %v3035_v8 }
 0x3ab   :  { %3213 = vrcp.f32 %v504_v10  ;;  %v517_v19 = vand.u32 2147483648, %v504_v10  ;;  %v515_v35 = vand.u32 2147483647, %v504_v10  ;;  %vm511_vm4 = vweird.f32 %v504_v10 }
 0x3ad   :  { %v518_v26 = vor.u32 1.1754944e-38, %v517_v19  ;;  %vm516_vm6 = vcmp.eq.f32.partialorder %v515_v35, 8.507059e+37  ;;  %v284_v35 = vadd.f32 %v3719_v33, %v3744_v49 }
 0x3b0   :  { %v3212_v12 = vpop.eup %3211 }
 0x3b1   :  { %v3214_v13 = vpop.eup %3213  ;;  %v505_v15 = vadd.f32 1.0, %v3212_v12 }
 0x3b2   :  { %v507_v16 = vmul.f32 %v3214_v13, %v504_v10  ;;  %vm512_vm3 = vweird.f32 %v3214_v13 }
 0x3b3   :  { %3215 = vrcp.f32 %v505_v15  ;;  %vm513_vm5 = vmor %vm511_vm4, %vm512_vm3  ;;  %v532_v37 = vand.u32 2147483648, %v505_v15  ;;  %v530_v42 = vand.u32 2147483647, %v505_v15  ;;  %vm526_vm8 = vweird.f32 %v505_v15 }
 0x3b4   :  { %v508_v17 = vsub.f32 1.0, %v507_v16 }
 0x3b5   :  { %v533_v45 = vor.u32 1.1754944e-38, %v532_v37  ;;  %vm531_vm10 = vcmp.eq.f32.partialorder %v530_v42, 8.507059e+37 }
 0x3b6   :  { %v509_v21 = vmul.f32 %v3214_v13, %v508_v17 }
 0x3b8   :  { %v510_v23 = vadd.f32 %v3214_v13, %v509_v21 }
 0x3b9   :  { %v3216_v24 = vpop.eup %3215 }
 0x3ba   :  { %v522_v27 = vmul.f32 %v3216_v24, %v505_v15  ;;  %v514_v28 = vsel %vm513_vm5, %v3214_v13, %v510_v23  ;;  %vm527_vm7 = vweird.f32 %v3216_v24 }
 0x3bb   :  { %v519_v29 = vsel %vm516_vm6, %v518_v26, %v514_v28  ;;  %vm528_vm9 = vmor %vm526_vm8, %vm527_vm7 }
 0x3bc   :  { %v523_v30 = vsub.f32 1.0, %v522_v27  ;;  %v536_v31 = vmul.f32 %v519_v29, %v3741_v44 }
 0x3be   :  { %v538_v38 = vadd.f32 %v536_v31, %v3751_v9  ;;  %v524_v39 = vmul.f32 %v3216_v24, %v523_v30 }
 0x3c0   :  { %544 = vrot.lane.b32.xlu0 %v538_v38, %s3535_s3  ;;  %v525_v43 = vadd.f32 %v3216_v24, %v524_v39  ;;  %v540_v58 = vmul.f32 %v538_v38, %v3761_v40 }
 0x3c2   :  { %v529_v47 = vsel %vm528_vm9, %v3216_v24, %v525_v43 }
 0x3c3   :  { %v534_v48 = vsel %vm531_vm10, %v533_v45, %v529_v47 }
 0x3c4   :  { %v537_v50 = vmul.f32 %v534_v48, %v3741_v44 }
 0x3c6   :  { %v539_v51 = vadd.f32 %v537_v50, %v3751_v9 }
 0x3c8   :  { %546 = vrot.lane.b32.xlu1 %v539_v51, %s3535_s3  ;;  %v541_v63 = vmul.f32 %v539_v51, %v3764_v46 }
 0x432   :  { %v545_v54 = vpop.permute.xlu0 %544 }
 0x433   :  { %v550_v55 = vmul.f32 %v545_v54, %v538_v38 }
 0x435   :  { %554 = vrot.lane.b32.xlu2 %v550_v55, %s3536_s17 }
 0x43a   :  { %v547_v56 = vpop.permute.xlu1 %546 }
 0x43b   :  { %v551_v57 = vmul.f32 %v547_v56, %v539_v51 }
 0x43d   :  { %556 = vrot.lane.b32.xlu0 %v551_v57, %s3536_s17 }
 0x48f   :  { %v555_v59 = vpop.permute.xlu2 %554 }
 0x490   :  { %v3803_v60 = vadd.f32 %v555_v59, %v540_v58 }
 0x492   :  { %3217 = vtanh.f32 %v3803_v60 }
 0x498   :  { %v3218_v61 = vpop.eup %3217 }
 0x499   :  { %566 = vrot.lane.b32.xlu1 %v3218_v61, %s3535_s3 }
 0x4a1   :  { %134 = vperm.xlu1 %3191, %v119_v62  }
 0x4af   :  { %v557_v1 = vpop.permute.xlu0 %556 }
 0x4b0   :  { %v3811_v2 = vadd.f32 %v557_v1, %v541_v63 }
 0x4b2   :  { %3219 = vtanh.f32 %v3811_v2 }
 0x4b8   :  { %v3220_v40 = vpop.eup %3219 }
 0x4b9   :  { %568 = vrot.lane.b32.xlu2 %v3220_v40, %s3535_s3 }
 0x50b   :  { %v567_v3 = vpop.permute.xlu1 %566 }
 0x50c   :  { %v3815_v6 = vmul.f32 %v567_v3, %v538_v38 }
 0x513   :  { %v569_v4 = vpop.permute.xlu2 %568  ;;  %v135_v5 = vpop.permute.xlu1 %134 }
 0x514   :  { %v3817_v7 = vmul.f32 %v569_v4, %v539_v51  ;;  %vm153_vm11 = vcmp.eq.s32.totalorder %v135_v5, %v3685_v22 }
 0x515   :  { %v2992_v8 = vsel %vm153_vm11, 1.0, %v3533_v25 }
 0x516   :  { %v584_v46 = vpack.c.bf16 %v3817_v7, %v3815_v6  ;;  %3000 = vmatmul.msk.f32.gmra.mxu0 %vm185_vm0, %v2992_v8  ;;  %3008 = vmatmul.msk.f32.gmra.mxu1 %vm185_vm0, %v2992_v8 }
 0x518   :  { %586 = vrot.lane.b32.xlu0 %v584_v46, %s3536_s17 }
 0x58a   :  { %v587_v10 = vpop.permute.xlu0 %586 }
 0x58b   :  { %3036 = vmatmul.msk.bf16.vlgmr.msrb.gmra.mxu2 %vm337_vm2, %v587_v10  ;;  %3037 = vmatmul.msk.bf16.vlgmr.msrb.gmra.mxu3 %vm337_vm2, %v587_v10 }
 0x58c   :  { %985 = vmatpush.bf16.msrb.mxu3 %v3659_v14  ;;  %972 = vmatpush.bf16.msrb.mxu2 %v3651_v11 }
 0x590   :  { %986 = vmatpush.bf16.msrb.mxu3 %v3679_v20  ;;  %973 = vmatpush.bf16.msrb.mxu2 %v3674_v18 }
 0x593   :  { %v233_v12 = vpop.f32.mrf.mxu0 }
 0x594   :  { %v234_v13 = vadd.f32 %v233_v12, %v3736_v41 }
 0x60e   :  { %v600_v15 = vpop.f32.mrf.mxu2  ;;  %v613_v16 = vpop.f32.mrf.mxu3 }
 0x60f   :  { %v618_v17 = vadd.f32 %v600_v15, %v234_v13 }
 0x611   :  { %v621_v19 = vmul.f32 %v618_v17, %v3741_v44 }
 0x613   :  { %v3038_v21 = vmul.f32 -1.442695, %v621_v19 }
 0x615   :  { %3221 = vpow2.f32 %v3038_v21 }
 0x616   :  { %v602_v23 = vpop.f32.mrf.mxu2  ;;  %v614_v24 = vpop.f32.mrf.mxu3 }
 0x617   :  { %v620_v26 = vadd.f32 %v614_v24, %v284_v35  ;;  %v120_v23 = vld [vmem:[%s4556_s0 + $0x18] sm:$0xff] }
 0x619   :  { %v622_v27 = vmul.f32 %v620_v26, %v3741_v44 }
 0x61b   :  { %v3222_v28 = vpop.eup %3221  ;;  %v3039_v29 = vmul.f32 -1.442695, %v622_v27 }
 0x61c   :  { %v629_v30 = vadd.f32 1.0, %v3222_v28 }
 0x61d   :  { %3223 = vpow2.f32 %v3039_v29 }
 0x61e   :  { %3225 = vrcp.f32 %v629_v30  ;;  %v642_v43 = vand.u32 2147483648, %v629_v30  ;;  %v640_v33 = vand.u32 2147483647, %v629_v30  ;;  %vm636_vm13 = vweird.f32 %v629_v30 }
 0x620   :  { %v643_v50 = vor.u32 1.1754944e-38, %v642_v43  ;;  %vm641_vm15 = vcmp.eq.f32.partialorder %v640_v33, 8.507059e+37 }
 0x623   :  { %v3224_v31 = vpop.eup %3223 }
 0x624   :  { %v3226_v37 = vpop.eup %3225  ;;  %v630_v38 = vadd.f32 1.0, %v3224_v31 }
 0x625   :  { %v632_v39 = vmul.f32 %v3226_v37, %v629_v30  ;;  %vm637_vm12 = vweird.f32 %v3226_v37 }
 0x626   :  { %3227 = vrcp.f32 %v630_v38  ;;  %vm638_vm14 = vmor %vm636_vm13, %vm637_vm12  ;;  %v657_v58 = vand.u32 2147483648, %v630_v38  ;;  %v655_v62 = vand.u32 2147483647, %v630_v38  ;;  %vm651_vm3 = vweird.f32 %v630_v38 }
 0x627   :  { %v633_v42 = vsub.f32 1.0, %v632_v39 }
 0x628   :  { %v658_v1 = vor.u32 1.1754944e-38, %v657_v58  ;;  %vm656_vm5 = vcmp.eq.f32.partialorder %v655_v62, 8.507059e+37 }
 0x629   :  { %v634_v45 = vmul.f32 %v3226_v37, %v633_v42  ;;  %v3882_v42 = vpop.f32.mrf.mxu1 }
 0x62b   :  { %v635_v47 = vadd.f32 %v3226_v37, %v634_v45 }
 0x62c   :  { %v3228_v48 = vpop.eup %3227 }
 0x62d   :  { %v647_v51 = vmul.f32 %v3228_v48, %v630_v38  ;;  %v639_v54 = vsel %vm638_vm14, %v3226_v37, %v635_v47  ;;  %vm652_vm1 = vweird.f32 %v3228_v48 }
 0x62e   :  { %v644_v55 = vsel %vm641_vm15, %v643_v50, %v639_v54  ;;  %vm653_vm4 = vmor %vm651_vm3, %vm652_vm1 }
 0x62f   :  { %v648_v56 = vsub.f32 1.0, %v647_v51  ;;  %v661_v57 = vmul.f32 %v644_v55, %v3741_v44 }
 0x631   :  { %v663_v59 = vadd.f32 %v661_v57, %v3751_v9  ;;  %v649_v61 = vmul.f32 %v3228_v48, %v648_v56  ;;  %v3884_v43 = vpop.f32.mrf.mxu1 }
 0x633   :  { %669 = vrot.lane.b32.xlu2 %v663_v59, %s3535_s3  ;;  %v650_v63 = vadd.f32 %v3228_v48, %v649_v61  ;;  %v665_v13 = vmul.f32 %v663_v59, %v3803_v60 }
 0x635   :  { %v654_v40 = vsel %vm653_vm4, %v3228_v48, %v650_v63 }
 0x636   :  { %v659_v3 = vsel %vm656_vm5, %v658_v1, %v654_v40 }
 0x637   :  { %v662_v4 = vmul.f32 %v659_v3, %v3741_v44 }
 0x639   :  { %v664_v5 = vadd.f32 %v662_v4, %v3751_v9  ;;  %v3886_v45 = vpop.f32.mrf.mxu1 }
 0x63b   :  { %671 = vrot.lane.b32.xlu0 %v664_v5, %s3535_s3  ;;  %v666_v17 = vmul.f32 %v664_v5, %v3811_v2  ;;  %v121_v2 = vld [vmem:[%s4556_s0 + $0x20] sm:$0xff] }
 0x68d   :  { %v670_v8 = vpop.permute.xlu2 %669 }
 0x68e   :  { %v675_v46 = vmul.f32 %v670_v8, %v663_v59 }
 0x690   :  { %679 = vrot.lane.b32.xlu1 %v675_v46, %s3536_s17 }
 0x6ad   :  { %v672_v10 = vpop.permute.xlu0 %671 }
 0x6ae   :  { %v676_v12 = vmul.f32 %v672_v10, %v664_v5 }
 0x6b0   :  { %681 = vrot.lane.b32.xlu2 %v676_v12, %s3536_s17 }
 0x702   :  { %v680_v15 = vpop.permute.xlu1 %679 }
 0x703   :  { %v3846_v16 = vadd.f32 %v680_v15, %v665_v13 }
 0x705   :  { %3229 = vtanh.f32 %v3846_v16 }
 0x70a   :  { %v682_v19 = vpop.permute.xlu2 %681 }
 0x70b   :  { %v3230_v21 = vpop.eup %3229  ;;  %v3850_v35 = vadd.f32 %v682_v19, %v666_v17 }
 0x70c   :  { %691 = vrot.lane.b32.xlu0 %v3230_v21, %s3535_s3 }
 0x70d   :  { %3231 = vtanh.f32 %v3850_v35 }
 0x713   :  { %v3232_v60 = vpop.eup %3231 }
 0x714   :  { %693 = vrot.lane.b32.xlu1 %v3232_v60, %s3535_s3  ;;  %137 = vperm.xlu0 %3190, %v120_v23  }
 0x71c   :  { %140 = vperm.xlu1 %3191, %v121_v2  }
 0x77e   :  { %v692_v24 = vpop.permute.xlu0 %691 }
 0x77f   :  { %v3861_v28 = vmul.f32 %v692_v24, %v663_v59 }
 0x786   :  { %v694_v26 = vpop.permute.xlu1 %693  ;;  %v138_v27 = vpop.permute.xlu0 %137 }
 0x787   :  { %v3863_v29 = vmul.f32 %v694_v26, %v664_v5  ;;  %vm154_vm6 = vcmp.eq.s32.totalorder %v138_v27, %v3685_v22 }
 0x788   :  { %v2993_v30 = vsel %vm154_vm6, 1.0, %v3533_v25 }
 0x789   :  { %v709_v31 = vpack.c.bf16 %v3863_v29, %v3861_v28  ;;  %3001 = vmatmul.msk.f32.gmra.mxu0 %vm185_vm0, %v2993_v30  ;;  %3009 = vmatmul.msk.f32.gmra.mxu1 %vm185_vm0, %v2993_v30 }
 0x78b   :  { %711 = vrot.lane.b32.xlu2 %v709_v31, %s3536_s17 }
 0x78e   :  { %v141_v37 = vpop.permute.xlu1 %140 }
 0x78f   :  { %vm155_vm7 = vcmp.eq.s32.totalorder %v141_v37, %v3685_v22 }
 0x790   :  { %v2994_v38 = vsel %vm155_vm7, 1.0, %v3533_v25 }
 0x791   :  { %3002 = vmatmul.msk.f32.gmra.mxu0 %vm185_vm0, %v2994_v38  ;;  %3010 = vmatmul.msk.f32.gmra.mxu1 %vm185_vm0, %v2994_v38 }
 0x7e5   :  { %v712_v39 = vpop.permute.xlu2 %711 }
 0x7e6   :  { %3040 = vmatmul.msk.bf16.vlgmr.msra.gmra.mxu2 %vm337_vm2, %v712_v39  ;;  %3041 = vmatmul.msk.bf16.vlgmr.msra.gmra.mxu3 %vm337_vm2, %v712_v39 }
 0x7e7   :  { %1235 = vmatpush.bf16.msra.mxu3 %v3659_v14  ;;  %1222 = vmatpush.bf16.msra.mxu2 %v3651_v11 }
 0x7eb   :  { %1236 = vmatpush.bf16.msra.mxu3 %v3679_v20  ;;  %1223 = vmatpush.bf16.msra.mxu2 %v3674_v18 }
 0x806   :  { %v3888_v33 = vpop.f32.mrf.mxu1  ;;  %v236_v47 = vpop.f32.mrf.mxu0 }
 0x807   :  { %v237_v48 = vadd.f32 %v236_v47, %v3736_v41 }
 0x80e   :  { %v280_v54 = vpop.f32.mrf.mxu1 }
 0x80f   :  { %v281_v18 = vadd.f32 %v280_v54, %v3744_v49 }
 0x869   :  { %v725_v50 = vpop.f32.mrf.mxu2  ;;  %v738_v51 = vpop.f32.mrf.mxu3 }
 0x86a   :  { %v743_v14 = vadd.f32 %v725_v50, %v237_v48 }
 0x86c   :  { %v746_v11 = vmul.f32 %v743_v14, %v3741_v44 }
 0x86e   :  { %v3042_v20 = vmul.f32 -1.442695, %v746_v11 }
 0x870   :  { %3233 = vpow2.f32 %v3042_v20 }
 0x871   :  { %v727_v55 = vpop.f32.mrf.mxu2  ;;  %v739_v56 = vpop.f32.mrf.mxu3 }
 0x872   :  { %v745_v57 = vadd.f32 %v739_v56, %v281_v18 }
 0x874   :  { %v747_v58 = vmul.f32 %v745_v57, %v3741_v44 }
 0x876   :  { %v3234_v59 = vpop.eup %3233  ;;  %v3043_v61 = vmul.f32 -1.442695, %v747_v58 }
 0x877   :  { %v754_v62 = vadd.f32 1.0, %v3234_v59 }
 0x878   :  { %3235 = vpow2.f32 %v3043_v61 }
 0x879   :  { %3237 = vrcp.f32 %v754_v62  ;;  %v767_v5 = vand.u32 2147483648, %v754_v62  ;;  %v765_v46 = vand.u32 2147483647, %v754_v62  ;;  %vm761_vm8 = vweird.f32 %v754_v62 }
 0x87b   :  { %v768_v13 = vor.u32 1.1754944e-38, %v767_v5  ;;  %vm766_vm10 = vcmp.eq.f32.partialorder %v765_v46, 8.507059e+37  ;;  %v278_v46 = vadd.f32 %v3888_v33, %v3744_v49 }
 0x87e   :  { %v3236_v63 = vpop.eup %3235 }
 0x87f   :  { %v3238_v1 = vpop.eup %3237  ;;  %v755_v40 = vadd.f32 1.0, %v3236_v63  ;;  %v239_v63 = vpop.f32.mrf.mxu0 }
 0x880   :  { %v757_v3 = vmul.f32 %v3238_v1, %v754_v62  ;;  %vm762_vm0 = vweird.f32 %v3238_v1 }
 0x881   :  { %3239 = vrcp.f32 %v755_v40  ;;  %vm763_vm9 = vmor %vm761_vm8, %vm762_vm0  ;;  %v782_v60 = vand.u32 2147483648, %v755_v40  ;;  %v780_v26 = vand.u32 2147483647, %v755_v40  ;;  %vm776_vm12 = vweird.f32 %v755_v40 }
 0x882   :  { %v758_v4 = vsub.f32 1.0, %v757_v3 }
 0x883   :  { %v783_v30 = vor.u32 1.1754944e-38, %v782_v60  ;;  %vm781_vm14 = vcmp.eq.f32.partialorder %v780_v26, 8.507059e+37 }
 0x884   :  { %v759_v8 = vmul.f32 %v3238_v1, %v758_v4 }
 0x886   :  { %v760_v10 = vadd.f32 %v3238_v1, %v759_v8 }
 0x887   :  { %v3240_v12 = vpop.eup %3239 }
 0x888   :  { %v772_v15 = vmul.f32 %v3240_v12, %v755_v40  ;;  %v764_v17 = vsel %vm763_vm9, %v3238_v1, %v760_v10  ;;  %vm777_vm11 = vweird.f32 %v3240_v12  ;;  %v240_v1 = vadd.f32 %v239_v63, %v3736_v41 }
 0x889   :  { %v769_v19 = vsel %vm766_vm10, %v768_v13, %v764_v17  ;;  %vm778_vm13 = vmor %vm776_vm12, %vm777_vm11 }
 0x88a   :  { %v773_v21 = vsub.f32 1.0, %v772_v15  ;;  %v786_v23 = vmul.f32 %v769_v19, %v3741_v44 }
 0x88c   :  { %v788_v2 = vadd.f32 %v786_v23, %v3751_v9  ;;  %v774_v24 = vmul.f32 %v3240_v12, %v773_v21 }
 0x88e   :  { %794 = vrot.lane.b32.xlu2 %v788_v2, %s3535_s3  ;;  %v775_v27 = vadd.f32 %v3240_v12, %v774_v24  ;;  %v790_v14 = vmul.f32 %v788_v2, %v3846_v16 }
 0x890   :  { %v779_v31 = vsel %vm778_vm13, %v3240_v12, %v775_v27 }
 0x891   :  { %v784_v37 = vsel %vm781_vm14, %v783_v30, %v779_v31 }
 0x892   :  { %v787_v38 = vmul.f32 %v784_v37, %v3741_v44 }
 0x894   :  { %v789_v39 = vadd.f32 %v787_v38, %v3751_v9 }
 0x896   :  { %796 = vrot.lane.b32.xlu0 %v789_v39, %s3535_s3  ;;  %v791_v20 = vmul.f32 %v789_v39, %v3850_v35 }
 0x8e8   :  { %v795_v47 = vpop.permute.xlu2 %794 }
 0x8e9   :  { %v800_v48 = vmul.f32 %v795_v47, %v788_v2 }
 0x8eb   :  { %804 = vrot.lane.b32.xlu1 %v800_v48, %s3536_s17 }
 0x908   :  { %v797_v50 = vpop.permute.xlu0 %796 }
 0x909   :  { %v801_v51 = vmul.f32 %v797_v50, %v789_v39 }
 0x90b   :  { %806 = vrot.lane.b32.xlu2 %v801_v51, %s3536_s17 }
 0x95d   :  { %v805_v11 = vpop.permute.xlu1 %804 }
 0x95e   :  { %v3903_v54 = vadd.f32 %v805_v11, %v790_v14 }
 0x960   :  { %3241 = vtanh.f32 %v3903_v54 }
 0x965   :  { %v807_v18 = vpop.permute.xlu2 %806 }
 0x966   :  { %v3242_v55 = vpop.eup %3241  ;;  %v3907_v56 = vadd.f32 %v807_v18, %v791_v20 }
 0x967   :  { %816 = vrot.lane.b32.xlu0 %v3242_v55, %s3535_s3 }
 0x968   :  { %3243 = vtanh.f32 %v3907_v56 }
 0x96e   :  { %v3244_v57 = vpop.eup %3243 }
 0x96f   :  { %818 = vrot.lane.b32.xlu1 %v3244_v57, %s3535_s3 }
 0x9d9   :  { %v817_v58 = vpop.permute.xlu0 %816 }
 0x9da   :  { %v3912_v59 = vmul.f32 %v817_v58, %v788_v2 }
 0x9e1   :  { %v819_v16 = vpop.permute.xlu1 %818 }
 0x9e2   :  { %v3914_v61 = vmul.f32 %v819_v16, %v789_v39 }
 0x9e4   :  { %v834_v35 = vpack.c.bf16 %v3914_v61, %v3912_v59 }
 0x9e6   :  { %836 = vrot.lane.b32.xlu2 %v834_v35, %s3536_s17 }
 0xa40   :  { %v837_v62 = vpop.permute.xlu2 %836 }
 0xa41   :  { %3044 = vmatmul.msk.bf16.vlgmr.msrb.gmra.mxu0 %vm337_vm2, %v837_v62  ;;  %3045 = vmatmul.msk.bf16.vlgmr.msrb.gmra.mxu1 %vm337_vm2, %v837_v62 }
 0xabe   :  { %v850_v40 = vpop.f32.mrf.mxu0  ;;  %v863_v3 = vpop.f32.mrf.mxu1 }
 0xabf   :  { %v868_v4 = vadd.f32 %v850_v40, %v240_v1 }
 0xac1   :  { %v871_v5 = vmul.f32 %v868_v4, %v3741_v44 }
 0xac3   :  { %v3046_v8 = vmul.f32 -1.442695, %v871_v5 }
 0xac5   :  { %3245 = vpow2.f32 %v3046_v8 }
 0xac6   :  { %v852_v10 = vpop.f32.mrf.mxu0  ;;  %v864_v12 = vpop.f32.mrf.mxu1 }
 0xac7   :  { %v870_v13 = vadd.f32 %v864_v12, %v278_v46 }
 0xac9   :  { %v872_v15 = vmul.f32 %v870_v13, %v3741_v44 }
 0xacb   :  { %v3246_v17 = vpop.eup %3245  ;;  %v3047_v19 = vmul.f32 -1.442695, %v872_v15 }
 0xacc   :  { %v879_v21 = vadd.f32 1.0, %v3246_v17 }
 0xacd   :  { %3247 = vpow2.f32 %v3047_v19 }
 0xace   :  { %3249 = vrcp.f32 %v879_v21  ;;  %v892_v27 = vand.u32 2147483648, %v879_v21  ;;  %v890_v33 = vand.u32 2147483647, %v879_v21  ;;  %vm886_vm1 = vweird.f32 %v879_v21 }
 0xad0   :  { %v893_v38 = vor.u32 1.1754944e-38, %v892_v27  ;;  %vm891_vm4 = vcmp.eq.f32.partialorder %v890_v33, 8.507059e+37  ;;  %v275_v33 = vadd.f32 %v3886_v45, %v3744_v49 }
 0xad3   :  { %v3248_v23 = vpop.eup %3247 }
 0xad4   :  { %v3250_v60 = vpop.eup %3249  ;;  %v880_v2 = vadd.f32 1.0, %v3248_v23 }
 0xad5   :  { %v882_v24 = vmul.f32 %v3250_v60, %v879_v21  ;;  %vm887_vm15 = vweird.f32 %v3250_v60 }
 0xad6   :  { %3251 = vrcp.f32 %v880_v2  ;;  %vm888_vm3 = vmor %vm886_vm1, %vm887_vm15  ;;  %v907_v14 = vand.u32 2147483648, %v880_v2  ;;  %v905_v18 = vand.u32 2147483647, %v880_v2  ;;  %vm901_vm6 = vweird.f32 %v880_v2 }
 0xad7   :  { %v883_v26 = vsub.f32 1.0, %v882_v24 }
 0xad8   :  { %v908_v57 = vor.u32 1.1754944e-38, %v907_v14  ;;  %vm906_vm0 = vcmp.eq.f32.partialorder %v905_v18, 8.507059e+37 }
 0xad9   :  { %v884_v30 = vmul.f32 %v3250_v60, %v883_v26 }
 0xadb   :  { %v885_v31 = vadd.f32 %v3250_v60, %v884_v30 }
 0xadc   :  { %v3252_v37 = vpop.eup %3251 }
 0xadd   :  { %v897_v39 = vmul.f32 %v3252_v37, %v880_v2  ;;  %v889_v47 = vsel %vm888_vm3, %v3250_v60, %v885_v31  ;;  %vm902_vm5 = vweird.f32 %v3252_v37  ;;  %v243_v60 = vadd.f32 %v3717_v32, %v3736_v41 }
 0xade   :  { %v894_v48 = vsel %vm891_vm4, %v893_v38, %v889_v47  ;;  %vm903_vm7 = vmor %vm901_vm6, %vm902_vm5 }
 0xadf   :  { %v898_v50 = vsub.f32 1.0, %v897_v39  ;;  %v911_v51 = vmul.f32 %v894_v48, %v3741_v44 }
 0xae1   :  { %v913_v11 = vadd.f32 %v911_v51, %v3751_v9  ;;  %v899_v20 = vmul.f32 %v3252_v37, %v898_v50 }
 0xae3   :  { %919 = vrot.lane.b32.xlu0 %v913_v11, %s3535_s3  ;;  %v900_v55 = vadd.f32 %v3252_v37, %v899_v20  ;;  %v915_v4 = vmul.f32 %v913_v11, %v3903_v54 }
 0xae5   :  { %v904_v58 = vsel %vm903_vm7, %v3252_v37, %v900_v55 }
 0xae6   :  { %v909_v16 = vsel %vm906_vm0, %v908_v57, %v904_v58 }
 0xae7   :  { %v912_v35 = vmul.f32 %v909_v16, %v3741_v44 }
 0xae9   :  { %v914_v62 = vadd.f32 %v912_v35, %v3751_v9 }
 0xaeb   :  { %921 = vrot.lane.b32.xlu1 %v914_v62, %s3535_s3  ;;  %v916_v10 = vmul.f32 %v914_v62, %v3907_v56 }
 0xb55   :  { %v920_v63 = vpop.permute.xlu0 %919 }
 0xb56   :  { %v925_v1 = vmul.f32 %v920_v63, %v913_v11 }
 0xb58   :  { %929 = vrot.lane.b32.xlu2 %v925_v1, %s3536_s17 }
 0xb5d   :  { %v922_v40 = vpop.permute.xlu1 %921 }
 0xb5e   :  { %v926_v3 = vmul.f32 %v922_v40, %v914_v62 }
 0xb60   :  { %931 = vrot.lane.b32.xlu0 %v926_v3, %s3536_s17 }
 0xbb2   :  { %v930_v5 = vpop.permute.xlu2 %929 }
 0xbb3   :  { %v3935_v8 = vadd.f32 %v930_v5, %v915_v4 }
 0xbb5   :  { %3253 = vtanh.f32 %v3935_v8 }
 0xbbb   :  { %v3254_v46 = vpop.eup %3253 }
 0xbbc   :  { %941 = vrot.lane.b32.xlu1 %v3254_v46, %s3535_s3 }
 0xbd2   :  { %v932_v12 = vpop.permute.xlu0 %931 }
 0xbd3   :  { %v3940_v13 = vadd.f32 %v932_v12, %v916_v10 }
 0xbd5   :  { %3255 = vtanh.f32 %v3940_v13 }
 0xbdb   :  { %v3256_v15 = vpop.eup %3255 }
 0xbdc   :  { %943 = vrot.lane.b32.xlu2 %v3256_v15, %s3535_s3 }
 0xc2e   :  { %v942_v17 = vpop.permute.xlu1 %941 }
 0xc2f   :  { %v3944_v19 = vmul.f32 %v942_v17, %v913_v11 }
 0xc36   :  { %v944_v54 = vpop.permute.xlu2 %943 }
 0xc37   :  { %v3946_v21 = vmul.f32 %v944_v54, %v914_v62 }
 0xc39   :  { %v959_v23 = vpack.c.bf16 %v3946_v21, %v3944_v19 }
 0xc3b   :  { %961 = vrot.lane.b32.xlu0 %v959_v23, %s3536_s17 }
 0xcad   :  { %v962_v56 = vpop.permute.xlu0 %961 }
 0xcae   :  { %3048 = vmatmul.msk.bf16.vlgmr.msrb.gmra.mxu2 %vm337_vm2, %v962_v56  ;;  %3049 = vmatmul.msk.bf16.vlgmr.msrb.gmra.mxu3 %vm337_vm2, %v962_v56 }
 0xd31   :  { %v975_v2 = vpop.f32.mrf.mxu2  ;;  %v988_v24 = vpop.f32.mrf.mxu3 }
 0xd32   :  { %v993_v26 = vadd.f32 %v975_v2, %v243_v60 }
 0xd34   :  { %v996_v27 = vmul.f32 %v993_v26, %v3741_v44 }
 0xd36   :  { %v3050_v30 = vmul.f32 -1.442695, %v996_v27 }
 0xd38   :  { %3257 = vpow2.f32 %v3050_v30 }
 0xd39   :  { %v977_v31 = vpop.f32.mrf.mxu2  ;;  %v989_v37 = vpop.f32.mrf.mxu3 }
 0xd3a   :  { %v995_v38 = vadd.f32 %v989_v37, %v275_v33 }
 0xd3c   :  { %v997_v39 = vmul.f32 %v995_v38, %v3741_v44 }
 0xd3e   :  { %v3258_v47 = vpop.eup %3257  ;;  %v3051_v48 = vmul.f32 -1.442695, %v997_v39 }
 0xd3f   :  { %v1004_v50 = vadd.f32 1.0, %v3258_v47 }
 0xd40   :  { %3259 = vpow2.f32 %v3051_v48 }
 0xd41   :  { %3261 = vrcp.f32 %v1004_v50  ;;  %v1017_v18 = vand.u32 2147483648, %v1004_v50  ;;  %v1015_v45 = vand.u32 2147483647, %v1004_v50  ;;  %vm1011_vm9 = vweird.f32 %v1004_v50 }
 0xd43   :  { %v1018_v16 = vor.u32 1.1754944e-38, %v1017_v18  ;;  %vm1016_vm11 = vcmp.eq.f32.partialorder %v1015_v45, 8.507059e+37  ;;  %v272_v45 = vadd.f32 %v3884_v43, %v3744_v49 }
 0xd46   :  { %v3260_v32 = vpop.eup %3259 }
 0xd47   :  { %v3262_v51 = vpop.eup %3261  ;;  %v1005_v14 = vadd.f32 1.0, %v3260_v32 }
 0xd48   :  { %v1007_v11 = vmul.f32 %v3262_v51, %v1004_v50  ;;  %vm1012_vm8 = vweird.f32 %v3262_v51 }
 0xd49   :  { %3263 = vrcp.f32 %v1005_v14  ;;  %vm1013_vm10 = vmor %vm1011_vm9, %vm1012_vm8  ;;  %v1032_v3 = vand.u32 2147483648, %v1005_v14  ;;  %v1030_v46 = vand.u32 2147483647, %v1005_v14  ;;  %vm1026_vm13 = vweird.f32 %v1005_v14 }
 0xd4a   :  { %v1008_v20 = vsub.f32 1.0, %v1007_v11 }
 0xd4b   :  { %v1033_v12 = vor.u32 1.1754944e-38, %v1032_v3  ;;  %vm1031_vm15 = vcmp.eq.f32.partialorder %v1030_v46, 8.507059e+37 }
 0xd4c   :  { %v1009_v55 = vmul.f32 %v3262_v51, %v1008_v20 }
 0xd4e   :  { %v1010_v57 = vadd.f32 %v3262_v51, %v1009_v55 }
 0xd4f   :  { %v3264_v58 = vpop.eup %3263 }
 0xd50   :  { %v1022_v35 = vmul.f32 %v3264_v58, %v1005_v14  ;;  %v1014_v62 = vsel %vm1013_vm10, %v3262_v51, %v1010_v57  ;;  %vm1027_vm12 = vweird.f32 %v3264_v58  ;;  %v246_v51 = vadd.f32 %v3721_v34, %v3736_v41 }
 0xd51   :  { %v1019_v63 = vsel %vm1016_vm11, %v1018_v16, %v1014_v62  ;;  %vm1028_vm14 = vmor %vm1026_vm13, %vm1027_vm12 }
 0xd52   :  { %v1023_v1 = vsub.f32 1.0, %v1022_v35  ;;  %v1036_v40 = vmul.f32 %v1019_v63, %v3741_v44 }
 0xd54   :  { %v1038_v4 = vadd.f32 %v1036_v40, %v3751_v9  ;;  %v1024_v5 = vmul.f32 %v3264_v58, %v1023_v1 }
 0xd56   :  { %1044 = vrot.lane.b32.xlu1 %v1038_v4, %s3535_s3  ;;  %v1025_v10 = vadd.f32 %v3264_v58, %v1024_v5  ;;  %v1040_v31 = vmul.f32 %v1038_v4, %v3935_v8 }
 0xd58   :  { %v1029_v15 = vsel %vm1028_vm14, %v3264_v58, %v1025_v10 }
 0xd59   :  { %v1034_v17 = vsel %vm1031_vm15, %v1033_v12, %v1029_v15 }
 0xd5a   :  { %v1037_v54 = vmul.f32 %v1034_v17, %v3741_v44 }
 0xd5c   :  { %v1039_v23 = vadd.f32 %v1037_v54, %v3751_v9 }
 0xd5e   :  { %1046 = vrot.lane.b32.xlu2 %v1039_v23, %s3535_s3  ;;  %v1041_v26 = vmul.f32 %v1039_v23, %v3940_v13 }
 0xdb8   :  { %v1047_v56 = vpop.permute.xlu2 %1046 }
 0xdb9   :  { %v1051_v60 = vmul.f32 %v1047_v56, %v1039_v23 }
 0xdbb   :  { %1056 = vrot.lane.b32.xlu1 %v1051_v60, %s3536_s17 }
 0xdc8   :  { %v1045_v2 = vpop.permute.xlu1 %1044 }
 0xdc9   :  { %v1050_v24 = vmul.f32 %v1045_v2, %v1038_v4 }
 0xdcb   :  { %1054 = vrot.lane.b32.xlu0 %v1050_v24, %s3536_s17 }
 0xe2d   :  { %v1057_v27 = vpop.permute.xlu1 %1056 }
 0xe2e   :  { %v3968_v30 = vadd.f32 %v1057_v27, %v1041_v26 }
 0xe30   :  { %3265 = vtanh.f32 %v3968_v30 }
 0xe36   :  { %v3266_v33 = vpop.eup %3265 }
 0xe37   :  { %1068 = vrot.lane.b32.xlu0 %v3266_v33, %s3535_s3 }
 0xe3d   :  { %v1055_v37 = vpop.permute.xlu0 %1054 }
 0xe3e   :  { %v3973_v38 = vadd.f32 %v1055_v37, %v1040_v31 }
 0xe40   :  { %3267 = vtanh.f32 %v3973_v38 }
 0xe46   :  { %v3268_v39 = vpop.eup %3267 }
 0xe47   :  { %1066 = vrot.lane.b32.xlu2 %v3268_v39, %s3535_s3 }
 0xea1   :  { %v1067_v47 = vpop.permute.xlu2 %1066 }
 0xea2   :  { %v3977_v48 = vmul.f32 %v1067_v47, %v1038_v4 }
 0xea9   :  { %v1069_v13 = vpop.permute.xlu0 %1068 }
 0xeaa   :  { %v3979_v50 = vmul.f32 %v1069_v13, %v1039_v23 }
 0xeac   :  { %v1084_v32 = vpack.c.bf16 %v3979_v50, %v3977_v48 }
 0xeae   :  { %1086 = vrot.lane.b32.xlu1 %v1084_v32, %s3536_s17 }
 0xf20   :  { %v1087_v8 = vpop.permute.xlu1 %1086 }
 0xf21   :  { %3052 = vmatmul.msk.bf16.vlgmr.msra.gmra.mxu0 %vm337_vm2, %v1087_v8  ;;  %3053 = vmatmul.msk.bf16.vlgmr.msra.gmra.mxu1 %vm337_vm2, %v1087_v8 }
 0xf9e   :  { %v1100_v14 = vpop.f32.mrf.mxu0  ;;  %v1113_v11 = vpop.f32.mrf.mxu1 }
 0xf9f   :  { %v1118_v20 = vadd.f32 %v1100_v14, %v246_v51 }
 0xfa1   :  { %v1121_v18 = vmul.f32 %v1118_v20, %v3741_v44 }
 0xfa3   :  { %v3054_v55 = vmul.f32 -1.442695, %v1121_v18 }
 0xfa5   :  { %3269 = vpow2.f32 %v3054_v55 }
 0xfa6   :  { %v1102_v57 = vpop.f32.mrf.mxu0  ;;  %v1114_v58 = vpop.f32.mrf.mxu1 }
 0xfa7   :  { %v1120_v16 = vadd.f32 %v1114_v58, %v272_v45 }
 0xfa9   :  { %v1122_v35 = vmul.f32 %v1120_v16, %v3741_v44 }
 0xfab   :  { %v3270_v62 = vpop.eup %3269  ;;  %v3055_v63 = vmul.f32 -1.442695, %v1122_v35 }
 0xfac   :  { %v1129_v1 = vadd.f32 1.0, %v3270_v62 }
 0xfad   :  { %3271 = vpow2.f32 %v3055_v63 }
 0xfae   :  { %3273 = vrcp.f32 %v1129_v1  ;;  %v1142_v46 = vand.u32 2147483648, %v1129_v1  ;;  %v1140_v43 = vand.u32 2147483647, %v1129_v1  ;;  %vm1136_vm3 = vweird.f32 %v1129_v1 }
 0xfb0   :  { %v1143_v17 = vor.u32 1.1754944e-38, %v1142_v46  ;;  %vm1141_vm5 = vcmp.eq.f32.partialorder %v1140_v43, 8.507059e+37  ;;  %v269_v43 = vadd.f32 %v3882_v42, %v3744_v49 }
 0xfb3   :  { %v3272_v34 = vpop.eup %3271 }
 0xfb4   :  { %v3274_v40 = vpop.eup %3273  ;;  %v1130_v3 = vadd.f32 1.0, %v3272_v34 }
 0xfb5   :  { %v1132_v4 = vmul.f32 %v3274_v40, %v1129_v1  ;;  %vm1137_vm1 = vweird.f32 %v3274_v40 }
 0xfb6   :  { %3275 = vrcp.f32 %v1130_v3  ;;  %vm1138_vm4 = vmor %vm1136_vm3, %vm1137_vm1  ;;  %v1157_v24 = vand.u32 2147483648, %v1130_v3  ;;  %v1155_v33 = vand.u32 2147483647, %v1130_v3  ;;  %vm1151_vm7 = vweird.f32 %v1130_v3 }
 0xfb7   :  { %v1133_v5 = vsub.f32 1.0, %v1132_v4 }
 0xfb8   :  { %v1158_v37 = vor.u32 1.1754944e-38, %v1157_v24  ;;  %vm1156_vm8 = vcmp.eq.f32.partialorder %v1155_v33, 8.507059e+37 }
 0xfb9   :  { %v1134_v10 = vmul.f32 %v3274_v40, %v1133_v5 }
 0xfbb   :  { %v1135_v12 = vadd.f32 %v3274_v40, %v1134_v10 }
 0xfbc   :  { %v3276_v15 = vpop.eup %3275 }
 0xfbd   :  { %v1147_v54 = vmul.f32 %v3276_v15, %v1130_v3  ;;  %v1139_v23 = vsel %vm1138_vm4, %v3274_v40, %v1135_v12  ;;  %vm1152_vm6 = vweird.f32 %v3276_v15  ;;  %v249_v40 = vadd.f32 %v3725_v36, %v3736_v41 }
 0xfbe   :  { %v1144_v56 = vsel %vm1141_vm5, %v1143_v17, %v1139_v23  ;;  %vm1153_vm0 = vmor %vm1151_vm7, %vm1152_vm6 }
 0xfbf   :  { %v1148_v60 = vsub.f32 1.0, %v1147_v54  ;;  %v1161_v2 = vmul.f32 %v1144_v56, %v3741_v44 }
 0xfc1   :  { %v1163_v26 = vadd.f32 %v1161_v2, %v3751_v9  ;;  %v1149_v27 = vmul.f32 %v3276_v15, %v1148_v60 }
 0xfc3   :  { %1169 = vrot.lane.b32.xlu2 %v1163_v26, %s3535_s3  ;;  %v1150_v31 = vadd.f32 %v3276_v15, %v1149_v27  ;;  %v1165_v20 = vmul.f32 %v1163_v26, %v3973_v38 }
 0xfc5   :  { %v1154_v39 = vsel %vm1153_vm0, %v3276_v15, %v1150_v31 }
 0xfc6   :  { %v1159_v47 = vsel %vm1156_vm8, %v1158_v37, %v1154_v39 }
 0xfc7   :  { %v1162_v13 = vmul.f32 %v1159_v47, %v3741_v44 }
 0xfc9   :  { %v1164_v32 = vadd.f32 %v1162_v13, %v3751_v9 }
 0xfcb   :  { %1171 = vrot.lane.b32.xlu0 %v1164_v32, %s3535_s3  ;;  %v1166_v45 = vmul.f32 %v1164_v32, %v3968_v30 }
0x101d   :  { %v1170_v8 = vpop.permute.xlu2 %1169 }
0x101e   :  { %v1175_v51 = vmul.f32 %v1170_v8, %v1163_v26 }
0x1020   :  { %1179 = vrot.lane.b32.xlu1 %v1175_v51, %s3536_s17 }
0x103d   :  { %v1172_v14 = vpop.permute.xlu0 %1171 }
0x103e   :  { %v1176_v11 = vmul.f32 %v1172_v14, %v1164_v32 }
0x1040   :  { %1181 = vrot.lane.b32.xlu2 %v1176_v11, %s3536_s17 }
0x1092   :  { %v1180_v18 = vpop.permute.xlu1 %1179 }
0x1093   :  { %v4001_v55 = vadd.f32 %v1180_v18, %v1165_v20 }
0x1095   :  { %3277 = vtanh.f32 %v4001_v55 }
0x109a   :  { %v1182_v57 = vpop.permute.xlu2 %1181 }
0x109b   :  { %v3278_v58 = vpop.eup %3277  ;;  %v4005_v16 = vadd.f32 %v1182_v57, %v1166_v45 }
0x109c   :  { %1191 = vrot.lane.b32.xlu0 %v3278_v58, %s3535_s3 }
0x109d   :  { %3279 = vtanh.f32 %v4005_v16 }
0x10a3   :  { %v3280_v35 = vpop.eup %3279 }
0x10a4   :  { %1193 = vrot.lane.b32.xlu1 %v3280_v35, %s3535_s3 }
0x110e   :  { %v1192_v62 = vpop.permute.xlu0 %1191 }
0x110f   :  { %v4010_v63 = vmul.f32 %v1192_v62, %v1163_v26 }
0x1116   :  { %v1194_v38 = vpop.permute.xlu1 %1193 }
0x1117   :  { %v4012_v1 = vmul.f32 %v1194_v38, %v1164_v32 }
0x1119   :  { %v1209_v30 = vpack.c.bf16 %v4012_v1, %v4010_v63 }
0x111b   :  { %1211 = vrot.lane.b32.xlu2 %v1209_v30, %s3536_s17 }
0x1175   :  { %v1212_v34 = vpop.permute.xlu2 %1211 }
0x1176   :  { %3056 = vmatmul.msk.bf16.vlgmr.msra.gmra.mxu2 %vm337_vm2, %v1212_v34  ;;  %3057 = vmatmul.msk.bf16.vlgmr.msra.gmra.mxu3 %vm337_vm2, %v1212_v34 }
0x11f9   :  { %v1225_v3 = vpop.f32.mrf.mxu2  ;;  %v1238_v4 = vpop.f32.mrf.mxu3 }
0x11fa   :  { %v1243_v5 = vadd.f32 %v1225_v3, %v249_v40 }
0x11fc   :  { %v1246_v46 = vmul.f32 %v1243_v5, %v3741_v44 }
0x11fe   :  { %v3058_v10 = vmul.f32 -1.442695, %v1246_v46 }
0x1200   :  { %3281 = vpow2.f32 %v3058_v10 }
0x1201   :  { %v1227_v12 = vpop.f32.mrf.mxu2  ;;  %v1239_v15 = vpop.f32.mrf.mxu3 }
0x1202   :  { %v1245_v17 = vadd.f32 %v1239_v15, %v269_v43 }
0x1204   :  { %v1247_v54 = vmul.f32 %v1245_v17, %v3741_v44 }
0x1206   :  { %v3282_v23 = vpop.eup %3281  ;;  %v3059_v56 = vmul.f32 -1.442695, %v1247_v54 }
0x1207   :  { %v1254_v60 = vadd.f32 1.0, %v3282_v23 }
0x1208   :  { %3283 = vpow2.f32 %v3059_v56  ;;  %v1349_v56 = vld [vmem:[#allocation6 + $0x78] sm:$0xff] }
0x1209   :  { %3285 = vrcp.f32 %v1254_v60  ;;  %v1267_v27 = vand.u32 2147483648, %v1254_v60  ;;  %v1265_v49 = vand.u32 2147483647, %v1254_v60  ;;  %vm1261_vm10 = vweird.f32 %v1254_v60  ;;  %1443 = vmatpush.msrb.mxu1 %v1349_v56 }
0x120b   :  { %v1268_v37 = vor.u32 1.1754944e-38, %v1267_v27  ;;  %vm1266_vm12 = vcmp.eq.f32.partialorder %v1265_v49, 8.507059e+37  ;;  %v1345_v49 = vld [vmem:[#allocation6 + $0x58] sm:$0xff] }
0x120e   :  { %v3284_v36 = vpop.eup %3283 }
0x120f   :  { %v3286_v41 = vpop.eup %3285  ;;  %v1255_v2 = vadd.f32 1.0, %v3284_v36 }
0x1210   :  { %v1257_v24 = vmul.f32 %v3286_v41, %v1254_v60  ;;  %vm1262_vm9 = vweird.f32 %v3286_v41  ;;  %v1347_v60 = vld [vmem:[#allocation6 + $0x68] sm:$0xff] }
0x1211   :  { %3287 = vrcp.f32 %v1255_v2  ;;  %vm1263_vm11 = vmor %vm1261_vm10, %vm1262_vm9  ;;  %v1282_v51 = vand.u32 2147483648, %v1255_v2  ;;  %v1280_v20 = vand.u32 2147483647, %v1255_v2  ;;  %vm1276_vm14 = vweird.f32 %v1255_v2  ;;  %1444 = vmatpush.msrb.mxu1 %v1347_v60 }
0x1212   :  { %v1258_v26 = vsub.f32 1.0, %v1257_v24 }
0x1213   :  { %v1283_v45 = vor.u32 1.1754944e-38, %v1282_v51  ;;  %vm1281_vm1 = vcmp.eq.f32.partialorder %v1280_v20, 8.507059e+37  ;;  %1445 = vmatpush.msrb.mxu1 %v1345_v49  ;;  %v3096_v20 = vld [vmem:[%s4561_s5 + $0x8] sm:$0xf0] }
0x1214   :  { %v1259_v33 = vmul.f32 %v3286_v41, %v1258_v26 }
0x1216   :  { %v1260_v42 = vadd.f32 %v3286_v41, %v1259_v33 }
0x1217   :  { %v3288_v31 = vpop.eup %3287 }
0x1218   :  { %v1272_v39 = vmul.f32 %v3288_v31, %v1255_v2  ;;  %v1264_v47 = vsel %vm1263_vm11, %v3286_v41, %v1260_v42  ;;  %vm1277_vm13 = vweird.f32 %v3288_v31  ;;  %v1346_v42 = vld [vmem:[#allocation6 + $0x60] sm:$0xff] }
0x1219   :  { %v1269_v13 = vsel %vm1266_vm12, %v1268_v37, %v1264_v47  ;;  %vm1278_vm15 = vmor %vm1276_vm14, %vm1277_vm13  ;;  %v1342_v37 = vld [vmem:[#allocation6 + $0x40] sm:$0xff]  ;;  %v3102_v47 = vld [vmem:[%s4561_s5 + $0x10] sm:$0xf] }
0x121a   :  { %v1273_v32 = vsub.f32 1.0, %v1272_v39  ;;  %v1286_v8 = vmul.f32 %v1269_v13, %v3741_v44  ;;  %v3170_v13 = vld [vmem:[%s4561_s5 + $0x14] sm:$0xf0] }
0x121c   :  { %v4027_v14 = vadd.f32 %v1286_v8, %v3751_v9  ;;  %v1274_v11 = vmul.f32 %v3288_v31, %v1273_v32  ;;  %v4100_v32 = vor.u32 %v3170_v13, %v3102_v47 }
0x121e   :  { %1294 = vrot.lane.b32.xlu2 %v4027_v14, %s3535_s3  ;;  %v1275_v18 = vadd.f32 %v3288_v31, %v1274_v11  ;;  %v1290_v46 = vmul.f32 %v4027_v14, %v4001_v55  ;;  %v1339_v55 = vld [vmem:[#allocation6 + $0x28] sm:$0xff]  ;;  %v3167_v11 = vld [vmem:[%s4561_s5 + $0x4] sm:$0xf] }
0x1220   :  { %v1279_v57 = vsel %vm1278_vm15, %v3288_v31, %v1275_v18  ;;  %v1344_v31 = vld [vmem:[#allocation6 + $0x50] sm:$0xff]  ;;  %v4114_v18 = vor.u32 %v3167_v11, %v3096_v20 }
0x1221   :  { %v1284_v58 = vsel %vm1281_vm1, %v1283_v45, %v1279_v57 }
0x1222   :  { %v1287_v35 = vmul.f32 %v1284_v58, %v3741_v44 }
0x1224   :  { %v1289_v62 = vadd.f32 %v1287_v35, %v3751_v9  ;;  %v3094_v35 = vld [vmem:[%s4561_s5] sm:$0xf] }
0x1226   :  { %1296 = vrot.lane.b32.xlu0 %v1289_v62, %s3535_s3  ;;  %v1291_v3 = vmul.f32 %v1289_v62, %v4005_v16  ;;  %v1336_v16 = vld [vmem:[#allocation6 + $0x10] sm:$0xff] }
0x1278   :  { %v1295_v34 = vpop.permute.xlu2 %1294 }
0x1279   :  { %v1300_v40 = vmul.f32 %v1295_v34, %v4027_v14 }
0x1298   :  { %v1297_v38 = vpop.permute.xlu0 %1296 }
0x1299   :  { %v1301_v30 = vmul.f32 %v1297_v38, %v1289_v62 }
0x129b   :  { %1306 = vrot.lane.b32.xlu1 %v1301_v30, %s3536_s17 }
0x12a3   :  { %1304 = vrot.lane.b32.xlu1 %v1300_v40, %s3536_s17 }
0x12ab   :  { %1205 = vrot.lane.b32.xlu1 %v4012_v1, %s3536_s17  ;;  %v1335_v1 = vld [vmem:[#allocation6 + $0x8] sm:$0xff] }
0x130d   :  { %v1307_v4 = vpop.permute.xlu1 %1306 }
0x130e   :  { %v1311_v5 = vadd.f32 %v1307_v4, %v1291_v3 }
0x1310   :  { %3289 = vtanh.f32 %v1311_v5 }
0x1315   :  { %v1305_v10 = vpop.permute.xlu1 %1304 }
0x1316   :  { %v3290_v43 = vpop.eup %3289  ;;  %v1310_v12 = vadd.f32 %v1305_v10, %v1290_v46 }
0x1317   :  { %1318 = vrot.lane.b32.xlu0 %v3290_v43, %s3535_s3 }
0x1318   :  { %3291 = vtanh.f32 %v1310_v12 }
0x131d   :  { %v1206_v15 = vpop.permute.xlu1 %1205 }
0x131e   :  { %v3292_v17 = vpop.eup %3291  ;;  %1208 = vst.msk [vmem:[#allocation4 + $0x8] sm:$0xff] %vm337_vm2, %v1206_v15 }
0x131f   :  { %450 = vrot.lane.b32.xlu0 %v3772_v52, %s3536_s17  ;;  %1316 = vrot.lane.b32.xlu1 %v3292_v17, %s3535_s3  ;;  %v1340_v52 = vld [vmem:[#allocation6 + $0x30] sm:$0xff] }
0x1320   :  { %1508 = vmatpush.msrb.mxu2 %v1340_v52 }
0x1325   :  { %v1359_v57 = vld [vmem:[#allocation4 + $0x8] sm:$0xff] }
0x1327   :  { %1080 = vrot.lane.b32.xlu0 %v3979_v50, %s3536_s17  ;;  %825 = vrot.lane.b32.xlu1 %v3912_v59, %s3536_s17  ;;  %v1341_v50 = vld [vmem:[#allocation6 + $0x38] sm:$0xff]  ;;  %v1338_v59 = vld [vmem:[#allocation6 + $0x20] sm:$0xff] }
0x1328   :  { %1549 = vmatpush.msrb.mxu3 %v1341_v50  ;;  %1509 = vmatpush.msrb.mxu2 %v1338_v59 }
0x132a   :  { %1550 = vmatpush.msrb.mxu3 %v1339_v55  ;;  %1510 = vmatpush.msrb.mxu2 %v1336_v16  ;;  %v1578_v16 = vld [vmem:[#allocation8] sm:$0x3] }
0x132f   :  { %955 = vrot.lane.b32.xlu0 %v3946_v21, %s3536_s17  ;;  %705 = vrot.lane.b32.xlu1 %v3863_v29, %s3536_s17  ;;  %v1337_v21 = vld [vmem:[#allocation6 + $0x18] sm:$0xff]  ;;  %v1334_v29 = vld [vmem:[#allocation6] sm:$0xff] }
0x1330   :  { %1551 = vmatpush.msrb.mxu3 %v1337_v21  ;;  %1511 = vmatpush.msrb.mxu2 %v1334_v29  ;;  %v4175_v29 = vperm.slane %v1578_v16, 1 }
0x1332   :  { %1552 = vmatpush.msrb.mxu3 %v1335_v1  ;;  %1771 = vmatpush.bf16.msra.mxu2 %v4100_v32 }
0x1337   :  { %950 = vrot.lane.b32.xlu0 %v3944_v19, %s3536_s17  ;;  %1200 = vrot.lane.b32.xlu1 %v4010_v63, %s3536_s17 }
0x133f   :  { %580 = vrot.lane.b32.xlu0 %v3817_v7, %s3536_s17 }
0x1389   :  { %v1319_v19 = vpop.permute.xlu0 %1318 }
0x138a   :  { %v1323_v63 = vmul.f32 %v1319_v19, %v1289_v62  ;;  %v3168_v62 = vld [vmem:[%s4561_s5 + $0x4] sm:$0xf0] }
0x138b   :  { %v4131_v38 = vor.u32 %v3168_v62, %v3094_v35 }
0x138c   :  { %1330 = vrot.lane.b32.xlu2 %v1323_v63, %s3536_s17 }
0x138d   :  { %1772 = vmatpush.bf16.msra.mxu2 %v4131_v38 }
0x1391   :  { %v451_v7 = vpop.permute.xlu0 %450  ;;  %v1317_v54 = vpop.permute.xlu1 %1316 }
0x1392   :  { %453 = vst.msk [vmem:[#allocation3] sm:$0xff] %vm337_vm2, %v451_v7  ;;  %v1322_v23 = vmul.f32 %v1317_v54, %v4027_v14 }
0x1394   :  { %575 = vrot.lane.b32.xlu2 %v3815_v6, %s3536_s17  ;;  %1325 = vrot.lane.b32.xlu0 %v1322_v23, %s3536_s17 }
0x1399   :  { %v1081_v36 = vpop.permute.xlu0 %1080  ;;  %v826_v41 = vpop.permute.xlu1 %825  ;;  %v1350_v2 = vld [vmem:[#allocation3] sm:$0xff] }
0x139a   :  { %1083 = vst.msk [vmem:[#allocation4 + $0x10] sm:$0xff] %vm337_vm2, %v1081_v36  ;;  %3076 = vmatmul.msk.f32.vlgmr.msrb.gmra.mxu2 %vm337_vm2, %v1350_v2  ;;  %3084 = vmatmul.msk.f32.vlgmr.msrb.gmra.mxu3 %vm337_vm2, %v1350_v2 }
0x139b   :  { %828 = vst.msk [vmem:[#allocation3 + $0x18] sm:$0xff] %vm337_vm2, %v826_v41  ;;  %2021 = vmatpush.bf16.msrb.mxu2 %v4100_v32 }
0x139c   :  { %700 = vrot.lane.b32.xlu2 %v3861_v28, %s3536_s17  ;;  %v1348_v28 = vld [vmem:[#allocation6 + $0x70] sm:$0xff] }
0x139d   :  { %1402 = vmatpush.msrb.mxu0 %v1348_v28 }
0x139f   :  { %1403 = vmatpush.msrb.mxu0 %v1346_v42  ;;  %2022 = vmatpush.bf16.msrb.mxu2 %v4131_v38 }
0x13a1   :  { %v956_v6 = vpop.permute.xlu0 %955  ;;  %v706_v24 = vpop.permute.xlu1 %705  ;;  %1404 = vmatpush.msrb.mxu0 %v1344_v31  ;;  %v1360_v34 = vld [vmem:[#allocation4 + $0x10] sm:$0xff] }
0x13a2   :  { %958 = vst.msk [vmem:[#allocation4 + $0x18] sm:$0xff] %vm337_vm2, %v956_v6  ;;  %v1353_v46 = vld [vmem:[#allocation3 + $0x18] sm:$0xff] }
0x13a3   :  { %708 = vst.msk [vmem:[#allocation4 + $0x28] sm:$0xff] %vm337_vm2, %v706_v24  ;;  %1405 = vmatpush.msrb.mxu0 %v1342_v37  ;;  %v1580_v24 = vperm.slane %v1578_v16, 0 }
0x13a4   :  { %830 = vrot.lane.b32.xlu2 %v3914_v61, %s3536_s17  ;;  %v1343_v61 = vld [vmem:[#allocation6 + $0x48] sm:$0xff] }
0x13a5   :  { %1446 = vmatpush.msrb.mxu1 %v1343_v61  ;;  %1646 = vmatpush.bf16.msra.mxu0 %v4100_v32 }
0x13a9   :  { %v951_v26 = vpop.permute.xlu0 %950  ;;  %v1201_v27 = vpop.permute.xlu1 %1200  ;;  %1647 = vmatpush.bf16.msra.mxu0 %v4131_v38  ;;  %v1361_v5 = vld [vmem:[#allocation4 + $0x18] sm:$0xff] }
0x13aa   :  { %953 = vst.msk [vmem:[#allocation3 + $0x20] sm:$0xff] %vm337_vm2, %v951_v26  ;;  %v1363_v15 = vld [vmem:[#allocation4 + $0x28] sm:$0xff] }
0x13ab   :  { %1203 = vst.msk [vmem:[#allocation3 + $0x30] sm:$0xff] %vm337_vm2, %v1201_v27 }
0x13ac   :  { %1075 = vrot.lane.b32.xlu2 %v3977_v48, %s3536_s17  ;;  %v3169_v48 = vld [vmem:[%s4561_s5 + $0x14] sm:$0xf] }
0x13b1   :  { %v581_v33 = vpop.permute.xlu0 %580  ;;  %v1354_v12 = vld [vmem:[#allocation3 + $0x20] sm:$0xff] }
0x13b2   :  { %583 = vst.msk [vmem:[#allocation4 + $0x30] sm:$0xff] %vm337_vm2, %v581_v33  ;;  %v1356_v50 = vld [vmem:[#allocation3 + $0x30] sm:$0xff] }
0x13b4   :  { %455 = vrot.lane.b32.xlu2 %v3774_v53, %s3536_s17  ;;  %v3104_v53 = vld [vmem:[%s4561_s5 + $0x18] sm:$0xf0] }
0x13b5   :  { %v4090_v39 = vor.u32 %v3169_v48, %v3104_v53 }
0x13b7   :  { %1659 = vmatpush.bf16.msra.mxu1 %v4090_v39  ;;  %1784 = vmatpush.bf16.msra.mxu3 %v4090_v39 }
0x13b9   :  { %v1364_v52 = vld [vmem:[#allocation4 + $0x30] sm:$0xff] }
0x13bb   :  { %1660 = vmatpush.bf16.msra.mxu1 %v4114_v18  ;;  %1785 = vmatpush.bf16.msra.mxu3 %v4114_v18 }
0x13bf   :  { %2034 = vmatpush.bf16.msrb.mxu3 %v4090_v39 }
0x13c3   :  { %2035 = vmatpush.bf16.msrb.mxu3 %v4114_v18 }
0x13e6   :  { %v1331_v8 = vpop.permute.xlu2 %1330 }
0x13e7   :  { %1333 = vst.msk [vmem:[#allocation4] sm:$0xff] %vm337_vm2, %v1331_v8 }
0x13ee   :  { %v576_v51 = vpop.permute.xlu2 %575  ;;  %v1358_v14 = vld [vmem:[#allocation4] sm:$0xff] }
0x13ef   :  { %578 = vst.msk [vmem:[#allocation3 + $0x8] sm:$0xff] %vm337_vm2, %v576_v51  ;;  %3060 = vmatmul.msk.f32.vlgmr.msrb.gmra.mxu0 %vm337_vm2, %v1358_v14  ;;  %3068 = vmatmul.msk.f32.vlgmr.msrb.gmra.mxu1 %vm337_vm2, %v1358_v14 }
0x13f0   :  { %1909 = vmatpush.bf16.msrb.mxu1 %v4090_v39  ;;  %1896 = vmatpush.bf16.msrb.mxu0 %v4100_v32 }
0x13f4   :  { %1910 = vmatpush.bf16.msrb.mxu1 %v4114_v18  ;;  %1897 = vmatpush.bf16.msrb.mxu0 %v4131_v38 }
0x13f6   :  { %v701_v45 = vpop.permute.xlu2 %700  ;;  %v1351_v58 = vld [vmem:[#allocation3 + $0x8] sm:$0xff] }
0x13f7   :  { %703 = vst.msk [vmem:[#allocation3 + $0x10] sm:$0xff] %vm337_vm2, %v701_v45  ;;  %3061 = vmatmul.msk.f32.gmra.mxu0 %vm337_vm2, %v1359_v57  ;;  %3069 = vmatmul.msk.f32.gmra.mxu1 %vm337_vm2, %v1359_v57 }
0x13f8   :  { %3077 = vmatmul.msk.f32.gmra.mxu2 %vm337_vm2, %v1351_v58  ;;  %3085 = vmatmul.msk.f32.gmra.mxu3 %vm337_vm2, %v1351_v58 }
0x13fe   :  { %v831_v30 = vpop.permute.xlu2 %830  ;;  %v1352_v40 = vld [vmem:[#allocation3 + $0x10] sm:$0xff] }
0x13ff   :  { %833 = vst.msk [vmem:[#allocation4 + $0x20] sm:$0xff] %vm337_vm2, %v831_v30  ;;  %3062 = vmatmul.msk.f32.gmra.mxu0 %vm337_vm2, %v1360_v34  ;;  %3070 = vmatmul.msk.f32.gmra.mxu1 %vm337_vm2, %v1360_v34 }
0x1400   :  { %3078 = vmatmul.msk.f32.gmra.mxu2 %vm337_vm2, %v1352_v40  ;;  %3086 = vmatmul.msk.f32.gmra.mxu3 %vm337_vm2, %v1352_v40 }
0x1406   :  { %v1076_v3 = vpop.permute.xlu2 %1075  ;;  %v1326_v4 = vpop.permute.xlu0 %1325  ;;  %v1362_v43 = vld [vmem:[#allocation4 + $0x20] sm:$0xff] }
0x1407   :  { %1078 = vst.msk [vmem:[#allocation3 + $0x28] sm:$0xff] %vm337_vm2, %v1076_v3  ;;  %3063 = vmatmul.msk.f32.gmra.mxu0 %vm337_vm2, %v1361_v5  ;;  %3071 = vmatmul.msk.f32.gmra.mxu1 %vm337_vm2, %v1361_v5 }
0x1408   :  { %1328 = vst.msk [vmem:[#allocation3 + $0x38] sm:$0xff] %vm337_vm2, %v1326_v4  ;;  %3079 = vmatmul.msk.f32.gmra.mxu2 %vm337_vm2, %v1353_v46  ;;  %3087 = vmatmul.msk.f32.gmra.mxu3 %vm337_vm2, %v1353_v46 }
0x140e   :  { %v456_v10 = vpop.permute.xlu2 %455  ;;  %v1355_v17 = vld [vmem:[#allocation3 + $0x28] sm:$0xff] }
0x140f   :  { %458 = vst.msk [vmem:[#allocation4 + $0x38] sm:$0xff] %vm337_vm2, %v456_v10  ;;  %3064 = vmatmul.msk.f32.gmra.mxu0 %vm337_vm2, %v1362_v43  ;;  %3072 = vmatmul.msk.f32.gmra.mxu1 %vm337_vm2, %v1362_v43  ;;  %v1357_v55 = vld [vmem:[#allocation3 + $0x38] sm:$0xff] }
0x1410   :  { %3080 = vmatmul.msk.f32.gmra.mxu2 %vm337_vm2, %v1354_v12  ;;  %3088 = vmatmul.msk.f32.gmra.mxu3 %vm337_vm2, %v1354_v12 }
0x1416   :  { %v1365_v59 = vld [vmem:[#allocation4 + $0x38] sm:$0xff] }
0x1417   :  { %3065 = vmatmul.msk.f32.gmra.mxu0 %vm337_vm2, %v1363_v15  ;;  %3073 = vmatmul.msk.f32.gmra.mxu1 %vm337_vm2, %v1363_v15 }
0x1418   :  { %3081 = vmatmul.msk.f32.gmra.mxu2 %vm337_vm2, %v1355_v17  ;;  %3089 = vmatmul.msk.f32.gmra.mxu3 %vm337_vm2, %v1355_v17 }
0x141d   :  { %v1554_v21 = vpop.f32.mrf.mxu3  ;;  %v1513_v54 = vpop.f32.mrf.mxu2 }
0x141f   :  { %3066 = vmatmul.msk.f32.gmra.mxu0 %vm337_vm2, %v1364_v52  ;;  %3074 = vmatmul.msk.f32.gmra.mxu1 %vm337_vm2, %v1364_v52 }
0x1420   :  { %3082 = vmatmul.msk.f32.gmra.mxu2 %vm337_vm2, %v1356_v50  ;;  %3090 = vmatmul.msk.f32.gmra.mxu3 %vm337_vm2, %v1356_v50 }
0x1427   :  { %3067 = vmatmul.msk.f32.gmra.mxu0 %vm337_vm2, %v1365_v59  ;;  %3075 = vmatmul.msk.f32.gmra.mxu1 %vm337_vm2, %v1365_v59 }
0x1428   :  { %3083 = vmatmul.msk.f32.gmra.mxu2 %vm337_vm2, %v1357_v55  ;;  %3091 = vmatmul.msk.f32.gmra.mxu3 %vm337_vm2, %v1357_v55 }
0x142f   :  { %1648 = vmatmul.bf16.vlgmr.msra.gmra.mxu0 %v3532_v0  ;;  %1661 = vmatmul.bf16.vlgmr.msra.gmra.mxu1 %v3532_v0 }
0x1430   :  { %2159 = vmatpush.bf16.msra.mxu1 %v4090_v39  ;;  %2146 = vmatpush.bf16.msra.mxu0 %v4100_v32 }
0x1434   :  { %2160 = vmatpush.bf16.msra.mxu1 %v4114_v18  ;;  %2147 = vmatpush.bf16.msra.mxu0 %v4131_v38 }
0x146c   :  { %v1407_v1 = vpop.f32.mrf.mxu0  ;;  %v1448_v19 = vpop.f32.mrf.mxu1 }
0x146d   :  { %v1555_v63 = vadd.f32 %v1554_v21, %v1448_v19 }
0x146f   :  { %v4178_v7 = vadd.f32 %v4175_v29, %v1555_v63  ;;  %v1514_v63 = vadd.f32 %v1513_v54, %v1407_v1 }
0x1474   :  { %v1410_v0 = vpop.f32.mrf.mxu0  ;;  %v1451_v23 = vpop.f32.mrf.mxu1 }
0x147b   :  { %v1516_v56 = vpop.f32.mrf.mxu2  ;;  %v1557_v60 = vpop.f32.mrf.mxu3 }
0x147c   :  { %v1517_v36 = vadd.f32 %v1516_v56, %v1410_v0  ;;  %v1558_v41 = vadd.f32 %v1557_v60, %v1451_v23  ;;  %v1413_v2 = vpop.f32.mrf.mxu0  ;;  %v1454_v6 = vpop.f32.mrf.mxu1  ;;  %v1584_v56 = vadd.f32 %v1580_v24, %v1514_v63 }
0x147e   :  { %v4180_v26 = vadd.f32 %v1580_v24, %v1517_v36  ;;  %v4183_v27 = vadd.f32 %v4175_v29, %v1558_v41 }
0x1483   :  { %v1519_v33 = vpop.f32.mrf.mxu2  ;;  %v1560_v28 = vpop.f32.mrf.mxu3 }
0x1484   :  { %v1520_v49 = vadd.f32 %v1519_v33, %v1413_v2  ;;  %v1561_v42 = vadd.f32 %v1560_v28, %v1454_v6  ;;  %v1416_v61 = vpop.f32.mrf.mxu0  ;;  %v1457_v31 = vpop.f32.mrf.mxu1 }
0x1486   :  { %v4185_v37 = vadd.f32 %v1580_v24, %v1520_v49  ;;  %v4188_v48 = vadd.f32 %v4175_v29, %v1561_v42 }
0x148b   :  { %v1522_v53 = vpop.f32.mrf.mxu2  ;;  %v1563_v47 = vpop.f32.mrf.mxu3 }
0x148c   :  { %v1523_v13 = vadd.f32 %v1522_v53, %v1416_v61  ;;  %v1564_v8 = vadd.f32 %v1563_v47, %v1457_v31  ;;  %v1419_v51 = vpop.f32.mrf.mxu0  ;;  %v1460_v14 = vpop.f32.mrf.mxu1 }
0x148e   :  { %v4190_v11 = vadd.f32 %v1580_v24, %v1523_v13  ;;  %v4193_v20 = vadd.f32 %v4175_v29, %v1564_v8 }
0x1493   :  { %v1525_v45 = vpop.f32.mrf.mxu2  ;;  %v1566_v57 = vpop.f32.mrf.mxu3 }
0x1494   :  { %v1526_v58 = vadd.f32 %v1525_v45, %v1419_v51  ;;  %v1567_v35 = vadd.f32 %v1566_v57, %v1460_v14  ;;  %v1422_v62 = vpop.f32.mrf.mxu0  ;;  %v1463_v30 = vpop.f32.mrf.mxu1 }
0x1496   :  { %v4196_v34 = vadd.f32 %v4175_v29, %v1567_v35  ;;  %v4198_v40 = vadd.f32 %v1580_v24, %v1526_v58 }
0x149b   :  { %v1528_v3 = vpop.f32.mrf.mxu2  ;;  %v1569_v4 = vpop.f32.mrf.mxu3 }
0x149c   :  { %v1529_v5 = vadd.f32 %v1528_v3, %v1422_v62  ;;  %v1570_v46 = vadd.f32 %v1569_v4, %v1463_v30  ;;  %v1425_v10 = vpop.f32.mrf.mxu0  ;;  %v1466_v43 = vpop.f32.mrf.mxu1 }
0x149e   :  { %v4201_v12 = vadd.f32 %v4175_v29, %v1570_v46  ;;  %v4203_v15 = vadd.f32 %v1580_v24, %v1529_v5 }
0x14a3   :  { %v1531_v17 = vpop.f32.mrf.mxu2  ;;  %v1572_v52 = vpop.f32.mrf.mxu3 }
0x14a4   :  { %v1532_v50 = vadd.f32 %v1531_v17, %v1425_v10  ;;  %v1573_v59 = vadd.f32 %v1572_v52, %v1466_v43  ;;  %v1428_v55 = vpop.f32.mrf.mxu0  ;;  %v1469_v16 = vpop.f32.mrf.mxu1 }
0x14a6   :  { %v4206_v21 = vadd.f32 %v4175_v29, %v1573_v59  ;;  %v4208_v19 = vadd.f32 %v1580_v24, %v1532_v50 }
0x14ab   :  { %v1534_v0 = vpop.f32.mrf.mxu2  ;;  %v1575_v23 = vpop.f32.mrf.mxu3 }
0x14ac   :  { %v1535_v60 = vadd.f32 %v1534_v0, %v1428_v55  ;;  %v1649_v36 = vpop.f32.mrf.mxu0  ;;  %v1662_v41 = vpop.f32.mrf.mxu1  ;;  %v1576_v33 = vadd.f32 %v1575_v23, %v1469_v16 }
0x14ad   :  { %v1667_v2 = vadd.f32 %v1649_v36, %v1584_v56 }
0x14ae   :  { %v4210_v6 = vadd.f32 %v1580_v24, %v1535_v60  ;;  %v1599_v42 = vadd.f32 %v4175_v29, %v1576_v33 }
0x14af   :  { %v1670_v28 = vmul.f32 %v1667_v2, %v3741_v44 }
0x14b1   :  { %v3108_v49 = vmul.f32 -1.442695, %v1670_v28 }
0x14b3   :  { %3293 = vpow2.f32 %v3108_v49 }
0x14b4   :  { %v1651_v61 = vpop.f32.mrf.mxu0  ;;  %v1663_v31 = vpop.f32.mrf.mxu1 }
0x14b5   :  { %v1669_v53 = vadd.f32 %v1663_v31, %v1599_v42 }
0x14b7   :  { %v1671_v1 = vmul.f32 %v1669_v53, %v3741_v44 }
0x14b9   :  { %v3294_v54 = vpop.eup %3293  ;;  %v3109_v47 = vmul.f32 -1.442695, %v1671_v1 }
0x14ba   :  { %v1678_v13 = vadd.f32 1.0, %v3294_v54 }
0x14bb   :  { %3295 = vpow2.f32 %v3109_v47 }
0x14bc   :  { %3297 = vrcp.f32 %v1678_v13  ;;  %v1691_v57 = vand.u32 2147483648, %v1678_v13  ;;  %v1689_v29 = vand.u32 2147483647, %v1678_v13  ;;  %vm1685_vm4 = vweird.f32 %v1678_v13 }
0x14be   :  { %v1692_v30 = vor.u32 1.1754944e-38, %v1691_v57  ;;  %vm1690_vm6 = vcmp.eq.f32.partialorder %v1689_v29, 8.507059e+37 }
0x14c1   :  { %v3296_v8 = vpop.eup %3295 }
0x14c2   :  { %v3298_v24 = vpop.eup %3297  ;;  %v1679_v51 = vadd.f32 1.0, %v3296_v8 }
0x14c3   :  { %v1681_v14 = vmul.f32 %v3298_v24, %v1678_v13  ;;  %vm1686_vm3 = vweird.f32 %v3298_v24 }
0x14c4   :  { %3299 = vrcp.f32 %v1679_v51  ;;  %vm1687_vm5 = vmor %vm1685_vm4, %vm1686_vm3  ;;  %v1706_v43 = vand.u32 2147483648, %v1679_v51  ;;  %v1704_v50 = vand.u32 2147483647, %v1679_v51  ;;  %vm1700_vm0 = vweird.f32 %v1679_v51 }
0x14c5   :  { %v1682_v45 = vsub.f32 1.0, %v1681_v14 }
0x14c6   :  { %v1707_v55 = vor.u32 1.1754944e-38, %v1706_v43  ;;  %vm1705_vm9 = vcmp.eq.f32.partialorder %v1704_v50, 8.507059e+37 }
0x14c7   :  { %v1683_v58 = vmul.f32 %v3298_v24, %v1682_v45 }
0x14c9   :  { %v1684_v35 = vadd.f32 %v3298_v24, %v1683_v58 }
0x14ca   :  { %v3300_v62 = vpop.eup %3299 }
0x14cb   :  { %v1696_v3 = vmul.f32 %v3300_v62, %v1679_v51  ;;  %v1688_v4 = vsel %vm1687_vm5, %v3298_v24, %v1684_v35  ;;  %vm1701_vm7 = vweird.f32 %v3300_v62 }
0x14cc   :  { %v1693_v5 = vsel %vm1690_vm6, %v1692_v30, %v1688_v4  ;;  %vm1702_vm8 = vmor %vm1700_vm0, %vm1701_vm7 }
0x14cd   :  { %v1697_v46 = vsub.f32 1.0, %v1696_v3  ;;  %v1710_v10 = vmul.f32 %v1693_v5, %v3741_v44 }
0x14cf   :  { %v1712_v17 = vadd.f32 %v1710_v10, %v3751_v9  ;;  %v1698_v52 = vmul.f32 %v3300_v62, %v1697_v46 }
0x14d1   :  { %1718 = vrot.lane.b32.xlu1 %v1712_v17, %s3535_s3  ;;  %v1699_v59 = vadd.f32 %v3300_v62, %v1698_v52  ;;  %v1714_v42 = vmul.f32 0.0, %v1712_v17 }
0x14d3   :  { %v1703_v16 = vsel %vm1702_vm8, %v3300_v62, %v1699_v59 }
0x14d4   :  { %v1708_v63 = vsel %vm1705_vm9, %v1707_v55, %v1703_v16 }
0x14d5   :  { %v1711_v0 = vmul.f32 %v1708_v63, %v3741_v44 }
0x14d7   :  { %v1713_v23 = vadd.f32 %v1711_v0, %v3751_v9 }
0x14d9   :  { %1720 = vrot.lane.b32.xlu2 %v1713_v23, %s3535_s3  ;;  %v1715_v2 = vmul.f32 0.0, %v1713_v23 }
0x1533   :  { %v1721_v56 = vpop.permute.xlu2 %1720 }
0x1534   :  { %v1725_v60 = vmul.f32 %v1721_v56, %v1713_v23 }
0x1536   :  { %1730 = vrot.lane.b32.xlu1 %v1725_v60, %s3536_s17 }
0x1543   :  { %v1719_v36 = vpop.permute.xlu1 %1718 }
0x1544   :  { %v1724_v41 = vmul.f32 %v1719_v36, %v1712_v17 }
0x1546   :  { %1728 = vrot.lane.b32.xlu0 %v1724_v41, %s3536_s17 }
0x15a8   :  { %v1731_v33 = vpop.permute.xlu1 %1730 }
0x15a9   :  { %v4223_v28 = vadd.f32 %v1731_v33, %v1715_v2 }
0x15ab   :  { %3301 = vtanh.f32 %v4223_v28 }
0x15b1   :  { %v3302_v49 = vpop.eup %3301 }
0x15b2   :  { %1742 = vrot.lane.b32.xlu0 %v3302_v49, %s3535_s3 }
0x15b8   :  { %v1729_v61 = vpop.permute.xlu0 %1728 }
0x15b9   :  { %v4227_v31 = vadd.f32 %v1729_v61, %v1714_v42 }
0x15bb   :  { %3303 = vtanh.f32 %v4227_v31 }
0x15c1   :  { %v3304_v53 = vpop.eup %3303 }
0x15c2   :  { %1740 = vrot.lane.b32.xlu2 %v3304_v53, %s3535_s3 }
0x161c   :  { %v1741_v1 = vpop.permute.xlu2 %1740 }
0x161d   :  { %v4231_v47 = vmul.f32 %v1741_v1, %v1712_v17 }
0x1624   :  { %v1743_v54 = vpop.permute.xlu0 %1742 }
0x1625   :  { %v4233_v13 = vmul.f32 %v1743_v54, %v1713_v23 }
0x1627   :  { %v1758_v8 = vpack.c.bf16 %v4233_v13, %v4231_v47 }
0x1629   :  { %1760 = vrot.lane.b32.xlu1 %v1758_v8, %s3536_s17 }
0x169b   :  { %v1761_v24 = vpop.permute.xlu1 %1760 }
0x169c   :  { %3110 = vmatmul.msk.bf16.vlgmr.msra.gmra.mxu2 %vm337_vm2, %v1761_v24  ;;  %3111 = vmatmul.msk.bf16.vlgmr.msra.gmra.mxu3 %vm337_vm2, %v1761_v24 }
0x169d   :  { %2284 = vmatpush.bf16.msra.mxu3 %v4090_v39  ;;  %2271 = vmatpush.bf16.msra.mxu2 %v4100_v32 }
0x16a1   :  { %2285 = vmatpush.bf16.msra.mxu3 %v4114_v18  ;;  %2272 = vmatpush.bf16.msra.mxu2 %v4131_v38 }
0x171f   :  { %v1774_v51 = vpop.f32.mrf.mxu2  ;;  %v1787_v14 = vpop.f32.mrf.mxu3 }
0x1720   :  { %v1792_v45 = vadd.f32 %v1774_v51, %v4180_v26 }
0x1722   :  { %v1795_v57 = vmul.f32 %v1792_v45, %v3741_v44 }
0x1724   :  { %v3112_v58 = vmul.f32 -1.442695, %v1795_v57 }
0x1726   :  { %3305 = vpow2.f32 %v3112_v58 }
0x1727   :  { %v1776_v29 = vpop.f32.mrf.mxu2  ;;  %v1788_v35 = vpop.f32.mrf.mxu3 }
0x1728   :  { %v1794_v62 = vadd.f32 %v1788_v35, %v4206_v21 }
0x172a   :  { %v1796_v30 = vmul.f32 %v1794_v62, %v3741_v44 }
0x172c   :  { %v3306_v3 = vpop.eup %3305  ;;  %v3113_v4 = vmul.f32 -1.442695, %v1796_v30 }
0x172d   :  { %v1803_v5 = vadd.f32 1.0, %v3306_v3 }
0x172e   :  { %3307 = vpow2.f32 %v3113_v4 }
0x172f   :  { %3309 = vrcp.f32 %v1803_v5  ;;  %v1816_v52 = vand.u32 2147483648, %v1803_v5  ;;  %v1814_v59 = vand.u32 2147483647, %v1803_v5  ;;  %vm1810_vm11 = vweird.f32 %v1803_v5 }
0x1731   :  { %v1817_v16 = vor.u32 1.1754944e-38, %v1816_v52  ;;  %vm1815_vm13 = vcmp.eq.f32.partialorder %v1814_v59, 8.507059e+37 }
0x1734   :  { %v3308_v46 = vpop.eup %3307 }
0x1735   :  { %v3310_v10 = vpop.eup %3309  ;;  %v1804_v43 = vadd.f32 1.0, %v3308_v46 }
0x1736   :  { %v1806_v17 = vmul.f32 %v3310_v10, %v1803_v5  ;;  %vm1811_vm10 = vweird.f32 %v3310_v10 }
0x1737   :  { %3311 = vrcp.f32 %v1804_v43  ;;  %vm1812_vm12 = vmor %vm1810_vm11, %vm1811_vm10  ;;  %v1831_v36 = vand.u32 2147483648, %v1804_v43  ;;  %v1829_v33 = vand.u32 2147483647, %v1804_v43  ;;  %vm1825_vm15 = vweird.f32 %v1804_v43 }
0x1738   :  { %v1807_v26 = vsub.f32 1.0, %v1806_v17 }
0x1739   :  { %v1832_v42 = vor.u32 1.1754944e-38, %v1831_v36  ;;  %vm1830_vm3 = vcmp.eq.f32.partialorder %v1829_v33, 8.507059e+37 }
0x173a   :  { %v1808_v50 = vmul.f32 %v3310_v10, %v1807_v26 }
0x173c   :  { %v1809_v55 = vadd.f32 %v3310_v10, %v1808_v50 }
0x173d   :  { %v3312_v21 = vpop.eup %3311 }
0x173e   :  { %v1821_v63 = vmul.f32 %v3312_v21, %v1804_v43  ;;  %v1813_v0 = vsel %vm1812_vm12, %v3310_v10, %v1809_v55  ;;  %vm1826_vm14 = vweird.f32 %v3312_v21 }
0x173f   :  { %v1818_v23 = vsel %vm1815_vm13, %v1817_v16, %v1813_v0  ;;  %vm1827_vm1 = vmor %vm1825_vm15, %vm1826_vm14 }
0x1740   :  { %v1822_v56 = vsub.f32 1.0, %v1821_v63  ;;  %v1835_v60 = vmul.f32 %v1818_v23, %v3741_v44 }
0x1742   :  { %v1837_v41 = vadd.f32 %v1835_v60, %v3751_v9  ;;  %v1823_v2 = vmul.f32 %v3312_v21, %v1822_v56 }
0x1744   :  { %1843 = vrot.lane.b32.xlu2 %v1837_v41, %s3535_s3  ;;  %v1824_v49 = vadd.f32 %v3312_v21, %v1823_v2  ;;  %v1839_v45 = vmul.f32 %v1837_v41, %v4227_v31 }
0x1746   :  { %v1828_v61 = vsel %vm1827_vm1, %v3312_v21, %v1824_v49 }
0x1747   :  { %v1833_v53 = vsel %vm1830_vm3, %v1832_v42, %v1828_v61 }
0x1748   :  { %v1836_v1 = vmul.f32 %v1833_v53, %v3741_v44 }
0x174a   :  { %v1838_v54 = vadd.f32 %v1836_v1, %v3751_v9 }
0x174c   :  { %1845 = vrot.lane.b32.xlu0 %v1838_v54, %s3535_s3  ;;  %v1840_v29 = vmul.f32 %v1838_v54, %v4223_v28 }
0x179e   :  { %v1844_v8 = vpop.permute.xlu2 %1843 }
0x179f   :  { %v1849_v24 = vmul.f32 %v1844_v8, %v1837_v41 }
0x17a1   :  { %1853 = vrot.lane.b32.xlu1 %v1849_v24, %s3536_s17 }
0x17be   :  { %v1846_v51 = vpop.permute.xlu0 %1845 }
0x17bf   :  { %v1850_v14 = vmul.f32 %v1846_v51, %v1838_v54 }
0x17c1   :  { %1855 = vrot.lane.b32.xlu2 %v1850_v14, %s3536_s17 }
0x1813   :  { %v1854_v57 = vpop.permute.xlu1 %1853 }
0x1814   :  { %v4257_v58 = vadd.f32 %v1854_v57, %v1839_v45 }
0x1816   :  { %3313 = vtanh.f32 %v4257_v58 }
0x181b   :  { %v1856_v35 = vpop.permute.xlu2 %1855 }
0x181c   :  { %v3314_v62 = vpop.eup %3313  ;;  %v4261_v30 = vadd.f32 %v1856_v35, %v1840_v29 }
0x181d   :  { %1865 = vrot.lane.b32.xlu0 %v3314_v62, %s3535_s3 }
0x181e   :  { %3315 = vtanh.f32 %v4261_v30 }
0x1824   :  { %v3316_v3 = vpop.eup %3315 }
0x1825   :  { %1867 = vrot.lane.b32.xlu1 %v3316_v3, %s3535_s3 }
0x188f   :  { %v1866_v4 = vpop.permute.xlu0 %1865 }
0x1890   :  { %v4266_v5 = vmul.f32 %v1866_v4, %v1837_v41 }
0x1897   :  { %v1868_v31 = vpop.permute.xlu1 %1867 }
0x1898   :  { %v4268_v46 = vmul.f32 %v1868_v31, %v1838_v54 }
0x189a   :  { %v1883_v28 = vpack.c.bf16 %v4268_v46, %v4266_v5 }
0x189c   :  { %1885 = vrot.lane.b32.xlu2 %v1883_v28, %s3536_s17 }
0x18f6   :  { %v1886_v10 = vpop.permute.xlu2 %1885 }
0x18f7   :  { %3114 = vmatmul.msk.bf16.vlgmr.msrb.gmra.mxu0 %vm337_vm2, %v1886_v10  ;;  %3115 = vmatmul.msk.bf16.vlgmr.msrb.gmra.mxu1 %vm337_vm2, %v1886_v10 }
0x18f8   :  { %2409 = vmatpush.bf16.msrb.mxu1 %v4090_v39  ;;  %2396 = vmatpush.bf16.msrb.mxu0 %v4100_v32 }
0x18fc   :  { %2410 = vmatpush.bf16.msrb.mxu1 %v4114_v18  ;;  %2397 = vmatpush.bf16.msrb.mxu0 %v4131_v38 }
0x1974   :  { %v1899_v43 = vpop.f32.mrf.mxu0  ;;  %v1912_v17 = vpop.f32.mrf.mxu1 }
0x1975   :  { %v1917_v26 = vadd.f32 %v1899_v43, %v4185_v37 }
0x1977   :  { %v1920_v52 = vmul.f32 %v1917_v26, %v3741_v44 }
0x1979   :  { %v3116_v50 = vmul.f32 -1.442695, %v1920_v52 }
0x197b   :  { %3317 = vpow2.f32 %v3116_v50 }
0x197c   :  { %v1901_v59 = vpop.f32.mrf.mxu0  ;;  %v1913_v55 = vpop.f32.mrf.mxu1 }
0x197d   :  { %v1919_v21 = vadd.f32 %v1913_v55, %v4201_v12 }
0x197f   :  { %v1921_v16 = vmul.f32 %v1919_v21, %v3741_v44 }
0x1981   :  { %v3318_v63 = vpop.eup %3317  ;;  %v3117_v0 = vmul.f32 -1.442695, %v1921_v16 }
0x1982   :  { %v1928_v23 = vadd.f32 1.0, %v3318_v63 }
0x1983   :  { %3319 = vpow2.f32 %v3117_v0 }
0x1984   :  { %3321 = vrcp.f32 %v1928_v23  ;;  %v1941_v2 = vand.u32 2147483648, %v1928_v23  ;;  %v1939_v49 = vand.u32 2147483647, %v1928_v23  ;;  %vm1935_vm5 = vweird.f32 %v1928_v23 }
0x1986   :  { %v1942_v61 = vor.u32 1.1754944e-38, %v1941_v2  ;;  %vm1940_vm7 = vcmp.eq.f32.partialorder %v1939_v49, 8.507059e+37 }
0x1989   :  { %v3320_v56 = vpop.eup %3319 }
0x198a   :  { %v3322_v60 = vpop.eup %3321  ;;  %v1929_v36 = vadd.f32 1.0, %v3320_v56 }
0x198b   :  { %v1931_v41 = vmul.f32 %v3322_v60, %v1928_v23  ;;  %vm1936_vm4 = vweird.f32 %v3322_v60 }
0x198c   :  { %3323 = vrcp.f32 %v1929_v36  ;;  %vm1937_vm6 = vmor %vm1935_vm5, %vm1936_vm4  ;;  %v1956_v51 = vand.u32 2147483648, %v1929_v36  ;;  %v1954_v57 = vand.u32 2147483647, %v1929_v36  ;;  %vm1950_vm8 = vweird.f32 %v1929_v36 }
0x198d   :  { %v1932_v37 = vsub.f32 1.0, %v1931_v41 }
0x198e   :  { %v1957_v35 = vor.u32 1.1754944e-38, %v1956_v51  ;;  %vm1955_vm10 = vcmp.eq.f32.partialorder %v1954_v57, 8.507059e+37 }
0x198f   :  { %v1933_v33 = vmul.f32 %v3322_v60, %v1932_v37 }
0x1991   :  { %v1934_v42 = vadd.f32 %v3322_v60, %v1933_v33 }
0x1992   :  { %v3324_v12 = vpop.eup %3323 }
0x1993   :  { %v1946_v53 = vmul.f32 %v3324_v12, %v1929_v36  ;;  %v1938_v1 = vsel %vm1937_vm6, %v3322_v60, %v1934_v42  ;;  %vm1951_vm0 = vweird.f32 %v3324_v12 }
0x1994   :  { %v1943_v54 = vsel %vm1940_vm7, %v1942_v61, %v1938_v1  ;;  %vm1952_vm9 = vmor %vm1950_vm8, %vm1951_vm0 }
0x1995   :  { %v1947_v8 = vsub.f32 1.0, %v1946_v53  ;;  %v1960_v24 = vmul.f32 %v1943_v54, %v3741_v44 }
0x1997   :  { %v1962_v14 = vadd.f32 %v1960_v24, %v3751_v9  ;;  %v1948_v45 = vmul.f32 %v3324_v12, %v1947_v8 }
0x1999   :  { %1968 = vrot.lane.b32.xlu0 %v1962_v14, %s3535_s3  ;;  %v1949_v29 = vadd.f32 %v3324_v12, %v1948_v45  ;;  %v1964_v26 = vmul.f32 %v1962_v14, %v4257_v58 }
0x199b   :  { %v1953_v62 = vsel %vm1952_vm9, %v3324_v12, %v1949_v29 }
0x199c   :  { %v1958_v3 = vsel %vm1955_vm10, %v1957_v35, %v1953_v62 }
0x199d   :  { %v1961_v4 = vmul.f32 %v1958_v3, %v3741_v44 }
0x199f   :  { %v1963_v31 = vadd.f32 %v1961_v4, %v3751_v9 }
0x19a1   :  { %1970 = vrot.lane.b32.xlu1 %v1963_v31, %s3535_s3  ;;  %v1965_v55 = vmul.f32 %v1963_v31, %v4261_v30 }
0x1a0b   :  { %v1969_v28 = vpop.permute.xlu0 %1968 }
0x1a0c   :  { %v1974_v10 = vmul.f32 %v1969_v28, %v1962_v14 }
0x1a0e   :  { %1978 = vrot.lane.b32.xlu2 %v1974_v10, %s3536_s17 }
0x1a13   :  { %v1971_v43 = vpop.permute.xlu1 %1970 }
0x1a14   :  { %v1975_v17 = vmul.f32 %v1971_v43, %v1963_v31 }
0x1a16   :  { %1980 = vrot.lane.b32.xlu0 %v1975_v17, %s3536_s17 }
0x1a68   :  { %v1979_v52 = vpop.permute.xlu2 %1978 }
0x1a69   :  { %v4292_v50 = vadd.f32 %v1979_v52, %v1964_v26 }
0x1a6b   :  { %3325 = vtanh.f32 %v4292_v50 }
0x1a71   :  { %v3326_v59 = vpop.eup %3325 }
0x1a72   :  { %1990 = vrot.lane.b32.xlu1 %v3326_v59, %s3535_s3 }
0x1a88   :  { %v1981_v21 = vpop.permute.xlu0 %1980 }
0x1a89   :  { %v4297_v16 = vadd.f32 %v1981_v21, %v1965_v55 }
0x1a8b   :  { %3327 = vtanh.f32 %v4297_v16 }
0x1a91   :  { %v3328_v63 = vpop.eup %3327 }
0x1a92   :  { %1992 = vrot.lane.b32.xlu2 %v3328_v63, %s3535_s3 }
0x1ae4   :  { %v1991_v0 = vpop.permute.xlu1 %1990 }
0x1ae5   :  { %v4301_v23 = vmul.f32 %v1991_v0, %v1962_v14 }
0x1aec   :  { %v1993_v58 = vpop.permute.xlu2 %1992 }
0x1aed   :  { %v4303_v56 = vmul.f32 %v1993_v58, %v1963_v31 }
0x1aef   :  { %v2008_v60 = vpack.c.bf16 %v4303_v56, %v4301_v23 }
0x1af1   :  { %2010 = vrot.lane.b32.xlu0 %v2008_v60, %s3536_s17 }
0x1b63   :  { %v2011_v30 = vpop.permute.xlu0 %2010 }
0x1b64   :  { %3118 = vmatmul.msk.bf16.vlgmr.msrb.gmra.mxu2 %vm337_vm2, %v2011_v30  ;;  %3119 = vmatmul.msk.bf16.vlgmr.msrb.gmra.mxu3 %vm337_vm2, %v2011_v30 }
0x1b65   :  { %2534 = vmatpush.bf16.msrb.mxu3 %v4090_v39  ;;  %2521 = vmatpush.bf16.msrb.mxu2 %v4100_v32 }
0x1b69   :  { %2535 = vmatpush.bf16.msrb.mxu3 %v4114_v18  ;;  %2522 = vmatpush.bf16.msrb.mxu2 %v4131_v38 }
0x1be7   :  { %v2024_v36 = vpop.f32.mrf.mxu2  ;;  %v2037_v41 = vpop.f32.mrf.mxu3 }
0x1be8   :  { %v2042_v37 = vadd.f32 %v2024_v36, %v4190_v11 }
0x1bea   :  { %v2045_v2 = vmul.f32 %v2042_v37, %v3741_v44 }
0x1bec   :  { %v3120_v33 = vmul.f32 -1.442695, %v2045_v2 }
0x1bee   :  { %3329 = vpow2.f32 %v3120_v33 }
0x1bef   :  { %v2026_v49 = vpop.f32.mrf.mxu2  ;;  %v2038_v42 = vpop.f32.mrf.mxu3 }
0x1bf0   :  { %v2044_v12 = vadd.f32 %v2038_v42, %v4196_v34 }
0x1bf2   :  { %v2046_v39 = vmul.f32 %v2044_v12, %v3741_v44 }
0x1bf4   :  { %v3330_v61 = vpop.eup %3329  ;;  %v3121_v32 = vmul.f32 -1.442695, %v2046_v39 }
0x1bf5   :  { %v2053_v53 = vadd.f32 1.0, %v3330_v61 }
0x1bf6   :  { %3331 = vpow2.f32 %v3121_v32 }
0x1bf7   :  { %3333 = vrcp.f32 %v2053_v53  ;;  %v2066_v8 = vand.u32 2147483648, %v2053_v53  ;;  %v2064_v51 = vand.u32 2147483647, %v2053_v53  ;;  %vm2060_vm12 = vweird.f32 %v2053_v53 }
0x1bf9   :  { %v2067_v45 = vor.u32 1.1754944e-38, %v2066_v8  ;;  %vm2065_vm14 = vcmp.eq.f32.partialorder %v2064_v51, 8.507059e+37 }
0x1bfc   :  { %v3332_v18 = vpop.eup %3331 }
0x1bfd   :  { %v3334_v38 = vpop.eup %3333  ;;  %v2054_v1 = vadd.f32 1.0, %v3332_v18 }
0x1bfe   :  { %v2056_v54 = vmul.f32 %v3334_v38, %v2053_v53  ;;  %vm2061_vm11 = vweird.f32 %v3334_v38 }
0x1bff   :  { %3335 = vrcp.f32 %v2054_v1  ;;  %vm2062_vm13 = vmor %vm2060_vm12, %vm2061_vm11  ;;  %v2081_v4 = vand.u32 2147483648, %v2054_v1  ;;  %v2079_v10 = vand.u32 2147483647, %v2054_v1  ;;  %vm2075_vm1 = vweird.f32 %v2054_v1 }
0x1c00   :  { %v2057_v11 = vsub.f32 1.0, %v2056_v54 }
0x1c01   :  { %v2082_v17 = vor.u32 1.1754944e-38, %v2081_v4  ;;  %vm2080_vm4 = vcmp.eq.f32.partialorder %v2079_v10, 8.507059e+37 }
0x1c02   :  { %v2058_v24 = vmul.f32 %v3334_v38, %v2057_v11 }
0x1c04   :  { %v2059_v14 = vadd.f32 %v3334_v38, %v2058_v24 }
0x1c05   :  { %v3336_v34 = vpop.eup %3335 }
0x1c06   :  { %v2071_v57 = vmul.f32 %v3336_v34, %v2054_v1  ;;  %v2063_v29 = vsel %vm2062_vm13, %v3334_v38, %v2059_v14  ;;  %vm2076_vm15 = vweird.f32 %v3336_v34 }
0x1c07   :  { %v2068_v35 = vsel %vm2065_vm14, %v2067_v45, %v2063_v29  ;;  %vm2077_vm3 = vmor %vm2075_vm1, %vm2076_vm15 }
0x1c08   :  { %v2072_v62 = vsub.f32 1.0, %v2071_v57  ;;  %v2085_v3 = vmul.f32 %v2068_v35, %v3741_v44 }
0x1c0a   :  { %v2087_v31 = vadd.f32 %v2085_v3, %v3751_v9  ;;  %v2073_v28 = vmul.f32 %v3336_v34, %v2072_v62 }
0x1c0c   :  { %2093 = vrot.lane.b32.xlu1 %v2087_v31, %s3535_s3  ;;  %v2074_v43 = vadd.f32 %v3336_v34, %v2073_v28  ;;  %v2089_v37 = vmul.f32 %v2087_v31, %v4292_v50 }
0x1c0e   :  { %v2078_v26 = vsel %vm2077_vm3, %v3336_v34, %v2074_v43 }
0x1c0f   :  { %v2083_v52 = vsel %vm2080_vm4, %v2082_v17, %v2078_v26 }
0x1c10   :  { %v2086_v59 = vmul.f32 %v2083_v52, %v3741_v44 }
0x1c12   :  { %v2088_v55 = vadd.f32 %v2086_v59, %v3751_v9 }
0x1c14   :  { %2095 = vrot.lane.b32.xlu2 %v2088_v55, %s3535_s3  ;;  %v2090_v60 = vmul.f32 %v2088_v55, %v4297_v16 }
0x1c6e   :  { %v2096_v21 = vpop.permute.xlu2 %2095 }
0x1c6f   :  { %v2100_v63 = vmul.f32 %v2096_v21, %v2088_v55 }
0x1c71   :  { %2105 = vrot.lane.b32.xlu1 %v2100_v63, %s3536_s17 }
0x1c7e   :  { %v2094_v0 = vpop.permute.xlu1 %2093 }
0x1c7f   :  { %v2099_v58 = vmul.f32 %v2094_v0, %v2087_v31 }
0x1c81   :  { %2103 = vrot.lane.b32.xlu0 %v2099_v58, %s3536_s17 }
0x1ce3   :  { %v2106_v30 = vpop.permute.xlu1 %2105 }
0x1ce4   :  { %v4327_v36 = vadd.f32 %v2106_v30, %v2090_v60 }
0x1ce6   :  { %3337 = vtanh.f32 %v4327_v36 }
0x1cec   :  { %v3338_v41 = vpop.eup %3337 }
0x1ced   :  { %2117 = vrot.lane.b32.xlu0 %v3338_v41, %s3535_s3 }
0x1cf3   :  { %v2104_v2 = vpop.permute.xlu0 %2103 }
0x1cf4   :  { %v4332_v33 = vadd.f32 %v2104_v2, %v2089_v37 }
0x1cf6   :  { %3339 = vtanh.f32 %v4332_v33 }
0x1cfc   :  { %v3340_v49 = vpop.eup %3339 }
0x1cfd   :  { %2115 = vrot.lane.b32.xlu2 %v3340_v49, %s3535_s3 }
0x1d57   :  { %v2116_v42 = vpop.permute.xlu2 %2115 }
0x1d58   :  { %v4336_v12 = vmul.f32 %v2116_v42, %v2087_v31 }
0x1d5f   :  { %v2118_v16 = vpop.permute.xlu0 %2117 }
0x1d60   :  { %v4338_v39 = vmul.f32 %v2118_v16, %v2088_v55 }
0x1d62   :  { %v2133_v61 = vpack.c.bf16 %v4338_v39, %v4336_v12 }
0x1d64   :  { %2135 = vrot.lane.b32.xlu1 %v2133_v61, %s3536_s17 }
0x1dd6   :  { %v2136_v50 = vpop.permute.xlu1 %2135 }
0x1dd7   :  { %3122 = vmatmul.msk.bf16.vlgmr.msra.gmra.mxu0 %vm337_vm2, %v2136_v50  ;;  %3123 = vmatmul.msk.bf16.vlgmr.msra.gmra.mxu1 %vm337_vm2, %v2136_v50 }
0x1e54   :  { %v2149_v32 = vpop.f32.mrf.mxu0  ;;  %v2162_v53 = vpop.f32.mrf.mxu1 }
0x1e55   :  { %v2167_v18 = vadd.f32 %v2149_v32, %v4198_v40 }
0x1e57   :  { %v2170_v38 = vmul.f32 %v2167_v18, %v3741_v44 }
0x1e59   :  { %v3124_v1 = vmul.f32 -1.442695, %v2170_v38 }
0x1e5b   :  { %3341 = vpow2.f32 %v3124_v1 }
0x1e5c   :  { %v2151_v54 = vpop.f32.mrf.mxu0  ;;  %v2163_v11 = vpop.f32.mrf.mxu1 }
0x1e5d   :  { %v2169_v8 = vadd.f32 %v2163_v11, %v4193_v20 }
0x1e5f   :  { %v2171_v24 = vmul.f32 %v2169_v8, %v3741_v44 }
0x1e61   :  { %v3342_v51 = vpop.eup %3341  ;;  %v3125_v14 = vmul.f32 -1.442695, %v2171_v24 }
0x1e62   :  { %v2178_v34 = vadd.f32 1.0, %v3342_v51 }
0x1e63   :  { %3343 = vpow2.f32 %v3125_v14 }
0x1e64   :  { %3345 = vrcp.f32 %v2178_v34  ;;  %v2191_v62 = vand.u32 2147483648, %v2178_v34  ;;  %v2189_v4 = vand.u32 2147483647, %v2178_v34  ;;  %vm2185_vm6 = vweird.f32 %v2178_v34 }
0x1e66   :  { %v2192_v28 = vor.u32 1.1754944e-38, %v2191_v62  ;;  %vm2190_vm0 = vcmp.eq.f32.partialorder %v2189_v4, 8.507059e+37 }
0x1e69   :  { %v3344_v45 = vpop.eup %3343 }
0x1e6a   :  { %v3346_v57 = vpop.eup %3345  ;;  %v2179_v29 = vadd.f32 1.0, %v3344_v45 }
0x1e6b   :  { %v2181_v35 = vmul.f32 %v3346_v57, %v2178_v34  ;;  %vm2186_vm5 = vweird.f32 %v3346_v57 }
0x1e6c   :  { %3347 = vrcp.f32 %v2179_v29  ;;  %vm2187_vm7 = vmor %vm2185_vm6, %vm2186_vm5  ;;  %v2206_v59 = vand.u32 2147483648, %v2179_v29  ;;  %v2204_v63 = vand.u32 2147483647, %v2179_v29  ;;  %vm2200_vm9 = vweird.f32 %v2179_v29 }
0x1e6d   :  { %v2182_v40 = vsub.f32 1.0, %v2181_v35 }
0x1e6e   :  { %v2207_v58 = vor.u32 1.1754944e-38, %v2206_v59  ;;  %vm2205_vm11 = vcmp.eq.f32.partialorder %v2204_v63, 8.507059e+37 }
0x1e6f   :  { %v2183_v3 = vmul.f32 %v3346_v57, %v2182_v40 }
0x1e71   :  { %v2184_v31 = vadd.f32 %v3346_v57, %v2183_v3 }
0x1e72   :  { %v3348_v20 = vpop.eup %3347 }
0x1e73   :  { %v2196_v10 = vmul.f32 %v3348_v20, %v2179_v29  ;;  %v2188_v43 = vsel %vm2187_vm7, %v3346_v57, %v2184_v31  ;;  %vm2201_vm8 = vweird.f32 %v3348_v20 }
0x1e74   :  { %v2193_v17 = vsel %vm2190_vm0, %v2192_v28, %v2188_v43  ;;  %vm2202_vm10 = vmor %vm2200_vm9, %vm2201_vm8 }
0x1e75   :  { %v2197_v26 = vsub.f32 1.0, %v2196_v10  ;;  %v2210_v52 = vmul.f32 %v2193_v17, %v3741_v44 }
0x1e77   :  { %v2212_v55 = vadd.f32 %v2210_v52, %v3751_v9  ;;  %v2198_v21 = vmul.f32 %v3348_v20, %v2197_v26 }
0x1e79   :  { %2218 = vrot.lane.b32.xlu2 %v2212_v55, %s3535_s3  ;;  %v2199_v0 = vadd.f32 %v3348_v20, %v2198_v21  ;;  %v2214_v61 = vmul.f32 %v2212_v55, %v4332_v33 }
0x1e7b   :  { %v2203_v60 = vsel %vm2202_vm10, %v3348_v20, %v2199_v0 }
0x1e7c   :  { %v2208_v30 = vsel %vm2205_vm11, %v2207_v58, %v2203_v60 }
0x1e7d   :  { %v2211_v41 = vmul.f32 %v2208_v30, %v3741_v44 }
0x1e7f   :  { %v2213_v37 = vadd.f32 %v2211_v41, %v3751_v9 }
0x1e81   :  { %2220 = vrot.lane.b32.xlu0 %v2213_v37, %s3535_s3  ;;  %v2215_v53 = vmul.f32 %v2213_v37, %v4327_v36 }
0x1ed3   :  { %v2219_v2 = vpop.permute.xlu2 %2218 }
0x1ed4   :  { %v2224_v49 = vmul.f32 %v2219_v2, %v2212_v55 }
0x1ed6   :  { %2228 = vrot.lane.b32.xlu1 %v2224_v49, %s3536_s17 }
0x1ef3   :  { %v2221_v42 = vpop.permute.xlu0 %2220 }
0x1ef4   :  { %v2225_v16 = vmul.f32 %v2221_v42, %v2213_v37 }
0x1ef6   :  { %2230 = vrot.lane.b32.xlu2 %v2225_v16, %s3536_s17 }
0x1f48   :  { %v2229_v50 = vpop.permute.xlu1 %2228 }
0x1f49   :  { %v4358_v32 = vadd.f32 %v2229_v50, %v2214_v61 }
0x1f4b   :  { %3349 = vtanh.f32 %v4358_v32 }
0x1f50   :  { %v2231_v18 = vpop.permute.xlu2 %2230 }
0x1f51   :  { %v3350_v38 = vpop.eup %3349  ;;  %v4362_v1 = vadd.f32 %v2231_v18, %v2215_v53 }
0x1f52   :  { %2240 = vrot.lane.b32.xlu0 %v3350_v38, %s3535_s3 }
0x1f53   :  { %3351 = vtanh.f32 %v4362_v1 }
0x1f59   :  { %v3352_v54 = vpop.eup %3351 }
0x1f5a   :  { %2242 = vrot.lane.b32.xlu1 %v3352_v54, %s3535_s3 }
0x1fc4   :  { %v2241_v11 = vpop.permute.xlu0 %2240 }
0x1fc5   :  { %v4367_v8 = vmul.f32 %v2241_v11, %v2212_v55 }
0x1fcc   :  { %v2243_v33 = vpop.permute.xlu1 %2242 }
0x1fcd   :  { %v4369_v24 = vmul.f32 %v2243_v33, %v2213_v37 }
0x1fcf   :  { %v2258_v36 = vpack.c.bf16 %v4369_v24, %v4367_v8 }
0x1fd1   :  { %2260 = vrot.lane.b32.xlu2 %v2258_v36, %s3536_s17 }
0x202b   :  { %v2261_v51 = vpop.permute.xlu2 %2260 }
0x202c   :  { %3126 = vmatmul.msk.bf16.vlgmr.msra.gmra.mxu2 %vm337_vm2, %v2261_v51  ;;  %3127 = vmatmul.msk.bf16.vlgmr.msra.gmra.mxu3 %vm337_vm2, %v2261_v51 }
0x20af   :  { %v2274_v14 = vpop.f32.mrf.mxu2  ;;  %v2287_v34 = vpop.f32.mrf.mxu3 }
0x20b0   :  { %v2292_v45 = vadd.f32 %v2274_v14, %v4203_v15 }
0x20b2   :  { %v2295_v57 = vmul.f32 %v2292_v45, %v3741_v44 }
0x20b4   :  { %v3128_v29 = vmul.f32 -1.442695, %v2295_v57 }
0x20b6   :  { %3353 = vpow2.f32 %v3128_v29 }
0x20b7   :  { %v2276_v35 = vpop.f32.mrf.mxu2  ;;  %v2288_v40 = vpop.f32.mrf.mxu3 }
0x20b8   :  { %v2294_v62 = vadd.f32 %v2288_v40, %v4188_v48 }
0x20ba   :  { %v2296_v3 = vmul.f32 %v2294_v62, %v3741_v44 }
0x20bc   :  { %v3354_v4 = vpop.eup %3353  ;;  %v3129_v31 = vmul.f32 -1.442695, %v2296_v3 }
0x20bd   :  { %v2303_v20 = vadd.f32 1.0, %v3354_v4 }
0x20be   :  { %3355 = vpow2.f32 %v3129_v31 }
0x20bf   :  { %3357 = vrcp.f32 %v2303_v20  ;;  %v2316_v26 = vand.u32 2147483648, %v2303_v20  ;;  %v2314_v59 = vand.u32 2147483647, %v2303_v20  ;;  %vm2310_vm13 = vweird.f32 %v2303_v20 }
0x20c1   :  { %v2317_v21 = vor.u32 1.1754944e-38, %v2316_v26  ;;  %vm2315_vm15 = vcmp.eq.f32.partialorder %v2314_v59, 8.507059e+37 }
0x20c4   :  { %v3356_v28 = vpop.eup %3355 }
0x20c5   :  { %v3358_v10 = vpop.eup %3357  ;;  %v2304_v43 = vadd.f32 1.0, %v3356_v28 }
0x20c6   :  { %v2306_v17 = vmul.f32 %v3358_v10, %v2303_v20  ;;  %vm2311_vm12 = vweird.f32 %v3358_v10 }
0x20c7   :  { %3359 = vrcp.f32 %v2304_v43  ;;  %vm2312_vm14 = vmor %vm2310_vm13, %vm2311_vm12  ;;  %v2331_v41 = vand.u32 2147483648, %v2304_v43  ;;  %v2329_v49 = vand.u32 2147483647, %v2304_v43  ;;  %vm2325_vm3 = vweird.f32 %v2304_v43 }
0x20c8   :  { %v2307_v15 = vsub.f32 1.0, %v2306_v17 }
0x20c9   :  { %v2332_v16 = vor.u32 1.1754944e-38, %v2331_v41  ;;  %vm2330_vm5 = vcmp.eq.f32.partialorder %v2329_v49, 8.507059e+37 }
0x20ca   :  { %v2308_v52 = vmul.f32 %v3358_v10, %v2307_v15 }
0x20cc   :  { %v2309_v55 = vadd.f32 %v3358_v10, %v2308_v52 }
0x20cd   :  { %v3360_v48 = vpop.eup %3359 }
0x20ce   :  { %v2321_v63 = vmul.f32 %v3360_v48, %v2304_v43  ;;  %v2313_v0 = vsel %vm2312_vm14, %v3358_v10, %v2309_v55  ;;  %vm2326_vm1 = vweird.f32 %v3360_v48 }
0x20cf   :  { %v2318_v58 = vsel %vm2315_vm15, %v2317_v21, %v2313_v0  ;;  %vm2327_vm4 = vmor %vm2325_vm3, %vm2326_vm1 }
0x20d0   :  { %v2322_v60 = vsub.f32 1.0, %v2321_v63  ;;  %v2335_v30 = vmul.f32 %v2318_v58, %v3741_v44 }
0x20d2   :  { %v2337_v37 = vadd.f32 %v2335_v30, %v3751_v9  ;;  %v2323_v2 = vmul.f32 %v3360_v48, %v2322_v60 }
0x20d4   :  { %2343 = vrot.lane.b32.xlu0 %v2337_v37, %s3535_s3  ;;  %v2324_v42 = vadd.f32 %v3360_v48, %v2323_v2  ;;  %v2339_v36 = vmul.f32 %v2337_v37, %v4358_v32 }
0x20d6   :  { %v2328_v61 = vsel %vm2327_vm4, %v3360_v48, %v2324_v42 }
0x20d7   :  { %v2333_v50 = vsel %vm2330_vm5, %v2332_v16, %v2328_v61 }
0x20d8   :  { %v2336_v53 = vmul.f32 %v2333_v50, %v3741_v44 }
0x20da   :  { %v2338_v18 = vadd.f32 %v2336_v53, %v3751_v9 }
0x20dc   :  { %2345 = vrot.lane.b32.xlu1 %v2338_v18, %s3535_s3  ;;  %v2340_v45 = vmul.f32 %v2338_v18, %v4362_v1 }
0x2146   :  { %v2344_v38 = vpop.permute.xlu0 %2343 }
0x2147   :  { %v2349_v54 = vmul.f32 %v2344_v38, %v2337_v37 }
0x2149   :  { %2353 = vrot.lane.b32.xlu2 %v2349_v54, %s3536_s17 }
0x214e   :  { %v2346_v11 = vpop.permute.xlu1 %2345 }
0x214f   :  { %v2350_v33 = vmul.f32 %v2346_v11, %v2338_v18 }
0x2151   :  { %2355 = vrot.lane.b32.xlu0 %v2350_v33, %s3536_s17 }
0x21a3   :  { %v2354_v51 = vpop.permute.xlu2 %2353 }
0x21a4   :  { %v4389_v14 = vadd.f32 %v2354_v51, %v2339_v36 }
0x21a6   :  { %3361 = vtanh.f32 %v4389_v14 }
0x21ac   :  { %v3362_v34 = vpop.eup %3361 }
0x21ad   :  { %2365 = vrot.lane.b32.xlu1 %v3362_v34, %s3535_s3 }
0x21c3   :  { %v2356_v57 = vpop.permute.xlu0 %2355 }
0x21c4   :  { %v4394_v29 = vadd.f32 %v2356_v57, %v2340_v45 }
0x21c6   :  { %3363 = vtanh.f32 %v4394_v29 }
0x21cc   :  { %v3364_v35 = vpop.eup %3363 }
0x21cd   :  { %2367 = vrot.lane.b32.xlu2 %v3364_v35, %s3535_s3 }
0x221f   :  { %v2366_v40 = vpop.permute.xlu1 %2365 }
0x2220   :  { %v4398_v62 = vmul.f32 %v2366_v40, %v2337_v37 }
0x2227   :  { %v2368_v32 = vpop.permute.xlu2 %2367 }
0x2228   :  { %v4400_v3 = vmul.f32 %v2368_v32, %v2338_v18 }
0x222a   :  { %v2383_v4 = vpack.c.bf16 %v4400_v3, %v4398_v62 }
0x222c   :  { %2385 = vrot.lane.b32.xlu0 %v2383_v4, %s3536_s17 }
0x229e   :  { %v2386_v1 = vpop.permute.xlu0 %2385 }
0x229f   :  { %3130 = vmatmul.msk.bf16.vlgmr.msrb.gmra.mxu0 %vm337_vm2, %v2386_v1  ;;  %3131 = vmatmul.msk.bf16.vlgmr.msrb.gmra.mxu1 %vm337_vm2, %v2386_v1 }
0x231c   :  { %v2399_v31 = vpop.f32.mrf.mxu0  ;;  %v2412_v20 = vpop.f32.mrf.mxu1 }
0x231d   :  { %v2417_v28 = vadd.f32 %v2399_v31, %v4208_v19 }
0x231f   :  { %v2420_v10 = vmul.f32 %v2417_v28, %v3741_v44 }
0x2321   :  { %v3132_v43 = vmul.f32 -1.442695, %v2420_v10 }
0x2323   :  { %3365 = vpow2.f32 %v3132_v43 }
0x2324   :  { %v2401_v17 = vpop.f32.mrf.mxu0  ;;  %v2413_v15 = vpop.f32.mrf.mxu1 }
0x2325   :  { %v2419_v26 = vadd.f32 %v2413_v15, %v4183_v27 }
0x2327   :  { %v2421_v52 = vmul.f32 %v2419_v26, %v3741_v44 }
0x2329   :  { %v3366_v59 = vpop.eup %3365  ;;  %v3133_v55 = vmul.f32 -1.442695, %v2421_v52 }
0x232a   :  { %v2428_v48 = vadd.f32 1.0, %v3366_v59 }
0x232b   :  { %3367 = vpow2.f32 %v3133_v55 }
0x232c   :  { %3369 = vrcp.f32 %v2428_v48  ;;  %v2441_v60 = vand.u32 2147483648, %v2428_v48  ;;  %v2439_v41 = vand.u32 2147483647, %v2428_v48  ;;  %vm2435_vm7 = vweird.f32 %v2428_v48 }
0x232e   :  { %v2442_v2 = vor.u32 1.1754944e-38, %v2441_v60  ;;  %vm2440_vm8 = vcmp.eq.f32.partialorder %v2439_v41, 8.507059e+37 }
0x2331   :  { %v3368_v21 = vpop.eup %3367 }
0x2332   :  { %v3370_v63 = vpop.eup %3369  ;;  %v2429_v0 = vadd.f32 1.0, %v3368_v21 }
0x2333   :  { %v2431_v58 = vmul.f32 %v3370_v63, %v2428_v48  ;;  %vm2436_vm6 = vweird.f32 %v3370_v63 }
0x2334   :  { %3371 = vrcp.f32 %v2429_v0  ;;  %vm2437_vm0 = vmor %vm2435_vm7, %vm2436_vm6  ;;  %v2456_v53 = vand.u32 2147483648, %v2429_v0  ;;  %v2454_v54 = vand.u32 2147483647, %v2429_v0  ;;  %vm2450_vm10 = vweird.f32 %v2429_v0 }
0x2335   :  { %v2432_v19 = vsub.f32 1.0, %v2431_v58  ;;  %vm2787_vm7 = vcmp.eq.s32.totalorder %v3685_v22, 0 }
0x2336   :  { %v2457_v33 = vor.u32 1.1754944e-38, %v2456_v53  ;;  %vm2455_vm12 = vcmp.eq.f32.partialorder %v2454_v54, 8.507059e+37 }
0x2337   :  { %v2433_v30 = vmul.f32 %v3370_v63, %v2432_v19 }
0x2339   :  { %v2434_v37 = vadd.f32 %v3370_v63, %v2433_v30 }
0x233a   :  { %v3372_v27 = vpop.eup %3371 }
0x233b   :  { %v2446_v49 = vmul.f32 %v3372_v27, %v2429_v0  ;;  %v2438_v42 = vsel %vm2437_vm0, %v3370_v63, %v2434_v37  ;;  %vm2451_vm9 = vweird.f32 %v3372_v27  ;;  %vm2819_vm0 = vcmp.eq.s32.totalorder %v3685_v22, 2 }
0x233c   :  { %v2443_v16 = vsel %vm2440_vm8, %v2442_v2, %v2438_v42  ;;  %vm2452_vm11 = vmor %vm2450_vm10, %vm2451_vm9  ;;  %vm2835_vm8 = vcmp.eq.s32.totalorder %v3685_v22, 3  ;;  %vm2851_vm9 = vcmp.eq.s32.totalorder %v3685_v22, 4  ;;  %vm2867_vm10 = vcmp.eq.s32.totalorder %v3685_v22, 5 }
0x233d   :  { %v2447_v61 = vsub.f32 1.0, %v2446_v49  ;;  %v2460_v50 = vmul.f32 %v2443_v16, %v3741_v44 }
0x233f   :  { %v2462_v18 = vadd.f32 %v2460_v50, %v3751_v9  ;;  %v2448_v38 = vmul.f32 %v3372_v27, %v2447_v61 }
0x2341   :  { %2468 = vrot.lane.b32.xlu1 %v2462_v18, %s3535_s3  ;;  %v2449_v11 = vadd.f32 %v3372_v27, %v2448_v38  ;;  %v2464_v28 = vmul.f32 %v2462_v18, %v4389_v14 }
0x2343   :  { %v2453_v36 = vsel %vm2452_vm11, %v3372_v27, %v2449_v11  ;;  %vm2883_vm11 = vcmp.eq.s32.totalorder %v3685_v22, 6 }
0x2344   :  { %v2458_v51 = vsel %vm2455_vm12, %v2457_v33, %v2453_v36  ;;  %vm2899_vm12 = vcmp.eq.s32.totalorder %v3685_v22, 7 }
0x2345   :  { %v2461_v34 = vmul.f32 %v2458_v51, %v3741_v44 }
0x2347   :  { %v2463_v45 = vadd.f32 %v2461_v34, %v3751_v9 }
0x2349   :  { %2470 = vrot.lane.b32.xlu2 %v2463_v45, %s3535_s3  ;;  %v2465_v4 = vmul.f32 %v2463_v45, %v4394_v29 }
0x23a3   :  { %v2471_v57 = vpop.permute.xlu2 %2470 }
0x23a4   :  { %v2475_v35 = vmul.f32 %v2471_v57, %v2463_v45 }
0x23a6   :  { %2480 = vrot.lane.b32.xlu1 %v2475_v35, %s3536_s17 }
0x23b3   :  { %v2469_v40 = vpop.permute.xlu1 %2468 }
0x23b4   :  { %v2474_v32 = vmul.f32 %v2469_v40, %v2462_v18 }
0x23b6   :  { %2478 = vrot.lane.b32.xlu0 %v2474_v32, %s3536_s17 }
0x2418   :  { %v2481_v1 = vpop.permute.xlu1 %2480 }
0x2419   :  { %v4420_v31 = vadd.f32 %v2481_v1, %v2465_v4 }
0x241b   :  { %3373 = vtanh.f32 %v4420_v31 }
0x2421   :  { %v3374_v20 = vpop.eup %3373 }
0x2422   :  { %2492 = vrot.lane.b32.xlu0 %v3374_v20, %s3535_s3 }
0x2428   :  { %v2479_v10 = vpop.permute.xlu0 %2478 }
0x2429   :  { %v4425_v43 = vadd.f32 %v2479_v10, %v2464_v28  ;;  %v2642_v10 = vld [vmem:[#allocation10 + $0x8] sm:$0xff] }
0x242b   :  { %3375 = vtanh.f32 %v4425_v43 }
0x2431   :  { %v3376_v17 = vpop.eup %3375 }
0x2432   :  { %2490 = vrot.lane.b32.xlu2 %v3376_v17, %s3535_s3 }
0x248c   :  { %v2491_v15 = vpop.permute.xlu2 %2490 }
0x248d   :  { %v4429_v26 = vmul.f32 %v2491_v15, %v2462_v18 }
0x2494   :  { %v2493_v29 = vpop.permute.xlu0 %2492 }
0x2495   :  { %v2497_v52 = vmul.f32 %v2493_v29, %v2463_v45 }
0x2497   :  { %v2508_v59 = vpack.c.bf16 %v2497_v52, %v4429_v26 }
0x2499   :  { %2510 = vrot.lane.b32.xlu1 %v2508_v59, %s3536_s17 }
0x250b   :  { %v2511_v55 = vpop.permute.xlu1 %2510 }
0x250c   :  { %3134 = vmatmul.msk.bf16.vlgmr.msrb.gmra.mxu2 %vm337_vm2, %v2511_v55  ;;  %3135 = vmatmul.msk.bf16.vlgmr.msrb.gmra.mxu3 %vm337_vm2, %v2511_v55 }
0x258f   :  { %v2524_v14 = vpop.f32.mrf.mxu2  ;;  %v2537_v48 = vpop.f32.mrf.mxu3 }
0x2590   :  { %v2542_v21 = vadd.f32 %v2524_v14, %v4210_v6 }
0x2592   :  { %v2545_v63 = vmul.f32 %v2542_v21, %v3741_v44 }
0x2594   :  { %v3136_v0 = vmul.f32 -1.442695, %v2545_v63 }
0x2596   :  { %3377 = vpow2.f32 %v3136_v0 }
0x2597   :  { %v2526_v58 = vpop.f32.mrf.mxu2  ;;  %v2538_v19 = vpop.f32.mrf.mxu3 }
0x2598   :  { %v2544_v60 = vadd.f32 %v2538_v19, %v4178_v7 }
0x259a   :  { %v2546_v30 = vmul.f32 %v2544_v60, %v3741_v44 }
0x259c   :  { %v3378_v41 = vpop.eup %3377  ;;  %v3137_v37 = vmul.f32 -1.442695, %v2546_v30 }
0x259d   :  { %v2553_v27 = vadd.f32 1.0, %v3378_v41 }
0x259e   :  { %3379 = vpow2.f32 %v3137_v37 }
0x259f   :  { %3381 = vrcp.f32 %v2553_v27  ;;  %v2566_v61 = vand.u32 2147483648, %v2553_v27  ;;  %v2564_v53 = vand.u32 2147483647, %v2553_v27  ;;  %vm2560_vm14 = vweird.f32 %v2553_v27 }
0x25a1   :  { %v2567_v38 = vor.u32 1.1754944e-38, %v2566_v61  ;;  %vm2565_vm1 = vcmp.eq.f32.partialorder %v2564_v53, 8.507059e+37 }
0x25a4   :  { %v3380_v2 = vpop.eup %3379 }
0x25a5   :  { %v3382_v49 = vpop.eup %3381  ;;  %v2554_v42 = vadd.f32 1.0, %v3380_v2  ;;  %v2655_v2 = vld [vmem:[#allocation11 + $0x10] sm:$0xff] }
0x25a6   :  { %v2556_v16 = vmul.f32 %v3382_v49, %v2553_v27  ;;  %vm2561_vm13 = vweird.f32 %v3382_v49 }
0x25a7   :  { %3383 = vrcp.f32 %v2554_v42  ;;  %vm2562_vm15 = vmor %vm2560_vm14, %vm2561_vm13  ;;  %v2581_v34 = vand.u32 2147483648, %v2554_v42  ;;  %v2579_v35 = vand.u32 2147483647, %v2554_v42  ;;  %vm2575_vm4 = vweird.f32 %v2554_v42 }
0x25a8   :  { %v2557_v6 = vsub.f32 1.0, %v2556_v16  ;;  %vm2918_vm13 = vcmask 64512  }
0x25a9   :  { %v2582_v32 = vor.u32 1.1754944e-38, %v2581_v34  ;;  %vm2580_vm6 = vcmp.eq.f32.partialorder %v2579_v35, 8.507059e+37 }
0x25aa   :  { %v2558_v50 = vmul.f32 %v3382_v49, %v2557_v6 }
0x25ac   :  { %v2559_v18 = vadd.f32 %v3382_v49, %v2558_v50 }
0x25ad   :  { %v3384_v7 = vpop.eup %3383 }
0x25ae   :  { %v2571_v54 = vmul.f32 %v3384_v7, %v2554_v42  ;;  %v2563_v11 = vsel %vm2562_vm15, %v3382_v49, %v2559_v18  ;;  %vm2576_vm3 = vweird.f32 %v3384_v7  ;;  %v2654_v49 = vld [vmem:[#allocation11 + $0x8] sm:$0xff]  ;;  %v2653_v42 = vld [vmem:[#allocation11] sm:$0xff] }
0x25af   :  { %v2568_v33 = vsel %vm2565_vm1, %v2567_v38, %v2563_v11  ;;  %vm2577_vm5 = vmor %vm2575_vm4, %vm2576_vm3 }
0x25b0   :  { %v2572_v36 = vsub.f32 1.0, %v2571_v54  ;;  %v2585_v51 = vmul.f32 %v2568_v33, %v3741_v44 }
0x25b2   :  { %v4441_v45 = vadd.f32 %v2585_v51, %v3751_v9  ;;  %v2573_v57 = vmul.f32 %v3384_v7, %v2572_v36 }
0x25b4   :  { %2593 = vrot.lane.b32.xlu1 %v4441_v45, %s3535_s3  ;;  %v2574_v40 = vadd.f32 %v3384_v7, %v2573_v57  ;;  %v2589_v60 = vmul.f32 %v4441_v45, %v4425_v43  ;;  %v2656_v43 = vld [vmem:[#allocation11 + $0x18] sm:$0xff] }
0x25b5   :  { %2693 = vmatpush.msra.mxu0 %v2656_v43 }
0x25b6   :  { %v2578_v4 = vsel %vm2577_vm5, %v3384_v7, %v2574_v40 }
0x25b7   :  { %v2583_v1 = vsel %vm2580_vm6, %v2582_v32, %v2578_v4  ;;  %2694 = vmatpush.msra.mxu0 %v2655_v2 }
0x25b8   :  { %v2586_v20 = vmul.f32 %v2583_v1, %v3741_v44  ;;  %v2644_v44 = vld [vmem:[#allocation10 + $0x18] sm:$0xff] }
0x25b9   :  { %2758 = vmatpush.msra.mxu1 %v2644_v44  ;;  %2695 = vmatpush.msra.mxu0 %v2654_v49 }
0x25ba   :  { %v4447_v28 = vadd.f32 %v2586_v20, %v3751_v9  ;;  %v2643_v9 = vld [vmem:[#allocation10 + $0x10] sm:$0xff] }
0x25bb   :  { %2759 = vmatpush.msra.mxu1 %v2643_v9  ;;  %2696 = vmatpush.msra.mxu0 %v2653_v42 }
0x25bc   :  { %2595 = vrot.lane.b32.xlu2 %v4447_v28, %s3535_s3  ;;  %1749 = vrot.lane.b32.xlu1 %v4231_v47, %s3536_s17  ;;  %v2641_v47 = vld [vmem:[#allocation10] sm:$0xff] }
0x25bd   :  { %2760 = vmatpush.msra.mxu1 %v2642_v10 }
0x25bf   :  { %2761 = vmatpush.msra.mxu1 %v2641_v47 }
0x25c4   :  { %2504 = vrot.lane.b32.xlu1 %v2497_v52, %s3536_s17 }
0x25cc   :  { %2379 = vrot.lane.b32.xlu1 %v4400_v3, %s3536_s17 }
0x25d4   :  { %2129 = vrot.lane.b32.xlu1 %v4338_v39, %s3536_s17 }
0x25dc   :  { %2374 = vrot.lane.b32.xlu1 %v4398_v62, %s3536_s17 }
0x25e4   :  { %1754 = vrot.lane.b32.xlu1 %v4233_v13, %s3536_s17 }
0x2616   :  { %v2596_v17 = vpop.permute.xlu2 %2595 }
0x2617   :  { %v2600_v3 = vmul.f32 %v2596_v17, %v4447_v28 }
0x2619   :  { %2605 = vrot.lane.b32.xlu0 %v2600_v3, %s3536_s17 }
0x2626   :  { %v2594_v39 = vpop.permute.xlu1 %2593 }
0x2627   :  { %v2599_v15 = vmul.f32 %v2594_v39, %v4441_v45 }
0x2629   :  { %2603 = vrot.lane.b32.xlu0 %v2599_v15, %s3536_s17 }
0x262e   :  { %v1750_v62 = vpop.permute.xlu1 %1749 }
0x262f   :  { %1752 = vst.msk [vmem:[#allocation3] sm:$0xff] %vm337_vm2, %v1750_v62 }
0x2631   :  { %1874 = vrot.lane.b32.xlu0 %v4266_v5, %s3536_s17 }
0x2636   :  { %v2505_v13 = vpop.permute.xlu1 %2504  ;;  %v2633_v29 = vld [vmem:[#allocation3] sm:$0xff] }
0x2637   :  { %2507 = vst.msk [vmem:[#allocation4 + $0x8] sm:$0xff] %vm337_vm2, %v2505_v13  ;;  %3146 = vmatmul.msk.f32.vlgmr.msra.gmra.mxu1 %vm337_vm2, %v2633_v29 }
0x2639   :  { %1999 = vrot.lane.b32.xlu0 %v4301_v23, %s3536_s17  ;;  %v2590_v23 = vmul.f32 %v4447_v28, %v4420_v31 }
0x263e   :  { %v2380_v52 = vpop.permute.xlu1 %2379 }
0x263f   :  { %2382 = vst.msk [vmem:[#allocation4 + $0x10] sm:$0xff] %vm337_vm2, %v2380_v52 }
0x2641   :  { %2254 = vrot.lane.b32.xlu0 %v4369_v24, %s3536_s17 }
0x2646   :  { %v2130_v59 = vpop.permute.xlu1 %2129  ;;  %v2647_v53 = vld [vmem:[#allocation4 + $0x10] sm:$0xff] }
0x2647   :  { %2132 = vst.msk [vmem:[#allocation4 + $0x20] sm:$0xff] %vm337_vm2, %v2130_v59 }
0x2649   :  { %2004 = vrot.lane.b32.xlu0 %v4303_v56, %s3536_s17 }
0x264e   :  { %v2375_v5 = vpop.permute.xlu1 %2374  ;;  %v2649_v11 = vld [vmem:[#allocation4 + $0x20] sm:$0xff] }
0x264f   :  { %2377 = vst.msk [vmem:[#allocation3 + $0x28] sm:$0xff] %vm337_vm2, %v2375_v5 }
0x2651   :  { %2499 = vrot.lane.b32.xlu0 %v4429_v26, %s3536_s17 }
0x2656   :  { %v1755_v55 = vpop.permute.xlu1 %1754  ;;  %v2638_v33 = vld [vmem:[#allocation3 + $0x28] sm:$0xff] }
0x2657   :  { %1757 = vst.msk [vmem:[#allocation4 + $0x38] sm:$0xff] %vm337_vm2, %v1755_v55 }
0x268b   :  { %v2606_v14 = vpop.permute.xlu0 %2605 }
0x268c   :  { %v2610_v24 = vadd.f32 %v2606_v14, %v2590_v23  ;;  %v3537_v23 = vmov 1  }
0x268e   :  { %3385 = vtanh.f32 %v2610_v24 }
0x2694   :  { %v3386_v48 = vpop.eup %3385 }
0x2695   :  { %2617 = vrot.lane.b32.xlu2 %v3386_v48, %s3535_s3 }
0x269b   :  { %v2604_v21 = vpop.permute.xlu0 %2603 }
0x269c   :  { %v2609_v30 = vadd.f32 %v2604_v21, %v2589_v60  ;;  %v3157_v60 = vsel %vm2835_vm8, 1.0, %v3533_v25 }
0x269e   :  { %3387 = vtanh.f32 %v2609_v30 }
0x26a3   :  { %v1875_v56 = vpop.permute.xlu0 %1874 }
0x26a4   :  { %1877 = vst.msk [vmem:[#allocation3 + $0x8] sm:$0xff] %vm337_vm2, %v1875_v56  ;;  %v3388_v27 = vpop.eup %3387 }
0x26ab   :  { %v2000_v63 = vpop.permute.xlu0 %1999  ;;  %v2634_v0 = vld [vmem:[#allocation3 + $0x8] sm:$0xff] }
0x26ac   :  { %2002 = vst.msk [vmem:[#allocation3 + $0x10] sm:$0xff] %vm337_vm2, %v2000_v63  ;;  %3147 = vmatmul.msk.f32.gmra.mxu1 %vm337_vm2, %v2634_v0  ;;  %v3154_v0 = vsel %vm2787_vm7, 1.0, %v3533_v25 }
0x26b3   :  { %v2255_v26 = vpop.permute.xlu0 %2254  ;;  %v2635_v58 = vld [vmem:[#allocation3 + $0x10] sm:$0xff] }
0x26b4   :  { %2257 = vst.msk [vmem:[#allocation4 + $0x18] sm:$0xff] %vm337_vm2, %v2255_v26  ;;  %3148 = vmatmul.msk.f32.gmra.mxu1 %vm337_vm2, %v2635_v58  ;;  %v2763_v40 = vpop.f32.mrf.mxu1 }
0x26bb   :  { %v2005_v31 = vpop.permute.xlu0 %2004  ;;  %v2648_v38 = vld [vmem:[#allocation4 + $0x18] sm:$0xff] }
0x26bc   :  { %2007 = vst.msk [vmem:[#allocation4 + $0x28] sm:$0xff] %vm337_vm2, %v2005_v31  ;;  %v3156_v31 = vsel %vm2819_vm0, 1.0, %v3533_v25 }
0x26c3   :  { %v2500_v19 = vpop.permute.xlu0 %2499  ;;  %v2650_v36 = vld [vmem:[#allocation4 + $0x28] sm:$0xff] }
0x26c4   :  { %2502 = vst.msk [vmem:[#allocation3 + $0x30] sm:$0xff] %vm337_vm2, %v2500_v19 }
0x26cb   :  { %v2639_v51 = vld [vmem:[#allocation3 + $0x30] sm:$0xff] }
0x26ef   :  { %v2618_v41 = vpop.permute.xlu2 %2617 }
0x26f0   :  { %v2622_v37 = vmul.f32 %v2618_v41, %v4447_v28 }
0x26f2   :  { %2629 = vrot.lane.b32.xlu2 %v2622_v37, %s3536_s17  ;;  %v3158_v37 = vsel %vm2851_vm9, 1.0, %v3533_v25 }
0x26fa   :  { %2615 = vrot.lane.b32.xlu2 %v3388_v27, %s3535_s3 }
0x2702   :  { %2124 = vrot.lane.b32.xlu2 %v4336_v12, %s3536_s17 }
0x270a   :  { %2249 = vrot.lane.b32.xlu2 %v4367_v8, %s3536_s17  ;;  %v2646_v8 = vld [vmem:[#allocation4 + $0x8] sm:$0xff] }
0x2712   :  { %1879 = vrot.lane.b32.xlu2 %v4268_v46, %s3536_s17 }
0x2729   :  { %v2766_v32 = vpop.f32.mrf.mxu1 }
0x2731   :  { %v2769_v44 = vpop.f32.mrf.mxu1 }
0x274c   :  { %v2630_v16 = vpop.permute.xlu2 %2629 }
0x274d   :  { %2632 = vst.msk [vmem:[#allocation4] sm:$0xff] %vm337_vm2, %v2630_v16 }
0x2754   :  { %v2616_v6 = vpop.permute.xlu2 %2615  ;;  %v2645_v61 = vld [vmem:[#allocation4] sm:$0xff] }
0x2755   :  { %v2621_v12 = vmul.f32 %v2616_v6, %v4441_v45  ;;  %3138 = vmatmul.msk.f32.vlgmr.msra.gmra.mxu0 %vm337_vm2, %v2645_v61  ;;  %v2652_v45 = vld [vmem:[#allocation4 + $0x38] sm:$0xff]  ;;  %v3159_v6 = vsel %vm2867_vm10, 1.0, %v3533_v25 }
0x2757   :  { %2624 = vrot.lane.b32.xlu2 %v2621_v12, %s3536_s17  ;;  %v3160_v12 = vsel %vm2883_vm11, 1.0, %v3533_v25 }
0x275c   :  { %v2125_v46 = vpop.permute.xlu2 %2124 }
0x275d   :  { %2127 = vst.msk [vmem:[#allocation3 + $0x18] sm:$0xff] %vm337_vm2, %v2125_v46  ;;  %3139 = vmatmul.msk.f32.gmra.mxu0 %vm337_vm2, %v2646_v8 }
0x2764   :  { %v2250_v50 = vpop.permute.xlu2 %2249  ;;  %v2636_v18 = vld [vmem:[#allocation3 + $0x18] sm:$0xff] }
0x2765   :  { %2252 = vst.msk [vmem:[#allocation3 + $0x20] sm:$0xff] %vm337_vm2, %v2250_v50  ;;  %3140 = vmatmul.msk.f32.gmra.mxu0 %vm337_vm2, %v2647_v53  ;;  %3149 = vmatmul.msk.f32.gmra.mxu1 %vm337_vm2, %v2636_v18  ;;  %v3161_v18 = vsel %vm2899_vm12, 1.0, %v3533_v25 }
0x276c   :  { %v1880_v7 = vpop.permute.xlu2 %1879  ;;  %v2637_v54 = vld [vmem:[#allocation3 + $0x20] sm:$0xff] }
0x276d   :  { %1882 = vst.msk [vmem:[#allocation4 + $0x30] sm:$0xff] %vm337_vm2, %v1880_v7  ;;  %3141 = vmatmul.msk.f32.gmra.mxu0 %vm337_vm2, %v2648_v38  ;;  %3150 = vmatmul.msk.f32.gmra.mxu1 %vm337_vm2, %v2637_v54 }
0x2774   :  { %v2651_v34 = vld [vmem:[#allocation4 + $0x30] sm:$0xff] }
0x2775   :  { %3142 = vmatmul.msk.f32.gmra.mxu0 %vm337_vm2, %v2649_v11  ;;  %3151 = vmatmul.msk.f32.gmra.mxu1 %vm337_vm2, %v2638_v33  ;;  %v2916_v33 = vstv %s4565_s9 }
0x277d   :  { %3143 = vmatmul.msk.f32.gmra.mxu0 %vm337_vm2, %v2650_v36  ;;  %3152 = vmatmul.msk.f32.gmra.mxu1 %vm337_vm2, %v2639_v51 }
0x2785   :  { %3144 = vmatmul.msk.f32.gmra.mxu0 %vm337_vm2, %v2651_v34 }
0x278d   :  { %3145 = vmatmul.msk.f32.gmra.mxu0 %vm337_vm2, %v2652_v45 }
0x27b1   :  { %v2625_v57 = vpop.permute.xlu2 %2624 }
0x27b2   :  { %2627 = vst.msk [vmem:[#allocation3 + $0x38] sm:$0xff] %vm337_vm2, %v2625_v57 }
0x27b9   :  { %v2640_v35 = vld [vmem:[#allocation3 + $0x38] sm:$0xff] }
0x27ba   :  { %3153 = vmatmul.msk.f32.gmra.mxu1 %vm337_vm2, %v2640_v35  ;;  %vm2803_vm2 = vcmp.eq.s32.totalorder %v3685_v22, 1 }
0x27bb   :  { %v3155_v56 = vsel %vm2803_vm2, 1.0, %v3533_v25 }
0x27d2   :  { %v2698_v4 = vpop.f32.mrf.mxu0 }
0x27d3   :  { %v2764_v1 = vadd.f32 %v2763_v40, %v2698_v4  ;;  %v2944_v4 = vld [vmem:[#allocation13] sm:$0xff] }
0x27d4   :  { %2967 = vmatpush.msra.mxu2 %v2944_v4 }
0x27d5   :  { %2792 = vperm.xlu0 %3190, %v2764_v1  }
0x27da   :  { %v2701_v20 = vpop.f32.mrf.mxu0 }
0x27db   :  { %v2767_v28 = vadd.f32 %v2766_v32, %v2701_v20 }
0x27dd   :  { %2808 = vperm.xlu1 %3191, %v2767_v28  }
0x27e2   :  { %v2704_v9 = vpop.f32.mrf.mxu0  ;;  %v2772_v47 = vpop.f32.mrf.mxu1 }
0x27e3   :  { %v2770_v10 = vadd.f32 %v2769_v44, %v2704_v9 }
0x27e5   :  { %2824 = vperm.xlu2 %3192, %v2770_v10  }
0x27ea   :  { %v2707_v17 = vpop.f32.mrf.mxu0  ;;  %v2775_v39 = vpop.f32.mrf.mxu1 }
0x27eb   :  { %v2773_v3 = vadd.f32 %v2772_v47, %v2707_v17 }
0x27ed   :  { %2840 = vperm.xlu0 %3190, %v2773_v3  }
0x27f2   :  { %v2710_v15 = vpop.f32.mrf.mxu0  ;;  %v2778_v13 = vpop.f32.mrf.mxu1 }
0x27f3   :  { %v2776_v62 = vadd.f32 %v2775_v39, %v2710_v15 }
0x27f5   :  { %2856 = vperm.xlu1 %3191, %v2776_v62  }
0x27fa   :  { %v2713_v29 = vpop.f32.mrf.mxu0  ;;  %v2781_v59 = vpop.f32.mrf.mxu1 }
0x27fb   :  { %v4524_v52 = vadd.f32 %v2778_v13, %v2713_v29 }
0x27fd   :  { %2872 = vperm.xlu2 %3192, %v4524_v52  }
0x2802   :  { %v2716_v5 = vpop.f32.mrf.mxu0 }
0x2803   :  { %v2782_v55 = vadd.f32 %v2781_v59, %v2716_v5 }
0x2805   :  { %2888 = vperm.xlu0 %3190, %v2782_v55   ;;  %3194 = vset.pattern.permute.xlu2 %v3537_v23 }
0x280a   :  { %v2719_v14 = vpop.f32.mrf.mxu0 }
0x280d   :  { %3195 = vset.pattern.permute.xlu0 %v3537_v23 }
0x2837   :  { %v2784_v24 = vpop.f32.mrf.mxu1 }
0x2838   :  { %v2785_v48 = vadd.f32 %v2784_v24, %v2719_v14 }
0x283a   :  { %2904 = vperm.xlu1 %3191, %v2785_v48  }
0x283f   :  { %v2825_v19 = vpop.permute.xlu2 %2824 }
0x2840   :  { %v2827_v43 = vmul.f32 %v3156_v31, %v2825_v19 }
0x2842   :  { %3193 = vset.pattern.permute.xlu1 %v3537_v23 }
0x2843   :  { %2798 = vperm.xlu1 %3193, %v2764_v1  }
0x2847   :  { %v2793_v21 = vpop.permute.xlu0 %2792 }
0x2848   :  { %v2795_v58 = vmul.f32 %v3154_v0, %v2793_v21 }
0x284b   :  { %2814 = vperm.xlu1 %3193, %v2767_v28  }
0x284f   :  { %v2809_v63 = vpop.permute.xlu1 %2808 }
0x2850   :  { %v2811_v26 = vmul.f32 %v3155_v56, %v2809_v63 }
0x2852   :  { %v2812_v41 = vadd.f32 %v2811_v26, %v2795_v58 }
0x2853   :  { %2830 = vperm.xlu1 %3193, %v2770_v10  }
0x2854   :  { %v2828_v49 = vadd.f32 %v2827_v43, %v2812_v41 }
0x2857   :  { %v2873_v61 = vpop.permute.xlu2 %2872 }
0x2858   :  { %v2875_v50 = vmul.f32 %v3159_v6, %v2873_v61 }
0x285b   :  { %2846 = vperm.xlu1 %3193, %v2773_v3  }
0x285f   :  { %v2841_v30 = vpop.permute.xlu0 %2840 }
0x2860   :  { %v2843_v2 = vmul.f32 %v3157_v60, %v2841_v30 }
0x2862   :  { %v2844_v16 = vadd.f32 %v2843_v2, %v2828_v49 }
0x2863   :  { %2862 = vperm.xlu1 %3193, %v2776_v62  }
0x2867   :  { %v2857_v27 = vpop.permute.xlu1 %2856 }
0x2868   :  { %v2859_v42 = vmul.f32 %v3158_v37, %v2857_v27  ;;  %v3196_v27 = vld [vmem:[%s4567_s11] ss:$0 sm:$0xff] }
0x286a   :  { %v2860_v8 = vadd.f32 %v2859_v42, %v2844_v16 }
0x286b   :  { %2894 = vperm.xlu1 %3193, %v2782_v55  }
0x286c   :  { %v2876_v7 = vadd.f32 %v2875_v50, %v2860_v8 }
0x2877   :  { %v2889_v46 = vpop.permute.xlu0 %2888 }
0x2878   :  { %v2891_v53 = vmul.f32 %v3160_v12, %v2889_v46 }
0x287a   :  { %v2892_v54 = vadd.f32 %v2891_v53, %v2876_v7 }
0x28ac   :  { %v2905_v38 = vpop.permute.xlu1 %2904 }
0x28ad   :  { %v2907_v11 = vmul.f32 %v3161_v18, %v2905_v38 }
0x28af   :  { %v2908_v36 = vadd.f32 %v2907_v11, %v2892_v54 }
0x28b1   :  { %v2917_v51 = vadd.f32 %v2916_v33, %v2908_v36 }
0x28b3   :  { %v2919_v34 = vsel %vm2918_vm13, %v2917_v51, -inf }
0x28b4   :  { %2920 = vmax.xlane.f32.xlu2 %v2919_v34 }
0x28b5   :  { %v2799_v40 = vpop.permute.xlu1 %2798 }
0x28b6   :  { %v2801_v10 = vmul.f32 %v3154_v0, %v2799_v40 }
0x28bd   :  { %v2815_v32 = vpop.permute.xlu1 %2814 }
0x28be   :  { %v2817_v44 = vmul.f32 %v3155_v56, %v2815_v32 }
0x28c0   :  { %v2818_v3 = vadd.f32 %v2817_v44, %v2801_v10 }
0x28c5   :  { %v2831_v1 = vpop.permute.xlu1 %2830 }
0x28c6   :  { %v2833_v47 = vmul.f32 %v3156_v31, %v2831_v1 }
0x28c8   :  { %v2834_v13 = vadd.f32 %v2833_v47, %v2818_v3 }
0x28cc   :  { %2878 = vperm.xlu2 %3194, %v4524_v52  }
0x28cd   :  { %v2847_v20 = vpop.permute.xlu1 %2846 }
0x28ce   :  { %v2849_v39 = vmul.f32 %v3157_v60, %v2847_v20 }
0x28d0   :  { %v2850_v59 = vadd.f32 %v2849_v39, %v2834_v13 }
0x28d5   :  { %v2863_v9 = vpop.permute.xlu1 %2862 }
0x28d6   :  { %v2865_v29 = vmul.f32 %v3158_v37, %v2863_v9 }
0x28d8   :  { %v2866_v14 = vadd.f32 %v2865_v29, %v2850_v59 }
0x28dd   :  { %v2895_v21 = vpop.permute.xlu1 %2894 }
0x28de   :  { %v2897_v26 = vmul.f32 %v3160_v12, %v2895_v21 }
0x2927   :  { %v2921_v22 = vpop.xlane.xlu2 %2920 }
0x2928   :  { %v2922_v45 = vsub.f32 %v2917_v51, %v2921_v22 }
0x292a   :  { %v2923_v57 = vmul.f32 1.442695, %v2922_v45 }
0x292c   :  { %3389 = vpow2.f32 %v2923_v57 }
0x292f   :  { %v2879_v62 = vpop.permute.xlu2 %2878 }
0x2930   :  { %v2881_v5 = vmul.f32 %v3159_v6, %v2879_v62 }
0x2932   :  { %v3390_v25 = vpop.eup %3389  ;;  %v2882_v56 = vadd.f32 %v2881_v5, %v2866_v14 }
0x2933   :  { %v2925_v35 = vsel %vm2918_vm13, %v3390_v25, 0.0 }
0x2934   :  { %2926 = vadd.xlane.f32.xlu0 %v2925_v35  ;;  %v2898_v19 = vadd.f32 %v2897_v26, %v2882_v56 }
0x2948   :  { %2910 = vperm.xlu0 %3195, %v2785_v48  }
0x29a7   :  { %v2927_v28 = vpop.xlane.xlu0 %2926 }
0x29a8   :  { %3391 = vrcp.f32 %v2927_v28  ;;  %v2939_v23 = vand.u32 2147483648, %v2927_v28  ;;  %vm2933_vm15 = vweird.f32 %v2927_v28  ;;  %v2937_v48 = vand.u32 2147483647, %v2927_v28 }
0x29aa   :  { %v2940_v0 = vor.u32 1.1754944e-38, %v2939_v23  ;;  %vm2938_vm3 = vcmp.eq.f32.partialorder %v2937_v48, 8.507059e+37 }
0x29ae   :  { %v3392_v17 = vpop.eup %3391 }
0x29af   :  { %v2929_v15 = vmul.f32 %v3392_v17, %v2927_v28  ;;  %vm2934_vm14 = vweird.f32 %v3392_v17 }
0x29b0   :  { %vm2935_vm1 = vmor %vm2933_vm15, %vm2934_vm14 }
0x29b1   :  { %v2930_v52 = vsub.f32 1.0, %v2929_v15 }
0x29b3   :  { %v2931_v55 = vmul.f32 %v3392_v17, %v2930_v52 }
0x29b5   :  { %v2932_v24 = vadd.f32 %v3392_v17, %v2931_v55 }
0x29b7   :  { %v2936_v63 = vsel %vm2935_vm1, %v3392_v17, %v2932_v24 }
0x29b8   :  { %v2941_v58 = vsel %vm2938_vm3, %v2940_v0, %v2936_v63 }
0x29b9   :  { %v2942_v30 = vmul.f32 %v3390_v25, %v2941_v58 }
0x29ba   :  { %v2911_v31 = vpop.permute.xlu0 %2910 }
0x29bb   :  { %v2913_v60 = vmul.f32 %v3161_v18, %v2911_v31 }
0x29bd   :  { %v2914_v41 = vadd.f32 %v2913_v60, %v2898_v19 }
0x29bf   :  { %v2943_v37 = vmul.f32 %v2942_v30, %v2914_v41 }
0x29c1   :  { %3162 = vmatmul.msk.f32.vlgmr.msra.gmra.mxu2 %vm2918_vm13, %v2943_v37 }
0x2a44   :  { %v2969_v43 = vpop.f32.mrf.mxu2 }
0x2a45   :  { %v2970_v2 = vadd.f32 %v3196_v27, %v2969_v43 }
0x2a47   :  { %2972 = vmax.xlane.f32.xlu1 %v2970_v2 }
0x2aba   :  { %v2973_v49 = vpop.xlane.xlu1 %2972 }
0x2abb   :  { %v2974_v42 = vsub.f32 %v2970_v2, %v2973_v49 }
0x2abd   :  { %v2975_v16 = vmul.f32 1.442695, %v2974_v42 }
0x2abf   :  { %3393 = vpow2.f32 %v2975_v16 }
0x2ac5   :  { %v3394_v6 = vpop.eup %3393 }
0x2ac6   :  { %2977 = vadd.xlane.f32.xlu2 %v3394_v6 }
0x2b39   :  { %v2978_v61 = vpop.xlane.xlu2 %2977 }
0x2b3a   :  { %3395 = vlog2.f32 %v2978_v61 }
0x2b40   :  { %v3396_v12 = vpop.eup %3395 }
0x2b41   :  { %v2980_v46 = vmul.f32 0.6931472, %v3396_v12 }
0x2b43   :  { %v2981_v8 = vsub.f32 %v2974_v42, %v2980_v46 }
0x2b45   :  { %2982 = vst [vmem:[%s4568_s12] sm:$0xff] %v2981_v8 }
0x2b46   :  { %2987 = vsyncpa [#allocation7], 1 }
0x2b47   :  { %2988 = vsyncpa [#allocation9], 1 }
0x2b48   :  { %2989 = vsyncpa [#allocation12], 1 }

</bundles_post_ra>
